<compile_context>
chip_gen: v6e
topology: v6e:2x2x1
jax: 0.10.0
libtpu: 0.0.40
codegen_flags: <defaults>
</compile_context>

<pallas_src>
import jax
import jax.numpy as jnp
from jax.experimental import pallas as pl
from jax.experimental.pallas import tpu as pltpu

FEAT = 128                     # backbone output dim (timm num_classes=128)
HID = 128                      # surrogate backbone hidden dim
PATCH = 4                      # surrogate patch size
K3 = 3 * PATCH * PATCH         # 48  : 3-channel patch-embed contraction dim
K30 = 30 * PATCH * PATCH       # 480 : 30-channel patch-embed contraction dim
NHEAD = 5
HEAD_ORDER = ("scs", "nfn_l", "nfn_r", "ss_left", "ss_right")


# ------------------------------ fused kernel --------------------------------

def custom_rain_kernel(lvl_idx_ref, lev_ref,
                       xp_t1_ref, xp_t2_ref, xp_ax_ref, xp_full_ref,
                       pool4_ref, pool3_ref, pool1_ref,
                       bb_w1_ref, bb_b1_ref, bb_w2_ref, bb_b2_ref,
                       s_w1_ref, s_b1_ref, s_w2_ref, s_b2_ref,
                       mid_wl_ref, mid_wr_ref, mid_wt2_ref, mid_b_ref,
                       hw_pair_ref, hw_shared_ref, hb1_ref,
                       hw2_ref, hb2_ref,
                       out_ref):
    f32 = jnp.float32
    bf16 = jnp.bfloat16
    dot = lambda a, b: jnp.dot(a, b, preferred_element_type=f32)
    relu = lambda v: jnp.maximum(v, 0.0)
    cat = lambda *xs: jnp.concatenate(xs, axis=-1)
    B = out_ref.shape[0]

    def encode(xp, pool, w1, b1, w2, b2):
        # surrogate backbone: patch-embed -> GELU -> block-diag mean pool -> proj
        h = dot(xp, w1) + b1                                   # [n*B*P, HID] f32
        # TODO(synk): PyTorch nn.GELU defaults to exact erf; tanh approx used here.
        h = jax.nn.gelu(h, approximate=True)
        pooled = dot(pool, h.astype(bf16))                     # [n*B, HID]  f32
        return dot(pooled.astype(bf16), w2) + b2               # [n*B, FEAT] f32

    # grouped backbone passes: all crops of one backbone batched along M.
    f_t1 = encode(xp_t1_ref[...], pool4_ref[...],
                  bb_w1_ref[0], bb_b1_ref[0], bb_w2_ref[0], bb_b2_ref[0])    # [4B,F]
    f_t2 = encode(xp_t2_ref[...], pool3_ref[...],
                  bb_w1_ref[1], bb_b1_ref[1], bb_w2_ref[1], bb_b2_ref[1])    # [3B,F]
    f_ax = encode(xp_ax_ref[...], pool3_ref[...],
                  bb_w1_ref[2], bb_b1_ref[2], bb_w2_ref[2], bb_b2_ref[2])    # [3B,F]
    x_stack = encode(xp_full_ref[...], pool1_ref[...],
                     s_w1_ref[...], s_b1_ref[...], s_w2_ref[...], s_b2_ref[...])  # [B,F]

    # per-crop features: static sublane slices (rows are crop-major).
    x_t1_l1, x_t1_l2 = f_t1[0 * B:1 * B], f_t1[1 * B:2 * B]
    x_t1_r1, x_t1_r2 = f_t1[2 * B:3 * B], f_t1[3 * B:4 * B]
    x_t2_1, x_t2_2, x_t2_3 = f_t2[0:B], f_t2[B:2 * B], f_t2[2 * B:3 * B]
    x_ax_l, x_ax_c, x_ax_r = f_ax[0:B], f_ax[B:2 * B], f_ax[2 * B:3 * B]

    # mid heads: K-concatenated Linear + ReLU, one MXU dot each.
    x_t1_l = relu(dot(cat(x_t1_l1, x_t1_l2).astype(bf16), mid_wl_ref[...]) + mid_b_ref[0])
    x_t1_r = relu(dot(cat(x_t1_r1, x_t1_r2).astype(bf16), mid_wr_ref[...]) + mid_b_ref[1])
    x_t2 = relu(dot(cat(x_t2_1, x_t2_2, x_t2_3).astype(bf16), mid_wt2_ref[...]) + mid_b_ref[2])

    # level-embedding lookup in-kernel: iota mask + sublane reduce (no gather).
    idx = lvl_idx_ref[0]
    row_ids = jax.lax.broadcasted_iota(jnp.int32, lev_ref.shape, 0)
    lvl_row = jnp.sum(jnp.where(row_ids == idx, lev_ref[...], 0.0),
                      axis=0, keepdims=True)                    # [1, FEAT]
    lvl_b = jnp.broadcast_to(lvl_row, (B, FEAT))

    # shared term of all 5 output heads (x_stack + level slabs of every head's
    # first Linear packed into one [256, 5*FEAT] weight): ONE matmul, not 10.
    shared = dot(cat(x_stack, lvl_b).astype(bf16), hw_shared_ref[...])   # [B, 5*FEAT]

    # head-specific pair terms; order MUST match HEAD_ORDER / hw2 block layout.
    pairs = ((x_t2, x_ax_c),      # scs
             (x_t1_l, x_ax_l),    # nfn_l
             (x_t1_r, x_ax_r),    # nfn_r
             (x_ax_l, x_t1_l),    # ss_left
             (x_ax_r, x_t1_r))    # ss_right
    pair_terms = [dot(cat(c0, c1).astype(bf16), hw_pair_ref[j])
                  for j, (c0, c1) in enumerate(pairs)]
    h_all = relu(cat(*pair_terms) + shared + hb1_ref[...])      # [B, 5*FEAT]

    # the five Linear(128, 3) as one block-diagonal [5*FEAT, FEAT] matmul;
    # head j's 3 logits land at lanes 3j..3j+2 of the lane-dense output.
    out = dot(h_all.astype(bf16), hw2_ref[...]) + hb2_ref[...]
    out_ref[...] = out.astype(out_ref.dtype)


# --------------------------------- JAX glue ----------------------------------

def patchify(x, patch=PATCH):
    # NCHW -> [B, num_patches, C*patch*patch]
    B, C, H, W = x.shape
    x = x.reshape(B, C, H // patch, patch, W // patch, patch)
    x = jnp.transpose(x, (0, 2, 4, 1, 3, 5))
    return x.reshape(B, (H // patch) * (W // patch), C * patch * patch)


def init_params(key):
    assert len(HEAD_ORDER) == NHEAD
    ks = jax.random.split(key, 8)

    def dense_w(k, fan_in, fan_out):
        return (jax.random.normal(k, (fan_in, fan_out), jnp.float32)
                * (1.0 / jnp.sqrt(jnp.float32(fan_in))))

    p = {}
    # three 3-channel surrogate backbones (t1, t2, axial), stacked on axis 0
    p["bb_w1"] = jnp.stack([dense_w(k, K3, HID)
                            for k in jax.random.split(ks[0], 3)]).astype(jnp.bfloat16)
    p["bb_b1"] = jnp.zeros((3, 1, HID), jnp.float32)
    p["bb_w2"] = jnp.stack([dense_w(k, HID, FEAT)
                            for k in jax.random.split(ks[1], 3)]).astype(jnp.bfloat16)
    p["bb_b2"] = jnp.zeros((3, 1, FEAT), jnp.float32)

    # 30-channel "stack" surrogate backbone
    p["s_w1"] = dense_w(ks[2], K30, HID).astype(jnp.bfloat16)
    p["s_b1"] = jnp.zeros((1, HID), jnp.float32)
    p["s_w2"] = dense_w(ks[3], HID, FEAT).astype(jnp.bfloat16)
    p["s_b2"] = jnp.zeros((1, FEAT), jnp.float32)

    # mid heads: full K-concatenated Linear weights, bf16 for the MXU
    kl, kr, kt = jax.random.split(ks[4], 3)
    p["mid_wl"] = dense_w(kl, 2 * FEAT, FEAT).astype(jnp.bfloat16)    # [256,128]
    p["mid_wr"] = dense_w(kr, 2 * FEAT, FEAT).astype(jnp.bfloat16)    # [256,128]
    p["mid_wt2"] = dense_w(kt, 3 * FEAT, FEAT).astype(jnp.bfloat16)   # [384,128]
    p["mid_b"] = jnp.zeros((3, 1, FEAT), jnp.float32)

    # 5 output heads, Linear(512,128): rows 0:256 are the head-specific pair
    # slabs (hw_pair), rows 256:512 (x_stack + level) are packed per-head into
    # the shared [256, 5*FEAT] weight. Column block j corresponds to HEAD_ORDER[j].
    k1s = jax.random.split(ks[5], NHEAD)
    k2s = jax.random.split(ks[6], NHEAD)
    w1_full = [dense_w(k, 4 * FEAT, FEAT) for k in k1s]               # [512,128] each
    p["hw_pair"] = jnp.stack([w[:2 * FEAT] for w in w1_full]).astype(jnp.bfloat16)
    hw_shared = jnp.zeros((2 * FEAT, NHEAD * FEAT), jnp.float32)
    for j, w in enumerate(w1_full):
        hw_shared = hw_shared.at[:FEAT, j * FEAT:(j + 1) * FEAT].set(w[2 * FEAT:3 * FEAT])
        hw_shared = hw_shared.at[FEAT:, j * FEAT:(j + 1) * FEAT].set(w[3 * FEAT:])
    p["hw_shared"] = hw_shared.astype(jnp.bfloat16)                   # [256, 640]
    p["hb1"] = jnp.zeros((1, NHEAD * FEAT), jnp.float32)

    # block-diagonal second layer: head j's [128,3] weight at rows 128j:128(j+1),
    # lanes 3j:3j+3.  This placement must match `pairs` order in the kernel.
    hw2 = jnp.zeros((NHEAD * FEAT, FEAT), jnp.float32)
    for j in range(NHEAD):
        hw2 = hw2.at[j * FEAT:(j + 1) * FEAT, 3 * j:3 * j + 3].set(dense_w(k2s[j], FEAT, 3))
    p["hw2"] = hw2.astype(jnp.bfloat16)                               # [640, 128]
    p["hb2"] = jnp.zeros((1, FEAT), jnp.float32)

    # level embeddings: 5 real rows, zero-padded to 8 for a clean sublane tile
    lev = jax.random.normal(ks[7], (5, FEAT), jnp.float32)
    p["lev"] = jnp.concatenate([lev, jnp.zeros((3, FEAT), jnp.float32)], axis=0)
    return p


def custom_rain_forward(params, stack, level_idx):
    # stack: [B, 30, H, W] float32 (NCHW) ; level_idx: int scalar in [0, 5)
    B, C, H, W = stack.shape
    assert C == 30
    P = (H // PATCH) * (W // PATCH)

    # 10 three-channel crops (channels 0:3, 3:6, ..., 27:30), grouped per backbone
    # and batched along the row (M) axis: t1 = crops 0-3, t2 = 4-6, axial = 7-9.
    crops = jnp.transpose(stack.reshape(B, 10, 3, H, W), (1, 0, 2, 3, 4))
    xp3 = patchify(crops.reshape(10 * B, 3, H, W)).reshape(10, B * P, K3).astype(jnp.bfloat16)
    xp_t1 = xp3[:4].reshape(4 * B * P, K3)
    xp_t2 = xp3[4:7].reshape(3 * B * P, K3)
    xp_ax = xp3[7:].reshape(3 * B * P, K3)
    xp_full = patchify(stack).reshape(B * P, K30).astype(jnp.bfloat16)

    # block-diagonal mean-pool-over-patches matrices (constants under jit):
    # pool_n[r, r*P + p] = 1/P, one per crop-group size.
    def pool_mat(n):
        return jnp.kron(jnp.eye(n * B, dtype=jnp.float32),
                        jnp.full((1, P), 1.0 / P, jnp.float32)).astype(jnp.bfloat16)
    pool4, pool3, pool1 = pool_mat(4), pool_mat(3), pool_mat(1)

    lvl_idx = jnp.reshape(jnp.asarray(level_idx, dtype=jnp.int32), (1,))

    smem = pl.BlockSpec(memory_space=pltpu.MemorySpace.SMEM)
    vmem = pl.BlockSpec(memory_space=pltpu.MemorySpace.VMEM)

    out = pl.pallas_call(
        custom_rain_kernel,
        out_shape=jax.ShapeDtypeStruct((B, FEAT), jnp.float32),
        in_specs=[smem] + [vmem] * 25,
        out_specs=vmem,
        compiler_params=pltpu.CompilerParams(vmem_limit_bytes=32 * 1024 * 1024),
    )(lvl_idx, params["lev"],
      xp_t1, xp_t2, xp_ax, xp_full, pool4, pool3, pool1,
      params["bb_w1"], params["bb_b1"], params["bb_w2"], params["bb_b2"],
      params["s_w1"], params["s_b1"], params["s_w2"], params["s_b2"],
      params["mid_wl"], params["mid_wr"], params["mid_wt2"], params["mid_b"],
      params["hw_pair"], params["hw_shared"], params["hb1"],
      params["hw2"], params["hb2"])

    out = out[:, :15]   # lanes 0..14 hold [scs, nfn_l, nfn_r, ss_left, ss_right]
    assert out.shape[1] == 15, f"Expected 15 classes, got {out.shape[1]}"
    return out


# ---------------------------------- driver -----------------------------------

if __name__ == "__main__":
    key = jax.random.PRNGKey(0)
    k_param, k_x = jax.random.split(key)

    params = init_params(k_param)

    B, C, H, W = 2, 30, 16, 16
    stack = jax.random.normal(k_x, (B, C, H, W), jnp.float32)
    level_idx = jnp.int32(2)

    fwd = jax.jit(custom_rain_forward)
    out = jax.block_until_ready(fwd(params, stack, level_idx))

    assert out.shape == (B, 15) and out.dtype == jnp.float32
    print("KERNEL_OK")
</pallas_src>

<mosaic_0001>
module attributes {stable_mosaic.version = 11 : i64} {
  func.func @custom_rain_kernel(%arg0: memref<1xi32, #tpu.memory_space<smem>>, %arg1: memref<8x128xf32, #tpu.memory_space<vmem>>, %arg2: memref<128x48xbf16, #tpu.memory_space<vmem>>, %arg3: memref<96x48xbf16, #tpu.memory_space<vmem>>, %arg4: memref<96x48xbf16, #tpu.memory_space<vmem>>, %arg5: memref<32x480xbf16, #tpu.memory_space<vmem>>, %arg6: memref<8x128xbf16, #tpu.memory_space<vmem>>, %arg7: memref<6x96xbf16, #tpu.memory_space<vmem>>, %arg8: memref<2x32xbf16, #tpu.memory_space<vmem>>, %arg9: memref<3x48x128xbf16, #tpu.memory_space<vmem>>, %arg10: memref<3x1x128xf32, #tpu.memory_space<vmem>>, %arg11: memref<3x128x128xbf16, #tpu.memory_space<vmem>>, %arg12: memref<3x1x128xf32, #tpu.memory_space<vmem>>, %arg13: memref<480x128xbf16, #tpu.memory_space<vmem>>, %arg14: memref<1x128xf32, #tpu.memory_space<vmem>>, %arg15: memref<128x128xbf16, #tpu.memory_space<vmem>>, %arg16: memref<1x128xf32, #tpu.memory_space<vmem>>, %arg17: memref<256x128xbf16, #tpu.memory_space<vmem>>, %arg18: memref<256x128xbf16, #tpu.memory_space<vmem>>, %arg19: memref<384x128xbf16, #tpu.memory_space<vmem>>, %arg20: memref<3x1x128xf32, #tpu.memory_space<vmem>>, %arg21: memref<5x256x128xbf16, #tpu.memory_space<vmem>>, %arg22: memref<256x640xbf16, #tpu.memory_space<vmem>>, %arg23: memref<1x640xf32, #tpu.memory_space<vmem>>, %arg24: memref<640x128xbf16, #tpu.memory_space<vmem>>, %arg25: memref<1x128xf32, #tpu.memory_space<vmem>>, %arg26: memref<2x128xf32, #tpu.memory_space<vmem>>) attributes {dimension_semantics = [], scalar_prefetch = 0 : i64, scratch_operands = 0 : i64, tpu.core_type = #tpu.core_type<tc>} {
    %c0 = arith.constant 0 : index
    %c0_0 = arith.constant 0 : index
    %0 = vector.load %arg2[%c0, %c0_0] : memref<128x48xbf16, #tpu.memory_space<vmem>>, vector<128x48xbf16>
    %c0_1 = arith.constant 0 : index
    %c0_2 = arith.constant 0 : index
    %1 = vector.load %arg6[%c0_1, %c0_2] : memref<8x128xbf16, #tpu.memory_space<vmem>>, vector<8x128xbf16>
    %c0_3 = arith.constant 0 : index
    %c0_4 = arith.constant 0 : index
    %c0_5 = arith.constant 0 : index
    %2 = vector.load %arg9[%c0_3, %c0_4, %c0_5] : memref<3x48x128xbf16, #tpu.memory_space<vmem>>, vector<1x48x128xbf16>
    %3 = vector.shape_cast %2 : vector<1x48x128xbf16> to vector<48x128xbf16>
    %c0_6 = arith.constant 0 : index
    %c0_7 = arith.constant 0 : index
    %c0_8 = arith.constant 0 : index
    %4 = vector.load %arg10[%c0_6, %c0_7, %c0_8] : memref<3x1x128xf32, #tpu.memory_space<vmem>>, vector<1x1x128xf32>
    %5 = vector.shape_cast %4 : vector<1x1x128xf32> to vector<1x128xf32>
    %c0_9 = arith.constant 0 : index
    %c0_10 = arith.constant 0 : index
    %c0_11 = arith.constant 0 : index
    %6 = vector.load %arg11[%c0_9, %c0_10, %c0_11] : memref<3x128x128xbf16, #tpu.memory_space<vmem>>, vector<1x128x128xbf16>
    %7 = vector.shape_cast %6 : vector<1x128x128xbf16> to vector<128x128xbf16>
    %c0_12 = arith.constant 0 : index
    %c0_13 = arith.constant 0 : index
    %c0_14 = arith.constant 0 : index
    %8 = vector.load %arg12[%c0_12, %c0_13, %c0_14] : memref<3x1x128xf32, #tpu.memory_space<vmem>>, vector<1x1x128xf32>
    %9 = vector.shape_cast %8 : vector<1x1x128xf32> to vector<1x128xf32>
    %cst = arith.constant dense<0.000000e+00> : vector<128x128xf32>
    %10 = tpu.matmul %0, %3, %cst {dimension_numbers = #tpu.dot_dimension_numbers<[1], [0], [0], [1], [0, 0, 1, 1], [], []>} : vector<128x48xbf16>, vector<48x128xbf16>, vector<128x128xf32> -> vector<128x128xf32>
    %11 = vector.broadcast %5 : vector<1x128xf32> to vector<128x128xf32>
    %12 = arith.addf %10, %11 : vector<128x128xf32>
    %13 = arith.mulf %12, %12 : vector<128x128xf32>
    %14 = arith.mulf %12, %13 : vector<128x128xf32>
    %cst_15 = arith.constant 4.471500e-02 : f32
    %15 = vector.broadcast %cst_15 : f32 to vector<128x128xf32>
    %16 = arith.mulf %15, %14 : vector<128x128xf32>
    %17 = arith.addf %12, %16 : vector<128x128xf32>
    %cst_16 = arith.constant 0.797884583 : f32
    %18 = vector.broadcast %cst_16 : f32 to vector<128x128xf32>
    %19 = arith.mulf %18, %17 : vector<128x128xf32>
    %20 = math.tanh %19 : vector<128x128xf32>
    %cst_17 = arith.constant 1.000000e+00 : f32
    %21 = vector.broadcast %cst_17 : f32 to vector<128x128xf32>
    %22 = arith.addf %21, %20 : vector<128x128xf32>
    %cst_18 = arith.constant 5.000000e-01 : f32
    %23 = vector.broadcast %cst_18 : f32 to vector<128x128xf32>
    %24 = arith.mulf %23, %22 : vector<128x128xf32>
    %25 = arith.mulf %12, %24 : vector<128x128xf32>
    %26 = arith.truncf %25 : vector<128x128xf32> to vector<128x128xbf16>
    %cst_19 = arith.constant dense<0.000000e+00> : vector<8x128xf32>
    %27 = tpu.matmul %1, %26, %cst_19 {dimension_numbers = #tpu.dot_dimension_numbers<[1], [0], [0], [1], [0, 0, 1, 1], [], []>} : vector<8x128xbf16>, vector<128x128xbf16>, vector<8x128xf32> -> vector<8x128xf32>
    %28 = arith.truncf %27 : vector<8x128xf32> to vector<8x128xbf16>
    %cst_20 = arith.constant dense<0.000000e+00> : vector<8x128xf32>
    %29 = tpu.matmul %28, %7, %cst_20 {dimension_numbers = #tpu.dot_dimension_numbers<[1], [0], [0], [1], [0, 0, 1, 1], [], []>} : vector<8x128xbf16>, vector<128x128xbf16>, vector<8x128xf32> -> vector<8x128xf32>
    %30 = vector.broadcast %9 : vector<1x128xf32> to vector<8x128xf32>
    %31 = arith.addf %29, %30 : vector<8x128xf32>
    %c0_21 = arith.constant 0 : index
    %c0_22 = arith.constant 0 : index
    %32 = vector.load %arg3[%c0_21, %c0_22] : memref<96x48xbf16, #tpu.memory_space<vmem>>, vector<96x48xbf16>
    %c0_23 = arith.constant 0 : index
    %c0_24 = arith.constant 0 : index
    %33 = vector.load %arg7[%c0_23, %c0_24] : memref<6x96xbf16, #tpu.memory_space<vmem>>, vector<6x96xbf16>
    %c1 = arith.constant 1 : index
    %c0_25 = arith.constant 0 : index
    %c0_26 = arith.constant 0 : index
    %34 = vector.load %arg9[%c1, %c0_25, %c0_26] : memref<3x48x128xbf16, #tpu.memory_space<vmem>>, vector<1x48x128xbf16>
    %35 = vector.shape_cast %34 : vector<1x48x128xbf16> to vector<48x128xbf16>
    %c1_27 = arith.constant 1 : index
    %c0_28 = arith.constant 0 : index
    %c0_29 = arith.constant 0 : index
    %36 = vector.load %arg10[%c1_27, %c0_28, %c0_29] : memref<3x1x128xf32, #tpu.memory_space<vmem>>, vector<1x1x128xf32>
    %37 = vector.shape_cast %36 : vector<1x1x128xf32> to vector<1x128xf32>
    %c1_30 = arith.constant 1 : index
    %c0_31 = arith.constant 0 : index
    %c0_32 = arith.constant 0 : index
    %38 = vector.load %arg11[%c1_30, %c0_31, %c0_32] : memref<3x128x128xbf16, #tpu.memory_space<vmem>>, vector<1x128x128xbf16>
    %39 = vector.shape_cast %38 : vector<1x128x128xbf16> to vector<128x128xbf16>
    %c1_33 = arith.constant 1 : index
    %c0_34 = arith.constant 0 : index
    %c0_35 = arith.constant 0 : index
    %40 = vector.load %arg12[%c1_33, %c0_34, %c0_35] : memref<3x1x128xf32, #tpu.memory_space<vmem>>, vector<1x1x128xf32>
    %41 = vector.shape_cast %40 : vector<1x1x128xf32> to vector<1x128xf32>
    %cst_36 = arith.constant dense<0.000000e+00> : vector<96x128xf32>
    %42 = tpu.matmul %32, %35, %cst_36 {dimension_numbers = #tpu.dot_dimension_numbers<[1], [0], [0], [1], [0, 0, 1, 1], [], []>} : vector<96x48xbf16>, vector<48x128xbf16>, vector<96x128xf32> -> vector<96x128xf32>
    %43 = vector.broadcast %37 : vector<1x128xf32> to vector<96x128xf32>
    %44 = arith.addf %42, %43 : vector<96x128xf32>
    %45 = arith.mulf %44, %44 : vector<96x128xf32>
    %46 = arith.mulf %44, %45 : vector<96x128xf32>
    %cst_37 = arith.constant 4.471500e-02 : f32
    %47 = vector.broadcast %cst_37 : f32 to vector<96x128xf32>
    %48 = arith.mulf %47, %46 : vector<96x128xf32>
    %49 = arith.addf %44, %48 : vector<96x128xf32>
    %cst_38 = arith.constant 0.797884583 : f32
    %50 = vector.broadcast %cst_38 : f32 to vector<96x128xf32>
    %51 = arith.mulf %50, %49 : vector<96x128xf32>
    %52 = math.tanh %51 : vector<96x128xf32>
    %cst_39 = arith.constant 1.000000e+00 : f32
    %53 = vector.broadcast %cst_39 : f32 to vector<96x128xf32>
    %54 = arith.addf %53, %52 : vector<96x128xf32>
    %cst_40 = arith.constant 5.000000e-01 : f32
    %55 = vector.broadcast %cst_40 : f32 to vector<96x128xf32>
    %56 = arith.mulf %55, %54 : vector<96x128xf32>
    %57 = arith.mulf %44, %56 : vector<96x128xf32>
    %58 = arith.truncf %57 : vector<96x128xf32> to vector<96x128xbf16>
    %cst_41 = arith.constant dense<0.000000e+00> : vector<6x128xf32>
    %59 = tpu.matmul %33, %58, %cst_41 {dimension_numbers = #tpu.dot_dimension_numbers<[1], [0], [0], [1], [0, 0, 1, 1], [], []>} : vector<6x96xbf16>, vector<96x128xbf16>, vector<6x128xf32> -> vector<6x128xf32>
    %60 = arith.truncf %59 : vector<6x128xf32> to vector<6x128xbf16>
    %cst_42 = arith.constant dense<0.000000e+00> : vector<6x128xf32>
    %61 = tpu.matmul %60, %39, %cst_42 {dimension_numbers = #tpu.dot_dimension_numbers<[1], [0], [0], [1], [0, 0, 1, 1], [], []>} : vector<6x128xbf16>, vector<128x128xbf16>, vector<6x128xf32> -> vector<6x128xf32>
    %62 = vector.broadcast %41 : vector<1x128xf32> to vector<6x128xf32>
    %63 = arith.addf %61, %62 : vector<6x128xf32>
    %c0_43 = arith.constant 0 : index
    %c0_44 = arith.constant 0 : index
    %64 = vector.load %arg4[%c0_43, %c0_44] : memref<96x48xbf16, #tpu.memory_space<vmem>>, vector<96x48xbf16>
    %c0_45 = arith.constant 0 : index
    %c0_46 = arith.constant 0 : index
    %65 = vector.load %arg7[%c0_45, %c0_46] : memref<6x96xbf16, #tpu.memory_space<vmem>>, vector<6x96xbf16>
    %c2 = arith.constant 2 : index
    %c0_47 = arith.constant 0 : index
    %c0_48 = arith.constant 0 : index
    %66 = vector.load %arg9[%c2, %c0_47, %c0_48] : memref<3x48x128xbf16, #tpu.memory_space<vmem>>, vector<1x48x128xbf16>
    %67 = vector.shape_cast %66 : vector<1x48x128xbf16> to vector<48x128xbf16>
    %c2_49 = arith.constant 2 : index
    %c0_50 = arith.constant 0 : index
    %c0_51 = arith.constant 0 : index
    %68 = vector.load %arg10[%c2_49, %c0_50, %c0_51] : memref<3x1x128xf32, #tpu.memory_space<vmem>>, vector<1x1x128xf32>
    %69 = vector.shape_cast %68 : vector<1x1x128xf32> to vector<1x128xf32>
    %c2_52 = arith.constant 2 : index
    %c0_53 = arith.constant 0 : index
    %c0_54 = arith.constant 0 : index
    %70 = vector.load %arg11[%c2_52, %c0_53, %c0_54] : memref<3x128x128xbf16, #tpu.memory_space<vmem>>, vector<1x128x128xbf16>
    %71 = vector.shape_cast %70 : vector<1x128x128xbf16> to vector<128x128xbf16>
    %c2_55 = arith.constant 2 : index
    %c0_56 = arith.constant 0 : index
    %c0_57 = arith.constant 0 : index
    %72 = vector.load %arg12[%c2_55, %c0_56, %c0_57] : memref<3x1x128xf32, #tpu.memory_space<vmem>>, vector<1x1x128xf32>
    %73 = vector.shape_cast %72 : vector<1x1x128xf32> to vector<1x128xf32>
    %cst_58 = arith.constant dense<0.000000e+00> : vector<96x128xf32>
    %74 = tpu.matmul %64, %67, %cst_58 {dimension_numbers = #tpu.dot_dimension_numbers<[1], [0], [0], [1], [0, 0, 1, 1], [], []>} : vector<96x48xbf16>, vector<48x128xbf16>, vector<96x128xf32> -> vector<96x128xf32>
    %75 = vector.broadcast %69 : vector<1x128xf32> to vector<96x128xf32>
    %76 = arith.addf %74, %75 : vector<96x128xf32>
    %77 = arith.mulf %76, %76 : vector<96x128xf32>
    %78 = arith.mulf %76, %77 : vector<96x128xf32>
    %cst_59 = arith.constant 4.471500e-02 : f32
    %79 = vector.broadcast %cst_59 : f32 to vector<96x128xf32>
    %80 = arith.mulf %79, %78 : vector<96x128xf32>
    %81 = arith.addf %76, %80 : vector<96x128xf32>
    %cst_60 = arith.constant 0.797884583 : f32
    %82 = vector.broadcast %cst_60 : f32 to vector<96x128xf32>
    %83 = arith.mulf %82, %81 : vector<96x128xf32>
    %84 = math.tanh %83 : vector<96x128xf32>
    %cst_61 = arith.constant 1.000000e+00 : f32
    %85 = vector.broadcast %cst_61 : f32 to vector<96x128xf32>
    %86 = arith.addf %85, %84 : vector<96x128xf32>
    %cst_62 = arith.constant 5.000000e-01 : f32
    %87 = vector.broadcast %cst_62 : f32 to vector<96x128xf32>
    %88 = arith.mulf %87, %86 : vector<96x128xf32>
    %89 = arith.mulf %76, %88 : vector<96x128xf32>
    %90 = arith.truncf %89 : vector<96x128xf32> to vector<96x128xbf16>
    %cst_63 = arith.constant dense<0.000000e+00> : vector<6x128xf32>
    %91 = tpu.matmul %65, %90, %cst_63 {dimension_numbers = #tpu.dot_dimension_numbers<[1], [0], [0], [1], [0, 0, 1, 1], [], []>} : vector<6x96xbf16>, vector<96x128xbf16>, vector<6x128xf32> -> vector<6x128xf32>
    %92 = arith.truncf %91 : vector<6x128xf32> to vector<6x128xbf16>
    %cst_64 = arith.constant dense<0.000000e+00> : vector<6x128xf32>
    %93 = tpu.matmul %92, %71, %cst_64 {dimension_numbers = #tpu.dot_dimension_numbers<[1], [0], [0], [1], [0, 0, 1, 1], [], []>} : vector<6x128xbf16>, vector<128x128xbf16>, vector<6x128xf32> -> vector<6x128xf32>
    %94 = vector.broadcast %73 : vector<1x128xf32> to vector<6x128xf32>
    %95 = arith.addf %93, %94 : vector<6x128xf32>
    %c0_65 = arith.constant 0 : index
    %c0_66 = arith.constant 0 : index
    %96 = vector.load %arg5[%c0_65, %c0_66] : memref<32x480xbf16, #tpu.memory_space<vmem>>, vector<32x480xbf16>
    %c0_67 = arith.constant 0 : index
    %c0_68 = arith.constant 0 : index
    %97 = vector.load %arg8[%c0_67, %c0_68] : memref<2x32xbf16, #tpu.memory_space<vmem>>, vector<2x32xbf16>
    %c0_69 = arith.constant 0 : index
    %c0_70 = arith.constant 0 : index
    %98 = vector.load %arg13[%c0_69, %c0_70] : memref<480x128xbf16, #tpu.memory_space<vmem>>, vector<480x128xbf16>
    %c0_71 = arith.constant 0 : index
    %c0_72 = arith.constant 0 : index
    %99 = vector.load %arg14[%c0_71, %c0_72] : memref<1x128xf32, #tpu.memory_space<vmem>>, vector<1x128xf32>
    %c0_73 = arith.constant 0 : index
    %c0_74 = arith.constant 0 : index
    %100 = vector.load %arg15[%c0_73, %c0_74] : memref<128x128xbf16, #tpu.memory_space<vmem>>, vector<128x128xbf16>
    %c0_75 = arith.constant 0 : index
    %c0_76 = arith.constant 0 : index
    %101 = vector.load %arg16[%c0_75, %c0_76] : memref<1x128xf32, #tpu.memory_space<vmem>>, vector<1x128xf32>
    %cst_77 = arith.constant dense<0.000000e+00> : vector<32x128xf32>
    %102 = tpu.matmul %96, %98, %cst_77 {dimension_numbers = #tpu.dot_dimension_numbers<[1], [0], [0], [1], [0, 0, 1, 1], [], []>} : vector<32x480xbf16>, vector<480x128xbf16>, vector<32x128xf32> -> vector<32x128xf32>
    %103 = vector.broadcast %99 : vector<1x128xf32> to vector<32x128xf32>
    %104 = arith.addf %102, %103 : vector<32x128xf32>
    %105 = arith.mulf %104, %104 : vector<32x128xf32>
    %106 = arith.mulf %104, %105 : vector<32x128xf32>
    %cst_78 = arith.constant 4.471500e-02 : f32
    %107 = vector.broadcast %cst_78 : f32 to vector<32x128xf32>
    %108 = arith.mulf %107, %106 : vector<32x128xf32>
    %109 = arith.addf %104, %108 : vector<32x128xf32>
    %cst_79 = arith.constant 0.797884583 : f32
    %110 = vector.broadcast %cst_79 : f32 to vector<32x128xf32>
    %111 = arith.mulf %110, %109 : vector<32x128xf32>
    %112 = math.tanh %111 : vector<32x128xf32>
    %cst_80 = arith.constant 1.000000e+00 : f32
    %113 = vector.broadcast %cst_80 : f32 to vector<32x128xf32>
    %114 = arith.addf %113, %112 : vector<32x128xf32>
    %cst_81 = arith.constant 5.000000e-01 : f32
    %115 = vector.broadcast %cst_81 : f32 to vector<32x128xf32>
    %116 = arith.mulf %115, %114 : vector<32x128xf32>
    %117 = arith.mulf %104, %116 : vector<32x128xf32>
    %118 = arith.truncf %117 : vector<32x128xf32> to vector<32x128xbf16>
    %cst_82 = arith.constant dense<0.000000e+00> : vector<2x128xf32>
    %119 = tpu.matmul %97, %118, %cst_82 {dimension_numbers = #tpu.dot_dimension_numbers<[1], [0], [0], [1], [0, 0, 1, 1], [], []>} : vector<2x32xbf16>, vector<32x128xbf16>, vector<2x128xf32> -> vector<2x128xf32>
    %120 = arith.truncf %119 : vector<2x128xf32> to vector<2x128xbf16>
    %cst_83 = arith.constant dense<0.000000e+00> : vector<2x128xf32>
    %121 = tpu.matmul %120, %100, %cst_83 {dimension_numbers = #tpu.dot_dimension_numbers<[1], [0], [0], [1], [0, 0, 1, 1], [], []>} : vector<2x128xbf16>, vector<128x128xbf16>, vector<2x128xf32> -> vector<2x128xf32>
    %122 = vector.broadcast %101 : vector<1x128xf32> to vector<2x128xf32>
    %123 = arith.addf %121, %122 : vector<2x128xf32>
    %124 = vector.extract_strided_slice %31 {offsets = [0, 0], sizes = [2, 128], strides = [1, 1]} : vector<8x128xf32> to vector<2x128xf32>
    %125 = vector.extract_strided_slice %31 {offsets = [2, 0], sizes = [2, 128], strides = [1, 1]} : vector<8x128xf32> to vector<2x128xf32>
    %126 = vector.extract_strided_slice %31 {offsets = [4, 0], sizes = [2, 128], strides = [1, 1]} : vector<8x128xf32> to vector<2x128xf32>
    %127 = vector.extract_strided_slice %31 {offsets = [6, 0], sizes = [2, 128], strides = [1, 1]} : vector<8x128xf32> to vector<2x128xf32>
    %128 = vector.extract_strided_slice %63 {offsets = [0, 0], sizes = [2, 128], strides = [1, 1]} : vector<6x128xf32> to vector<2x128xf32>
    %129 = vector.extract_strided_slice %63 {offsets = [2, 0], sizes = [2, 128], strides = [1, 1]} : vector<6x128xf32> to vector<2x128xf32>
    %130 = vector.extract_strided_slice %63 {offsets = [4, 0], sizes = [2, 128], strides = [1, 1]} : vector<6x128xf32> to vector<2x128xf32>
    %131 = vector.extract_strided_slice %95 {offsets = [0, 0], sizes = [2, 128], strides = [1, 1]} : vector<6x128xf32> to vector<2x128xf32>
    %132 = vector.extract_strided_slice %95 {offsets = [2, 0], sizes = [2, 128], strides = [1, 1]} : vector<6x128xf32> to vector<2x128xf32>
    %133 = vector.extract_strided_slice %95 {offsets = [4, 0], sizes = [2, 128], strides = [1, 1]} : vector<6x128xf32> to vector<2x128xf32>
    %134 = tpu.concatenate %124, %125 in 1 : vector<2x128xf32>, vector<2x128xf32> -> vector<2x256xf32>
    %135 = arith.truncf %134 : vector<2x256xf32> to vector<2x256xbf16>
    %c0_84 = arith.constant 0 : index
    %c0_85 = arith.constant 0 : index
    %136 = vector.load %arg17[%c0_84, %c0_85] : memref<256x128xbf16, #tpu.memory_space<vmem>>, vector<256x128xbf16>
    %cst_86 = arith.constant dense<0.000000e+00> : vector<2x128xf32>
    %137 = tpu.matmul %135, %136, %cst_86 {dimension_numbers = #tpu.dot_dimension_numbers<[1], [0], [0], [1], [0, 0, 1, 1], [], []>} : vector<2x256xbf16>, vector<256x128xbf16>, vector<2x128xf32> -> vector<2x128xf32>
    %c0_87 = arith.constant 0 : index
    %c0_88 = arith.constant 0 : index
    %c0_89 = arith.constant 0 : index
    %138 = vector.load %arg20[%c0_87, %c0_88, %c0_89] : memref<3x1x128xf32, #tpu.memory_space<vmem>>, vector<1x1x128xf32>
    %139 = vector.shape_cast %138 : vector<1x1x128xf32> to vector<1x128xf32>
    %140 = vector.broadcast %139 : vector<1x128xf32> to vector<2x128xf32>
    %141 = arith.addf %137, %140 : vector<2x128xf32>
    %cst_90 = arith.constant 0.000000e+00 : f32
    %142 = vector.broadcast %cst_90 : f32 to vector<2x128xf32>
    %143 = arith.maximumf %141, %142 : vector<2x128xf32>
    %144 = tpu.concatenate %126, %127 in 1 : vector<2x128xf32>, vector<2x128xf32> -> vector<2x256xf32>
    %145 = arith.truncf %144 : vector<2x256xf32> to vector<2x256xbf16>
    %c0_91 = arith.constant 0 : index
    %c0_92 = arith.constant 0 : index
    %146 = vector.load %arg18[%c0_91, %c0_92] : memref<256x128xbf16, #tpu.memory_space<vmem>>, vector<256x128xbf16>
    %cst_93 = arith.constant dense<0.000000e+00> : vector<2x128xf32>
    %147 = tpu.matmul %145, %146, %cst_93 {dimension_numbers = #tpu.dot_dimension_numbers<[1], [0], [0], [1], [0, 0, 1, 1], [], []>} : vector<2x256xbf16>, vector<256x128xbf16>, vector<2x128xf32> -> vector<2x128xf32>
    %c1_94 = arith.constant 1 : index
    %c0_95 = arith.constant 0 : index
    %c0_96 = arith.constant 0 : index
    %148 = vector.load %arg20[%c1_94, %c0_95, %c0_96] : memref<3x1x128xf32, #tpu.memory_space<vmem>>, vector<1x1x128xf32>
    %149 = vector.shape_cast %148 : vector<1x1x128xf32> to vector<1x128xf32>
    %150 = vector.broadcast %149 : vector<1x128xf32> to vector<2x128xf32>
    %151 = arith.addf %147, %150 : vector<2x128xf32>
    %cst_97 = arith.constant 0.000000e+00 : f32
    %152 = vector.broadcast %cst_97 : f32 to vector<2x128xf32>
    %153 = arith.maximumf %151, %152 : vector<2x128xf32>
    %154 = tpu.concatenate %128, %129, %130 in 1 : vector<2x128xf32>, vector<2x128xf32>, vector<2x128xf32> -> vector<2x384xf32>
    %155 = arith.truncf %154 : vector<2x384xf32> to vector<2x384xbf16>
    %c0_98 = arith.constant 0 : index
    %c0_99 = arith.constant 0 : index
    %156 = vector.load %arg19[%c0_98, %c0_99] : memref<384x128xbf16, #tpu.memory_space<vmem>>, vector<384x128xbf16>
    %cst_100 = arith.constant dense<0.000000e+00> : vector<2x128xf32>
    %157 = tpu.matmul %155, %156, %cst_100 {dimension_numbers = #tpu.dot_dimension_numbers<[1], [0], [0], [1], [0, 0, 1, 1], [], []>} : vector<2x384xbf16>, vector<384x128xbf16>, vector<2x128xf32> -> vector<2x128xf32>
    %c2_101 = arith.constant 2 : index
    %c0_102 = arith.constant 0 : index
    %c0_103 = arith.constant 0 : index
    %158 = vector.load %arg20[%c2_101, %c0_102, %c0_103] : memref<3x1x128xf32, #tpu.memory_space<vmem>>, vector<1x1x128xf32>
    %159 = vector.shape_cast %158 : vector<1x1x128xf32> to vector<1x128xf32>
    %160 = vector.broadcast %159 : vector<1x128xf32> to vector<2x128xf32>
    %161 = arith.addf %157, %160 : vector<2x128xf32>
    %cst_104 = arith.constant 0.000000e+00 : f32
    %162 = vector.broadcast %cst_104 : f32 to vector<2x128xf32>
    %163 = arith.maximumf %161, %162 : vector<2x128xf32>
    %c0_105 = arith.constant 0 : index
    %164 = memref.load %arg0[%c0_105] : memref<1xi32, #tpu.memory_space<smem>>
    %165 = tpu.iota {dimensions = array<i32: 0>} : vector<8x128xi32>
    %166 = vector.broadcast %164 : i32 to vector<8x128xi32>
    %167 = arith.cmpi eq, %165, %166 : vector<8x128xi32>
    %c0_106 = arith.constant 0 : index
    %c0_107 = arith.constant 0 : index
    %168 = vector.load %arg1[%c0_106, %c0_107] : memref<8x128xf32, #tpu.memory_space<vmem>>, vector<8x128xf32>
    %cst_108 = arith.constant 0.000000e+00 : f32
    %169 = vector.broadcast %cst_108 : f32 to vector<8x128xf32>
    %170 = arith.select %167, %168, %169 : vector<8x128xi1>, vector<8x128xf32>
    %cst_109 = arith.constant dense<0.000000e+00> : vector<128xf32>
    %171 = vector.multi_reduction <add>, %170, %cst_109 [0] : vector<8x128xf32> to vector<128xf32>
    %172 = vector.shape_cast %171 : vector<128xf32> to vector<1x128xf32>
    %173 = vector.shape_cast %172 : vector<1x128xf32> to vector<1x128xf32>
    %174 = vector.broadcast %173 : vector<1x128xf32> to vector<2x128xf32>
    %175 = tpu.concatenate %123, %174 in 1 : vector<2x128xf32>, vector<2x128xf32> -> vector<2x256xf32>
    %176 = arith.truncf %175 : vector<2x256xf32> to vector<2x256xbf16>
    %c0_110 = arith.constant 0 : index
    %c0_111 = arith.constant 0 : index
    %177 = vector.load %arg22[%c0_110, %c0_111] : memref<256x640xbf16, #tpu.memory_space<vmem>>, vector<256x640xbf16>
    %cst_112 = arith.constant dense<0.000000e+00> : vector<2x640xf32>
    %178 = tpu.matmul %176, %177, %cst_112 {dimension_numbers = #tpu.dot_dimension_numbers<[1], [0], [0], [1], [0, 0, 1, 1], [], []>} : vector<2x256xbf16>, vector<256x640xbf16>, vector<2x640xf32> -> vector<2x640xf32>
    %179 = tpu.concatenate %163, %132 in 1 : vector<2x128xf32>, vector<2x128xf32> -> vector<2x256xf32>
    %180 = arith.truncf %179 : vector<2x256xf32> to vector<2x256xbf16>
    %c0_113 = arith.constant 0 : index
    %c0_114 = arith.constant 0 : index
    %c0_115 = arith.constant 0 : index
    %181 = vector.load %arg21[%c0_113, %c0_114, %c0_115] : memref<5x256x128xbf16, #tpu.memory_space<vmem>>, vector<1x256x128xbf16>
    %182 = vector.shape_cast %181 : vector<1x256x128xbf16> to vector<256x128xbf16>
    %cst_116 = arith.constant dense<0.000000e+00> : vector<2x128xf32>
    %183 = tpu.matmul %180, %182, %cst_116 {dimension_numbers = #tpu.dot_dimension_numbers<[1], [0], [0], [1], [0, 0, 1, 1], [], []>} : vector<2x256xbf16>, vector<256x128xbf16>, vector<2x128xf32> -> vector<2x128xf32>
    %184 = tpu.concatenate %143, %131 in 1 : vector<2x128xf32>, vector<2x128xf32> -> vector<2x256xf32>
    %185 = arith.truncf %184 : vector<2x256xf32> to vector<2x256xbf16>
    %c1_117 = arith.constant 1 : index
    %c0_118 = arith.constant 0 : index
    %c0_119 = arith.constant 0 : index
    %186 = vector.load %arg21[%c1_117, %c0_118, %c0_119] : memref<5x256x128xbf16, #tpu.memory_space<vmem>>, vector<1x256x128xbf16>
    %187 = vector.shape_cast %186 : vector<1x256x128xbf16> to vector<256x128xbf16>
    %cst_120 = arith.constant dense<0.000000e+00> : vector<2x128xf32>
    %188 = tpu.matmul %185, %187, %cst_120 {dimension_numbers = #tpu.dot_dimension_numbers<[1], [0], [0], [1], [0, 0, 1, 1], [], []>} : vector<2x256xbf16>, vector<256x128xbf16>, vector<2x128xf32> -> vector<2x128xf32>
    %189 = tpu.concatenate %153, %133 in 1 : vector<2x128xf32>, vector<2x128xf32> -> vector<2x256xf32>
    %190 = arith.truncf %189 : vector<2x256xf32> to vector<2x256xbf16>
    %c2_121 = arith.constant 2 : index
    %c0_122 = arith.constant 0 : index
    %c0_123 = arith.constant 0 : index
    %191 = vector.load %arg21[%c2_121, %c0_122, %c0_123] : memref<5x256x128xbf16, #tpu.memory_space<vmem>>, vector<1x256x128xbf16>
    %192 = vector.shape_cast %191 : vector<1x256x128xbf16> to vector<256x128xbf16>
    %cst_124 = arith.constant dense<0.000000e+00> : vector<2x128xf32>
    %193 = tpu.matmul %190, %192, %cst_124 {dimension_numbers = #tpu.dot_dimension_numbers<[1], [0], [0], [1], [0, 0, 1, 1], [], []>} : vector<2x256xbf16>, vector<256x128xbf16>, vector<2x128xf32> -> vector<2x128xf32>
    %194 = tpu.concatenate %131, %143 in 1 : vector<2x128xf32>, vector<2x128xf32> -> vector<2x256xf32>
    %195 = arith.truncf %194 : vector<2x256xf32> to vector<2x256xbf16>
    %c3 = arith.constant 3 : index
    %c0_125 = arith.constant 0 : index
    %c0_126 = arith.constant 0 : index
    %196 = vector.load %arg21[%c3, %c0_125, %c0_126] : memref<5x256x128xbf16, #tpu.memory_space<vmem>>, vector<1x256x128xbf16>
    %197 = vector.shape_cast %196 : vector<1x256x128xbf16> to vector<256x128xbf16>
    %cst_127 = arith.constant dense<0.000000e+00> : vector<2x128xf32>
    %198 = tpu.matmul %195, %197, %cst_127 {dimension_numbers = #tpu.dot_dimension_numbers<[1], [0], [0], [1], [0, 0, 1, 1], [], []>} : vector<2x256xbf16>, vector<256x128xbf16>, vector<2x128xf32> -> vector<2x128xf32>
    %199 = tpu.concatenate %133, %153 in 1 : vector<2x128xf32>, vector<2x128xf32> -> vector<2x256xf32>
    %200 = arith.truncf %199 : vector<2x256xf32> to vector<2x256xbf16>
    %c4 = arith.constant 4 : index
    %c0_128 = arith.constant 0 : index
    %c0_129 = arith.constant 0 : index
    %201 = vector.load %arg21[%c4, %c0_128, %c0_129] : memref<5x256x128xbf16, #tpu.memory_space<vmem>>, vector<1x256x128xbf16>
    %202 = vector.shape_cast %201 : vector<1x256x128xbf16> to vector<256x128xbf16>
    %cst_130 = arith.constant dense<0.000000e+00> : vector<2x128xf32>
    %203 = tpu.matmul %200, %202, %cst_130 {dimension_numbers = #tpu.dot_dimension_numbers<[1], [0], [0], [1], [0, 0, 1, 1], [], []>} : vector<2x256xbf16>, vector<256x128xbf16>, vector<2x128xf32> -> vector<2x128xf32>
    %204 = tpu.concatenate %183, %188, %193, %198, %203 in 1 : vector<2x128xf32>, vector<2x128xf32>, vector<2x128xf32>, vector<2x128xf32>, vector<2x128xf32> -> vector<2x640xf32>
    %205 = arith.addf %204, %178 : vector<2x640xf32>
    %c0_131 = arith.constant 0 : index
    %c0_132 = arith.constant 0 : index
    %206 = vector.load %arg23[%c0_131, %c0_132] : memref<1x640xf32, #tpu.memory_space<vmem>>, vector<1x640xf32>
    %207 = vector.broadcast %206 : vector<1x640xf32> to vector<2x640xf32>
    %208 = arith.addf %205, %207 : vector<2x640xf32>
    %cst_133 = arith.constant 0.000000e+00 : f32
    %209 = vector.broadcast %cst_133 : f32 to vector<2x640xf32>
    %210 = arith.maximumf %208, %209 : vector<2x640xf32>
    %211 = arith.truncf %210 : vector<2x640xf32> to vector<2x640xbf16>
    %c0_134 = arith.constant 0 : index
    %c0_135 = arith.constant 0 : index
    %212 = vector.load %arg24[%c0_134, %c0_135] : memref<640x128xbf16, #tpu.memory_space<vmem>>, vector<640x128xbf16>
    %cst_136 = arith.constant dense<0.000000e+00> : vector<2x128xf32>
    %213 = tpu.matmul %211, %212, %cst_136 {dimension_numbers = #tpu.dot_dimension_numbers<[1], [0], [0], [1], [0, 0, 1, 1], [], []>} : vector<2x640xbf16>, vector<640x128xbf16>, vector<2x128xf32> -> vector<2x128xf32>
    %c0_137 = arith.constant 0 : index
    %c0_138 = arith.constant 0 : index
    %214 = vector.load %arg25[%c0_137, %c0_138] : memref<1x128xf32, #tpu.memory_space<vmem>>, vector<1x128xf32>
    %215 = vector.broadcast %214 : vector<1x128xf32> to vector<2x128xf32>
    %216 = arith.addf %213, %215 : vector<2x128xf32>
    %c0_139 = arith.constant 0 : index
    %c0_140 = arith.constant 0 : index
    %217 = vector.load %arg26[%c0_139, %c0_140] : memref<2x128xf32, #tpu.memory_space<vmem>>, vector<2x128xf32>
    tpu.vector_store %arg26[%c0_139, %c0_140], %216 {strides = array<i32>} : memref<2x128xf32, #tpu.memory_space<vmem>>, vector<2x128xf32>,
    return
  }
}

</mosaic_0001>

<bundles_post_ra>
// kernel: custom_rain_forward.1
= control target key start
LH: loop header
LB: loop body
LE: loop exit
PB: predicated region body
PF: predicated region fallthrough
CT: control target
= control target key end

     0   :  { %s8229_s0 = inlined_call_operand.<no memory space> [shape: s32[1], index: 0, kind: input, shape index: {}]   ;;  %s8230_s1 = inlined_call_operand.vmem [shape: f32[8,128], index: 1, kind: input, shape index: {}]   ;;  %s8231_s2 = inlined_call_operand.vmem [shape: bf16[128,48], index: 2, kind: input, shape index: {}]   ;;  %s8232_s3 = inlined_call_operand.vmem [shape: bf16[96,48], index: 3, kind: input, shape index: {}]   ;;  %s8233_s4 = inlined_call_operand.vmem [shape: bf16[96,48], index: 4, kind: input, shape index: {}]   ;;  %s8234_s5 = inlined_call_operand.vmem [shape: bf16[32,480], index: 5, kind: input, shape index: {}]   ;;  %s8235_s6 = inlined_call_operand.vmem [shape: bf16[8,128], index: 6, kind: input, shape index: {}]   ;;  %s8236_s7 = inlined_call_operand.vmem [shape: bf16[6,96], index: 7, kind: input, shape index: {}]   ;;  %s8237_s8 = inlined_call_operand.vmem [shape: bf16[2,32], index: 8, kind: input, shape index: {}]   ;;  %s8238_s9 = inlined_call_operand.vmem [shape: bf16[3,48,128], index: 9, kind: input, shape index: {}]   ;;  %s8239_s10 = inlined_call_operand.vmem [shape: f32[3,1,128], index: 10, kind: input, shape index: {}]   ;;  %s8240_s11 = inlined_call_operand.vmem [shape: bf16[3,128,128], index: 11, kind: input, shape index: {}]   ;;  %s8241_s12 = inlined_call_operand.vmem [shape: f32[3,1,128], index: 12, kind: input, shape index: {}]   ;;  %s8242_s13 = inlined_call_operand.vmem [shape: bf16[480,128], index: 13, kind: input, shape index: {}]   ;;  %s8243_s14 = inlined_call_operand.vmem [shape: f32[1,128], index: 14, kind: input, shape index: {}]   ;;  %s8244_s15 = inlined_call_operand.vmem [shape: bf16[128,128], index: 15, kind: input, shape index: {}]   ;;  %s8245_s16 = inlined_call_operand.vmem [shape: f32[1,128], index: 16, kind: input, shape index: {}]   ;;  %s8246_s17 = inlined_call_operand.vmem [shape: bf16[256,128], index: 17, kind: input, shape index: {}]   ;;  %s8247_s18 = inlined_call_operand.vmem [shape: bf16[256,128], index: 18, kind: input, shape index: {}]   ;;  %s8248_s19 = inlined_call_operand.vmem [shape: bf16[384,128], index: 19, kind: input, shape index: {}]   ;;  %s8249_s20 = inlined_call_operand.vmem [shape: f32[3,1,128], index: 20, kind: input, shape index: {}]   ;;  %s8250_s21 = inlined_call_operand.vmem [shape: bf16[5,256,128], index: 21, kind: input, shape index: {}]   ;;  %s8251_s22 = inlined_call_operand.vmem [shape: bf16[256,640], index: 22, kind: input, shape index: {}]   ;;  %s8252_s23 = inlined_call_operand.vmem [shape: f32[1,640], index: 23, kind: input, shape index: {}]   ;;  %s8253_s24 = inlined_call_operand.vmem [shape: bf16[640,128], index: 24, kind: input, shape index: {}]   ;;  %s8254_s25 = inlined_call_operand.vmem [shape: f32[1,128], index: 25, kind: input, shape index: {}]   ;;  %s8255_s26 = inlined_call_operand.hbm [shape: f32[2,128], index: 26, kind: output, shape index: {}]  }
   0x1   :  { %8262 = sst [smem:[#allocation6_spill]] %s8229_s0 }
   0x2   :  { %8263 = sst [smem:[#allocation7_spill]] %s8230_s1 }
   0x3   :  { %8264 = sst [smem:[#allocation8_spill]] %s8231_s2 }
   0x4   :  { %8265 = sst [smem:[#allocation9_spill]] %s8232_s3 }
   0x5   :  { %8266 = sst [smem:[#allocation10_spill]] %s8233_s4 }
   0x6   :  { %8267 = sst [smem:[#allocation11_spill]] %s8234_s5 }
   0x7   :  { %8268 = sst [smem:[#allocation12_spill]] %s8235_s6 }
   0x8   :  { %8269 = sst [smem:[#allocation13_spill]] %s8236_s7 }
   0x9   :  { %8270 = sst [smem:[#allocation14_spill]] %s8237_s8 }
   0xa   :  { %8271 = sst [smem:[#allocation15_spill]] %s8238_s9 }
   0xb   :  { %8272 = sst [smem:[#allocation16_spill]] %s8239_s10 }
   0xc   :  { %s8273_s7 = sld [smem:[#allocation15_spill]]  ;;  %vm191_vm0 = vcmask 392192   ;;  %v6449_v11 = vmov 0.0   ;;  %vm6450_vm1 = vmmov 0   ;;  %v5968_v12 = vld [vmem:[%s8240_s11 + $0x38] sm:$0xff]   ;;  %v5969_v14 = vld [vmem:[%s8240_s11 + $0x30] sm:$0xff]  }
   0xd   :  { %s8274_s0 = sld [smem:[#allocation8_spill]]  ;;  %5748 = vmatprep.subr.bf16.mxu0 %v6449_v11  ;;  %5764 = vmatprep.mubr.msk.bf16.mxu0 %vm6450_vm1, %v6449_v11  ;;  %v5970_v16 = vld [vmem:[%s8240_s11 + $0x28] sm:$0xff]   ;;  %v5971_v19 = vld [vmem:[%s8240_s11 + $0x20] sm:$0xff]   ;;  %v5972_v22 = vld [vmem:[%s8240_s11 + $0x18] sm:$0xff]  }
   0xe   :  { %5749 = vmatpush3.bf16.msra.mxu0 %v5968_v12  ;;  %v5973_v26 = vld [vmem:[%s8240_s11 + $0x10] sm:$0xff]   ;;  %s8275_s5 = sld [smem:[#allocation16_spill]]  ;;  %v5974_v30 = vld [vmem:[%s8240_s11 + $0x8] sm:$0xff]  }
   0xf   :  { %5750 = vmatprep.subr.bf16.mxu0 %v6449_v11 }
  0x12   :  { %v5948_v0 = vld [vmem:[%s8273_s7 + $0x10] sm:$0xff]   ;;  %v5949_v1 = vld [vmem:[%s8273_s7 + $0x8] sm:$0xff]   ;;  %v5950_v3 = vld [vmem:[%s8273_s7] sm:$0xff]   ;;  %5751 = vmatpush3.bf16.msra.mxu0 %v5969_v14 }
  0x13   :  { %5706 = vmatprep.subr.bf16.mxu1 %v5948_v0  ;;  %v5951_v2 = vld [vmem:[%s8274_s0] sm:$0xff]   ;;  %v5952_v4 = vld [vmem:[%s8274_s0 + $0x8] sm:$0xff]   ;;  %v5953_v5 = vld [vmem:[%s8274_s0 + $0x10] sm:$0xff]   ;;  %5752 = vmatprep.subr.bf16.mxu0 %v6449_v11 }
  0x14   :  { %5707 = vmatpush3.bf16.msra.mxu1 %v5948_v0  ;;  %5712 = vmatprep.mubr.msk.bf16.mxu1 %vm191_vm0, %v5951_v2  ;;  %v5954_v6 = vld [vmem:[%s8274_s0 + $0x18] sm:$0xff]   ;;  %v5955_v7 = vld [vmem:[%s8274_s0 + $0x20] sm:$0xff]   ;;  %v5956_v8 = vld [vmem:[%s8274_s0 + $0x28] sm:$0xff]  }
  0x15   :  { %5708 = vmatprep.subr.bf16.mxu1 %v5949_v1  ;;  %v5957_v9 = vld [vmem:[%s8274_s0 + $0x30] sm:$0xff]   ;;  %v5958_v10 = vld [vmem:[%s8274_s0 + $0x38] sm:$0xff]   ;;  %v6667_v28 = vld [vmem:[%s8275_s5] ss:$0 sm:$0xff] }
  0x16   :  { %5753 = vmatpush3.bf16.msra.mxu0 %v5970_v16 }
  0x17   :  { %5754 = vmatprep.subr.bf16.mxu0 %v6449_v11 }
  0x18   :  { %5709 = vmatpush3.bf16.msra.mxu1 %v5949_v1 }
  0x19   :  { %5710 = vmatprep.subr.bf16.mxu1 %v5950_v3 }
  0x1a   :  { %5755 = vmatpush3.bf16.msra.mxu0 %v5971_v19 }
  0x1b   :  { %5756 = vmatprep.subr.bf16.mxu0 %v6449_v11 }
  0x1c   :  { %5711 = vmatpush3.bf16.msra.mxu1 %v5950_v3 }
  0x1d   :  { %5728 = vmatprep.subr.bf16.mxu1 %v6449_v11 }
  0x1e   :  { %5757 = vmatpush3.bf16.msra.mxu0 %v5972_v22 }
  0x1f   :  { %5713 = vmatmul.mubr.msk.bf16.vlgmr.msra.gmra.mxu1 %vm191_vm0, %v5952_v4  ;;  %5758 = vmatprep.subr.bf16.mxu0 %v6449_v11 }
  0x20   :  { %5716 = vmatprep.mubr.msk.bf16.mxu1 %vm191_vm0, %v5953_v5 }
  0x22   :  { %5759 = vmatpush3.bf16.msra.mxu0 %v5973_v26 }
  0x23   :  { %5760 = vmatprep.subr.bf16.mxu0 %v6449_v11 }
  0x27   :  { %5717 = vmatmul.mubr.msk.bf16.gmra.mxu1 %vm191_vm0, %v5954_v6 }
  0x28   :  { %5720 = vmatprep.mubr.msk.bf16.mxu1 %vm191_vm0, %v5955_v7 }
  0x2f   :  { %5721 = vmatmul.mubr.msk.bf16.gmra.mxu1 %vm191_vm0, %v5956_v8 }
  0x30   :  { %5724 = vmatprep.mubr.msk.bf16.mxu1 %vm191_vm0, %v5957_v9 }
  0x37   :  { %5725 = vmatmul.mubr.msk.bf16.gmra.mxu1 %vm191_vm0, %v5958_v10 }
  0x38   :  { %5744 = vmatprep.mubr.msk.bf16.mxu1 %vm6450_vm1, %v6449_v11 }
  0xdf   :  { %v5714_v13 = vpop.f32.mrf.mxu1 }
  0xe1   :  { %v6642_v15 = vpop.f32.mrf.mxu1 }
  0xe3   :  { %v6647_v17 = vpop.f32.mrf.mxu1 }
  0xe5   :  { %v6650_v18 = vpop.f32.mrf.mxu1 }
  0xe7   :  { %v5718_v20 = vpop.f32.mrf.mxu1 }
  0xe9   :  { %v266_v21 = vpop.f32.mrf.mxu1 }
  0xeb   :  { %v5719_v23 = vpop.f32.mrf.mxu1 }
  0xed   :  { %v269_v24 = vpop.f32.mrf.mxu1 }
  0xef   :  { %v5722_v25 = vpop.f32.mrf.mxu1 }
  0xf1   :  { %v282_v27 = vpop.f32.mrf.mxu1 }
  0xf3   :  { %v5723_v29 = vpop.f32.mrf.mxu1 }
  0xf4   :  { %v6673_v31 = vadd.f32 %v5723_v29, %v6667_v28 }
  0xf5   :  { %32 = vsyncpa [#allocation4], 0  ;;  %v6677_v32 = vadd.f32 %v5722_v25, %v6667_v28  ;;  %v285_v33 = vpop.f32.mrf.mxu1  ;;  %5761 = vmatpush3.bf16.msra.mxu0 %v5974_v30  ;;  %v6688_v38 = vadd.f32 %v6667_v28, %v282_v27  ;;  %v6694_v41 = vadd.f32 %v5718_v20, %v6667_v28  ;;  %v6703_v46 = vadd.f32 %v5719_v23, %v6667_v28  ;;  %s8276_s28 = sld [smem:[#allocation12_spill]] }
  0xf6   :  { %v324_v34 = vmul.f32 %v6673_v31, %v6673_v31  ;;  %v6682_v36 = vadd.f32 %v6667_v28, %v285_v33  ;;  %5762 = vmatprep.subr.bf16.mxu0 %v6449_v11  ;;  %v6714_v52 = vadd.f32 %v5714_v13, %v6667_v28  ;;  %v6719_v54 = vadd.f32 %v6667_v28, %v269_v24  ;;  %s8277_s29 = sld [smem:[#allocation9_spill]] }
  0xf7   :  { %v5726_v35 = vpop.f32.mrf.mxu1  ;;  %v323_v37 = vmul.f32 %v6677_v32, %v6677_v32  ;;  %v321_v49 = vmul.f32 %v6688_v38, %v6688_v38  ;;  %v319_v53 = vmul.f32 %v6694_v41, %v6694_v41  ;;  %v6723_v59 = vadd.f32 %v6667_v28, %v266_v21  ;;  %s8278_s1 = sld [smem:[#allocation13_spill]] }
  0xf8   :  { %v6691_v39 = vadd.f32 %v5726_v35, %v6667_v28  ;;  %v340_v42 = vmul.f32 %v324_v34, %v6673_v31  ;;  %v322_v47 = vmul.f32 %v6682_v36, %v6682_v36  ;;  %v320_v60 = vmul.f32 %v6703_v46, %v6703_v46  ;;  %s8280_s27 = sld [smem:[#allocation11_spill]] }
  0xf9   :  { %v298_v40 = vpop.f32.mrf.mxu1  ;;  %v339_v48 = vmul.f32 %v323_v37, %v6677_v32  ;;  %v337_v0 = vmul.f32 %v321_v49, %v6688_v38  ;;  %v315_v3 = vmul.f32 %v6714_v52, %v6714_v52  ;;  %v6737_v4 = vadd.f32 %v6647_v17, %v6667_v28  ;;  %s8282_s3 = sld [smem:[#allocation6_spill]] }
  0xfa   :  { %v327_v43 = vmul.f32 %v6691_v39, %v6691_v39  ;;  %v6700_v44 = vadd.f32 %v6667_v28, %v298_v40  ;;  %v356_v55 = vmul.f32 0.044715, %v340_v42  ;;  %v338_v61 = vmul.f32 %v322_v47, %v6682_v36 }
  0xfb   :  { %v5727_v45 = vpop.f32.mrf.mxu1  ;;  %v355_v63 = vmul.f32 0.044715, %v339_v48  ;;  %v318_v7 = vmul.f32 %v6719_v54, %v6719_v54  ;;  %v336_v12 = vmul.f32 %v320_v60, %v6703_v46  ;;  %v335_v17 = vmul.f32 %v319_v53, %v6694_v41 }
  0xfc   :  { %v343_v50 = vmul.f32 %v327_v43, %v6691_v39  ;;  %v325_v51 = vmul.f32 %v6700_v44, %v6700_v44  ;;  %v6729_v62 = vadd.f32 %v5727_v45, %v6667_v28  ;;  %v372_v8 = vadd.f32 %v356_v55, %v6673_v31 }
  0xfd   :  { %v301_v58 = vpop.f32.mrf.mxu1  ;;  %v354_v13 = vmul.f32 0.044715, %v338_v61  ;;  %v317_v19 = vmul.f32 %v6723_v59, %v6723_v59  ;;  %v371_v20 = vadd.f32 %v355_v63, %v6677_v32  ;;  %v353_v21 = vmul.f32 0.044715, %v337_v0 }
  0xfe   :  { %v359_v56 = vmul.f32 0.044715, %v343_v50  ;;  %v341_v57 = vmul.f32 %v325_v51, %v6700_v44  ;;  %v328_v5 = vmul.f32 %v6729_v62, %v6729_v62  ;;  %v6742_v6 = vadd.f32 %v6667_v28, %v301_v58 }
  0xff   :  { %v316_v25 = vmul.f32 %v6737_v4, %v6737_v4  ;;  %v6761_v26 = vadd.f32 %v6667_v28, %v6650_v18  ;;  %v334_v27 = vmul.f32 %v318_v7, %v6719_v54  ;;  %v388_v29 = vmul.f32 0.7978846, %v372_v8 }
 0x100   :  { %v375_v1 = vadd.f32 %v359_v56, %v6691_v39  ;;  %v357_v2 = vmul.f32 0.044715, %v341_v57  ;;  %v344_v14 = vmul.f32 %v328_v5, %v6729_v62  ;;  %v326_v16 = vmul.f32 %v6742_v6, %v6742_v6 }
 0x101   :  { %v352_v30 = vmul.f32 0.044715, %v336_v12  ;;  %v370_v33 = vadd.f32 %v354_v13, %v6682_v36  ;;  %v6768_v37 = vadd.f32 %v6667_v28, %v6642_v15  ;;  %v351_v40 = vmul.f32 0.044715, %v335_v17 }
 0x102   :  { %v391_v9 = vmul.f32 0.7978846, %v375_v1  ;;  %v373_v10 = vadd.f32 %v357_v2, %v6700_v44  ;;  %v360_v23 = vmul.f32 0.044715, %v344_v14  ;;  %v342_v24 = vmul.f32 %v326_v16, %v6742_v6 }
 0x103   :  { %v333_v42 = vmul.f32 %v317_v19, %v6723_v59  ;;  %v387_v43 = vmul.f32 0.7978846, %v371_v20  ;;  %v369_v18 = vadd.f32 %v353_v21, %v6688_v38  ;;  %v332_v48 = vmul.f32 %v316_v25, %v6737_v4 }
 0x104   :  { %6339 = vtanh.f32 %v391_v9  ;;  %v389_v22 = vmul.f32 0.7978846, %v373_v10  ;;  %v376_v34 = vadd.f32 %v360_v23, %v6729_v62  ;;  %v358_v35 = vmul.f32 0.044715, %v342_v24 }
 0x105   :  { %v314_v49 = vmul.f32 %v6761_v26, %v6761_v26  ;;  %v368_v50 = vadd.f32 %v352_v30, %v6703_v46  ;;  %v350_v15 = vmul.f32 0.044715, %v334_v27  ;;  %v386_v28 = vmul.f32 0.7978846, %v370_v33 }
 0x106   :  { %6341 = vtanh.f32 %v389_v22  ;;  %v392_v45 = vmul.f32 0.7978846, %v376_v34  ;;  %v374_v47 = vadd.f32 %v358_v35, %v6742_v6  ;;  %v331_v51 = vmul.f32 %v315_v3, %v6714_v52 }
 0x107   :  { %6343 = vtanh.f32 %v388_v29  ;;  %v313_v53 = vmul.f32 %v6768_v37, %v6768_v37  ;;  %v367_v56 = vadd.f32 %v351_v40, %v6694_v41  ;;  %v349_v57 = vmul.f32 0.044715, %v333_v42 }
 0x108   :  { %6345 = vtanh.f32 %v392_v45  ;;  %v390_v55 = vmul.f32 0.7978846, %v374_v47  ;;  %v385_v58 = vmul.f32 0.7978846, %v369_v18  ;;  %v348_v60 = vmul.f32 0.044715, %v332_v48 }
 0x109   :  { %6347 = vtanh.f32 %v387_v43  ;;  %v330_v61 = vmul.f32 %v314_v49, %v6761_v26  ;;  %v384_v63 = vmul.f32 0.7978846, %v368_v50  ;;  %v366_v0 = vadd.f32 %v350_v15, %v6719_v54 }
 0x10a   :  { %6349 = vtanh.f32 %v390_v55  ;;  %v347_v1 = vmul.f32 0.044715, %v331_v51  ;;  %v329_v2 = vmul.f32 %v313_v53, %v6768_v37  ;;  %v383_v3 = vmul.f32 0.7978846, %v367_v56 }
 0x10b   :  { %6351 = vtanh.f32 %v386_v28  ;;  %v365_v5 = vadd.f32 %v349_v57, %v6723_v59  ;;  %v364_v8 = vadd.f32 %v348_v60, %v6737_v4  ;;  %v346_v9 = vmul.f32 0.044715, %v330_v61 }
 0x10c   :  { %6353 = vtanh.f32 %v385_v58  ;;  %v382_v10 = vmul.f32 0.7978846, %v366_v0  ;;  %v363_v12 = vadd.f32 %v347_v1, %v6714_v52  ;;  %v345_v13 = vmul.f32 0.044715, %v329_v2 }
 0x10d   :  { %6355 = vtanh.f32 %v384_v63  ;;  %v381_v14 = vmul.f32 0.7978846, %v365_v5  ;;  %v380_v20 = vmul.f32 0.7978846, %v364_v8  ;;  %v362_v21 = vadd.f32 %v346_v9, %v6761_v26 }
 0x10e   :  { %6357 = vtanh.f32 %v383_v3  ;;  %v379_v23 = vmul.f32 0.7978846, %v363_v12  ;;  %v361_v24 = vadd.f32 %v345_v13, %v6768_v37  ;;  %vm908_vm2 = vcmask 785408  }
 0x10f   :  { %6359 = vtanh.f32 %v382_v10  ;;  %v378_v34 = vmul.f32 0.7978846, %v362_v21  ;;  %vm1942_vm3 = vcmask 261120  }
 0x110   :  { %6361 = vtanh.f32 %v381_v14  ;;  %v377_v43 = vmul.f32 0.7978846, %v361_v24 }
 0x111   :  { %v6340_v7 = vpop.eup %6339  ;;  %6363 = vtanh.f32 %v380_v20 }
 0x112   :  { %v423_v16 = vadd.f32 1.0, %v6340_v7  ;;  %6365 = vtanh.f32 %v379_v23 }
 0x113   :  { %v6342_v17 = vpop.eup %6341  ;;  %6367 = vtanh.f32 %v378_v34 }
 0x114   :  { %v6344_v19 = vpop.eup %6343  ;;  %v439_v25 = vmul.f32 0.5, %v423_v16  ;;  %v421_v27 = vadd.f32 1.0, %v6342_v17  ;;  %6369 = vtanh.f32 %v377_v43 }
 0x115   :  { %v6346_v22 = vpop.eup %6345  ;;  %v420_v35 = vadd.f32 1.0, %v6344_v19 }
 0x116   :  { %v424_v29 = vadd.f32 1.0, %v6346_v22  ;;  %v6348_v30 = vpop.eup %6347  ;;  %v455_v47 = vmul.f32 %v439_v25, %v6691_v39  ;;  %v437_v48 = vmul.f32 0.5, %v421_v27 }
 0x117   :  { %v6350_v33 = vpop.eup %6349  ;;  %v419_v45 = vadd.f32 1.0, %v6348_v30  ;;  %v436_v28 = vmul.f32 0.5, %v420_v35 }
 0x118   :  { %v440_v40 = vmul.f32 0.5, %v424_v29  ;;  %v6352_v42 = vpop.eup %6351  ;;  %v422_v18 = vadd.f32 1.0, %v6350_v33  ;;  %v453_v60 = vmul.f32 %v437_v48, %v6700_v44  ;;  %v5965_v48 = vld [vmem:[%s8277_s29 + $0x18] sm:$0xff]  }
 0x119   :  { %v6354_v50 = vpop.eup %6353  ;;  %v418_v51 = vadd.f32 1.0, %v6352_v42  ;;  %v435_v57 = vmul.f32 0.5, %v419_v45  ;;  %v5963_v45 = vld [vmem:[%s8277_s29 + $0x8] sm:$0xff]  }
 0x11a   :  { %v456_v49 = vmul.f32 %v440_v40, %v6729_v62  ;;  %v438_v15 = vmul.f32 0.5, %v422_v18  ;;  %v6356_v55 = vpop.eup %6355  ;;  %v417_v58 = vadd.f32 1.0, %v6354_v50  ;;  %v452_v62 = vmul.f32 %v436_v28, %v6673_v31  ;;  %v5961_v18 = vld [vmem:[%s8273_s7 + $0x18] sm:$0xff]   ;;  %v5967_v50 = vld [vmem:[%s8277_s29 + $0x28] sm:$0xff]  }
 0x11b   :  { %v6358_v61 = vpop.eup %6357  ;;  %v416_v39 = vadd.f32 1.0, %v6356_v55  ;;  %v434_v63 = vmul.f32 0.5, %v418_v51  ;;  %v451_v3 = vmul.f32 %v435_v57, %v6677_v32 }
 0x11c   :  { %v464_v53 = vpack.c.bf16 %v456_v49, %v455_v47  ;;  %v454_v56 = vmul.f32 %v438_v15, %v6742_v6  ;;  %v6360_v1 = vpop.eup %6359  ;;  %v415_v2 = vadd.f32 1.0, %v6358_v61  ;;  %v433_v5 = vmul.f32 0.5, %v417_v58  ;;  %v5964_v47 = vld [vmem:[%s8277_s29 + $0x10] sm:$0xff]   ;;  %v5966_v49 = vld [vmem:[%s8277_s29 + $0x20] sm:$0xff]  }
 0x11d   :  { %v6362_v6 = vpop.eup %6361  ;;  %v432_v7 = vmul.f32 0.5, %v416_v39  ;;  %v414_v44 = vadd.f32 1.0, %v6360_v1  ;;  %v450_v8 = vmul.f32 %v434_v63, %v6682_v36  ;;  %v462_v9 = vpack.c.bf16 %v452_v62, %v451_v3  ;;  %v5975_v15 = vld [vmem:[%s8240_s11] sm:$0xff]  }
 0x11e   :  { %5729 = vmatpush3.bf16.msra.mxu1 %v464_v53  ;;  %v463_v0 = vpack.c.bf16 %v454_v56, %v453_v60  ;;  %v6364_v10 = vpop.eup %6363  ;;  %v431_v13 = vmul.f32 0.5, %v415_v2  ;;  %v413_v31 = vadd.f32 1.0, %v6362_v6  ;;  %v449_v14 = vmul.f32 %v433_v5, %v6688_v38  ;;  %5763 = vmatpush3.bf16.msra.mxu0 %v5975_v15  ;;  %v4810_v62 = vld [vmem:[%s8275_s5 + $0x1] ss:$0 sm:$0xff] }
 0x11f   :  { %5730 = vmatprep.subr.bf16.mxu1 %v6449_v11  ;;  %v6366_v12 = vpop.eup %6365  ;;  %v412_v32 = vadd.f32 1.0, %v6364_v10  ;;  %v448_v16 = vmul.f32 %v432_v7, %v6703_v46  ;;  %v430_v17 = vmul.f32 0.5, %v414_v44  ;;  %5786 = vmatprep.subr.bf16.mxu0 %v6449_v11 }
 0x120   :  { %v461_v19 = vpack.c.bf16 %v450_v8, %v449_v14  ;;  %v6368_v20 = vpop.eup %6367  ;;  %v411_v21 = vadd.f32 1.0, %v6366_v12  ;;  %v447_v22 = vmul.f32 %v431_v13, %v6694_v41  ;;  %v429_v36 = vmul.f32 0.5, %v413_v31 }
 0x121   :  { %v6370_v23 = vpop.eup %6369  ;;  %v428_v24 = vmul.f32 0.5, %v412_v32  ;;  %v410_v25 = vadd.f32 1.0, %v6368_v20  ;;  %v446_v38 = vmul.f32 %v430_v17, %v6719_v54 }
 0x122   :  { %5731 = vmatpush3.bf16.msra.mxu1 %v463_v0  ;;  %v460_v27 = vpack.c.bf16 %v448_v16, %v447_v22  ;;  %v427_v29 = vmul.f32 0.5, %v411_v21  ;;  %v409_v30 = vadd.f32 1.0, %v6370_v23  ;;  %v445_v46 = vmul.f32 %v429_v36, %v6723_v59  ;;  %v5959_v59 = vld [vmem:[%s8273_s7 + $0x28] sm:$0xff]  }
 0x123   :  { %5732 = vmatprep.subr.bf16.mxu1 %v6449_v11  ;;  %v444_v33 = vmul.f32 %v428_v24, %v6737_v4  ;;  %v426_v41 = vmul.f32 0.5, %v410_v25 }
 0x124   :  { %v459_v34 = vpack.c.bf16 %v446_v38, %v445_v46  ;;  %v443_v35 = vmul.f32 %v427_v29, %v6714_v52  ;;  %v425_v40 = vmul.f32 0.5, %v409_v30  ;;  %v102_v52 = vld [vmem:[%s8276_s28] sm:$0xf]  ;;  %s8279_s28 = sld [smem:[#allocation10_spill]] }
 0x125   :  { %v442_v54 = vmul.f32 %v426_v41, %v6761_v26  ;;  %v5962_v26 = vld [vmem:[%s8277_s29] sm:$0xff]  }
 0x126   :  { %5733 = vmatpush3.bf16.msra.mxu1 %v462_v9  ;;  %v458_v42 = vpack.c.bf16 %v444_v33, %v443_v35  ;;  %v441_v43 = vmul.f32 %v425_v40, %v6768_v37  ;;  %v5960_v37 = vld [vmem:[%s8273_s7 + $0x20] sm:$0xff]  }
 0x127   :  { %5734 = vmatprep.subr.bf16.mxu1 %v6449_v11 }
 0x128   :  { %v457_v4 = vpack.c.bf16 %v442_v54, %v441_v43 }
 0x12a   :  { %5735 = vmatpush3.bf16.msra.mxu1 %v461_v19 }
 0x12b   :  { %5736 = vmatprep.subr.bf16.mxu1 %v6449_v11 }
 0x12e   :  { %5737 = vmatpush3.bf16.msra.mxu1 %v460_v27 }
 0x12f   :  { %5738 = vmatprep.subr.bf16.mxu1 %v6449_v11 }
 0x132   :  { %5739 = vmatpush3.bf16.msra.mxu1 %v459_v34 }
 0x133   :  { %5740 = vmatprep.subr.bf16.mxu1 %v6449_v11 }
 0x136   :  { %5741 = vmatpush3.bf16.msra.mxu1 %v458_v42 }
 0x137   :  { %5742 = vmatprep.subr.bf16.mxu1 %v6449_v11 }
 0x13a   :  { %5743 = vmatpush3.bf16.msra.mxu1 %v457_v4 }
 0x13b   :  { %5768 = vmatprep.subr.bf16.mxu1 %v5959_v59 }
 0x13d   :  { %5745 = vmatmul.mubr.bf16.vlgmr.msra.gmra.mxu1 %v102_v52 }
 0x13e   :  { %5769 = vmatpush3.bf16.msra.mxu1 %v5959_v59  ;;  %5774 = vmatprep.mubr.msk.bf16.mxu1 %vm191_vm0, %v5962_v26 }
 0x13f   :  { %5770 = vmatprep.subr.bf16.mxu1 %v5960_v37 }
 0x142   :  { %5771 = vmatpush3.bf16.msra.mxu1 %v5960_v37 }
 0x143   :  { %5772 = vmatprep.subr.bf16.mxu1 %v5961_v18 }
 0x146   :  { %5773 = vmatpush3.bf16.msra.mxu1 %v5961_v18 }
 0x147   :  { %5802 = vmatprep.subr.bf16.mxu1 %v6449_v11 }
 0x149   :  { %5775 = vmatmul.mubr.msk.bf16.vlgmr.msra.gmra.mxu1 %vm191_vm0, %v5963_v45 }
 0x14a   :  { %5778 = vmatprep.mubr.msk.bf16.mxu1 %vm191_vm0, %v5964_v47 }
 0x151   :  { %5779 = vmatmul.mubr.msk.bf16.gmra.mxu1 %vm191_vm0, %v5965_v48 }
 0x152   :  { %5782 = vmatprep.mubr.msk.bf16.mxu1 %vm191_vm0, %v5966_v49 }
 0x159   :  { %5783 = vmatmul.mubr.msk.bf16.gmra.mxu1 %vm191_vm0, %v5967_v50 }
 0x15a   :  { %5818 = vmatprep.mubr.msk.bf16.mxu1 %vm6450_vm1, %v6449_v11 }
 0x1fd   :  { %v499_v28 = vpop.f32.mrf.mxu1 }
 0x1fe   :  { %v505_v51 = vpack.c.bf16 %v499_v28, %v499_v28 }
 0x1ff   :  { %v5746_v53 = vpop.f32.mrf.mxu1 }
 0x200   :  { %5765 = vmatmul.mubr.bf16.vlgmr.msra.gmra.mxu0 %v505_v51 }
 0x201   :  { %v502_v55 = vpop.f32.mrf.mxu1  ;;  %5798 = vmatprep.mubr.msk.bf16.mxu0 %vm6450_vm1, %v6449_v11 }
 0x203   :  { %v5747_v56 = vpop.f32.mrf.mxu1 }
 0x209   :  { %v5776_v57 = vpop.f32.mrf.mxu1 }
 0x20a   :  { %v6876_v12 = vadd.f32 %v5776_v57, %v4810_v62 }
 0x20b   :  { %v747_v58 = vpop.f32.mrf.mxu1 }
 0x20c   :  { %v796_v25 = vmul.f32 %v6876_v12, %v6876_v12  ;;  %v6897_v38 = vadd.f32 %v4810_v62, %v747_v58 }
 0x20d   :  { %v5777_v60 = vpop.f32.mrf.mxu1 }
 0x20e   :  { %v6868_v7 = vadd.f32 %v5777_v60, %v4810_v62  ;;  %v808_v52 = vmul.f32 %v796_v25, %v6876_v12  ;;  %v794_v45 = vmul.f32 %v6897_v38, %v6897_v38 }
 0x20f   :  { %v750_v61 = vpop.f32.mrf.mxu1 }
 0x210   :  { %v797_v19 = vmul.f32 %v6868_v7, %v6868_v7  ;;  %v6899_v27 = vadd.f32 %v4810_v62, %v750_v61  ;;  %v820_v61 = vmul.f32 0.044715, %v808_v52 }
 0x211   :  { %v5780_v39 = vpop.f32.mrf.mxu1 }
 0x212   :  { %v6860_v0 = vadd.f32 %v5780_v39, %v4810_v62  ;;  %v809_v35 = vmul.f32 %v797_v19, %v6868_v7  ;;  %v795_v26 = vmul.f32 %v6899_v27, %v6899_v27  ;;  %v806_v39 = vmul.f32 %v794_v45, %v6897_v38 }
 0x213   :  { %v763_v63 = vpop.f32.mrf.mxu1 }
 0x214   :  { %v800_v5 = vmul.f32 %v6860_v0, %v6860_v0  ;;  %v6870_v44 = vadd.f32 %v4810_v62, %v763_v63  ;;  %v821_v51 = vmul.f32 0.044715, %v809_v35  ;;  %v807_v56 = vmul.f32 %v795_v26, %v6899_v27 }
 0x215   :  { %v5781_v1 = vpop.f32.mrf.mxu1 }
 0x216   :  { %v6862_v2 = vadd.f32 %v5781_v1, %v4810_v62  ;;  %v812_v32 = vmul.f32 %v800_v5, %v6860_v0  ;;  %v798_v20 = vmul.f32 %v6870_v44, %v6870_v44  ;;  %v833_v5 = vadd.f32 %v821_v51, %v6868_v7 }
 0x217   :  { %v766_v3 = vpop.f32.mrf.mxu1 }
 0x218   :  { %v6866_v6 = vadd.f32 %v4810_v62, %v766_v3  ;;  %v801_v8 = vmul.f32 %v6862_v2, %v6862_v2  ;;  %v824_v46 = vmul.f32 0.044715, %v812_v32  ;;  %v810_v40 = vmul.f32 %v798_v20, %v6870_v44 }
 0x219   :  { %v5784_v9 = vpop.f32.mrf.mxu1 }
 0x21a   :  { %v6874_v10 = vadd.f32 %v5784_v9, %v4810_v62  ;;  %v813_v13 = vmul.f32 %v801_v8, %v6862_v2  ;;  %v799_v31 = vmul.f32 %v6866_v6, %v6866_v6  ;;  %v836_v47 = vadd.f32 %v824_v46, %v6860_v0 }
 0x21b   :  { %v779_v14 = vpop.f32.mrf.mxu1  ;;  %v822_v50 = vmul.f32 0.044715, %v810_v40  ;;  %v819_v8 = vmul.f32 0.044715, %v807_v56 }
 0x21c   :  { %v804_v16 = vmul.f32 %v6874_v10, %v6874_v10  ;;  %v6884_v17 = vadd.f32 %v4810_v62, %v779_v14  ;;  %v825_v22 = vmul.f32 0.044715, %v813_v13  ;;  %v811_v29 = vmul.f32 %v799_v31, %v6866_v6 }
 0x21d   :  { %v5785_v21 = vpop.f32.mrf.mxu1  ;;  %v834_v63 = vadd.f32 %v822_v50, %v6870_v44  ;;  %v832_v31 = vadd.f32 %v820_v61, %v6876_v12  ;;  %v818_v14 = vmul.f32 0.044715, %v806_v39  ;;  %v831_v19 = vadd.f32 %v819_v8, %v6899_v27 }
 0x21e   :  { %v816_v36 = vmul.f32 %v804_v16, %v6874_v10  ;;  %v802_v23 = vmul.f32 %v6884_v17, %v6884_v17  ;;  %v6893_v24 = vadd.f32 %v5785_v21, %v4810_v62  ;;  %v837_v42 = vadd.f32 %v825_v22, %v6862_v2 }
 0x21f   :  { %v782_v30 = vpop.f32.mrf.mxu1  ;;  %v823_v37 = vmul.f32 0.044715, %v811_v29  ;;  %v846_v32 = vmul.f32 0.7978846, %v834_v63  ;;  %v845_v16 = vmul.f32 0.7978846, %v833_v5  ;;  %v830_v21 = vadd.f32 %v818_v14, %v6897_v38 }
 0x220   :  { %v828_v33 = vmul.f32 0.044715, %v816_v36  ;;  %v814_v41 = vmul.f32 %v802_v23, %v6884_v17  ;;  %v805_v34 = vmul.f32 %v6893_v24, %v6893_v24  ;;  %v6907_v54 = vadd.f32 %v4810_v62, %v782_v30  ;;  %v5986_v5 = vld [vmem:[%s8240_s11 + $0x70] sm:$0xff]  }
 0x221   :  { %v849_v53 = vmul.f32 0.7978846, %v837_v42  ;;  %v835_v57 = vadd.f32 %v823_v37, %v6866_v6  ;;  %v848_v62 = vmul.f32 0.7978846, %v836_v47  ;;  %v844_v20 = vmul.f32 0.7978846, %v832_v31 }
 0x222   :  { %v840_v43 = vadd.f32 %v828_v33, %v6874_v10  ;;  %v826_v59 = vmul.f32 0.044715, %v814_v41  ;;  %v817_v4 = vmul.f32 %v805_v34, %v6893_v24  ;;  %v803_v18 = vmul.f32 %v6907_v54, %v6907_v54 }
 0x223   :  { %v847_v9 = vmul.f32 0.7978846, %v835_v57  ;;  %v843_v36 = vmul.f32 0.7978846, %v831_v19  ;;  %v842_v23 = vmul.f32 0.7978846, %v830_v21 }
 0x224   :  { %v852_v48 = vmul.f32 0.7978846, %v840_v43  ;;  %v838_v49 = vadd.f32 %v826_v59, %v6884_v17  ;;  %v829_v15 = vmul.f32 0.044715, %v817_v4  ;;  %v815_v28 = vmul.f32 %v803_v18, %v6907_v54 }
 0x226   :  { %6371 = vtanh.f32 %v852_v48  ;;  %v850_v55 = vmul.f32 0.7978846, %v838_v49  ;;  %v841_v58 = vadd.f32 %v829_v15, %v6893_v24  ;;  %v827_v60 = vmul.f32 0.044715, %v815_v28 }
 0x228   :  { %6373 = vtanh.f32 %v850_v55  ;;  %v853_v1 = vmul.f32 0.7978846, %v841_v58  ;;  %v839_v3 = vadd.f32 %v827_v60, %v6907_v54 }
 0x229   :  { %6375 = vtanh.f32 %v849_v53 }
 0x22a   :  { %6377 = vtanh.f32 %v853_v1  ;;  %v851_v13 = vmul.f32 0.7978846, %v839_v3 }
 0x22b   :  { %6379 = vtanh.f32 %v848_v62 }
 0x22c   :  { %6381 = vtanh.f32 %v851_v13 }
 0x22d   :  { %6383 = vtanh.f32 %v847_v9 }
 0x22e   :  { %6385 = vtanh.f32 %v846_v32 }
 0x22f   :  { %6387 = vtanh.f32 %v845_v16 }
 0x230   :  { %6389 = vtanh.f32 %v844_v20 }
 0x231   :  { %6391 = vtanh.f32 %v843_v36  ;;  %v5977_v36 = vld [vmem:[%s8273_s7 + $0x38] sm:$0xff]  }
 0x232   :  { %6393 = vtanh.f32 %v842_v23  ;;  %v5990_v23 = vld [vmem:[%s8240_s11 + $0x50] sm:$0xff]  }
 0x233   :  { %v6372_v22 = vpop.eup %6371 }
 0x234   :  { %v876_v25 = vadd.f32 1.0, %v6372_v22  ;;  %v5979_v22 = vld [vmem:[%s8279_s28] sm:$0xff]  }
 0x235   :  { %v6374_v29 = vpop.eup %6373 }
 0x236   :  { %v6376_v30 = vpop.eup %6375  ;;  %v888_v41 = vmul.f32 0.5, %v876_v25  ;;  %v874_v34 = vadd.f32 1.0, %v6374_v29  ;;  %v5978_v25 = vld [vmem:[%s8273_s7 + $0x30] sm:$0xff]   ;;  %v5991_v29 = vld [vmem:[%s8240_s11 + $0x48] sm:$0xff]  }
 0x237   :  { %v6378_v46 = vpop.eup %6377  ;;  %v873_v42 = vadd.f32 1.0, %v6376_v30  ;;  %v5980_v30 = vld [vmem:[%s8279_s28 + $0x8] sm:$0xff]  }
 0x238   :  { %v6380_v33 = vpop.eup %6379  ;;  %v877_v35 = vadd.f32 1.0, %v6378_v46  ;;  %v900_v26 = vmul.f32 %v888_v41, %v6874_v10  ;;  %v886_v37 = vmul.f32 0.5, %v874_v34  ;;  %v5981_v46 = vld [vmem:[%s8279_s28 + $0x10] sm:$0xff]   ;;  %v5983_v41 = vld [vmem:[%s8279_s28 + $0x20] sm:$0xff]   ;;  %v5984_v34 = vld [vmem:[%s8279_s28 + $0x28] sm:$0xff]  }
 0x239   :  { %v6382_v40 = vpop.eup %6381  ;;  %v872_v52 = vadd.f32 1.0, %v6380_v33  ;;  %v885_v48 = vmul.f32 0.5, %v873_v42  ;;  %v5982_v33 = vld [vmem:[%s8279_s28 + $0x18] sm:$0xff]  }
 0x23a   :  { %v889_v43 = vmul.f32 0.5, %v877_v35  ;;  %v875_v59 = vadd.f32 1.0, %v6382_v40  ;;  %v6384_v4 = vpop.eup %6383  ;;  %v898_v55 = vmul.f32 %v886_v37, %v6884_v17  ;;  %v5985_v17 = vld [vmem:[%s8240_s11 + $0x78] sm:$0xff]   ;;  %v5992_v35 = vld [vmem:[%s8240_s11 + $0x40] sm:$0xff]  }
 0x23b   :  { %v6386_v47 = vpop.eup %6385  ;;  %v871_v49 = vadd.f32 1.0, %v6384_v4  ;;  %v884_v51 = vmul.f32 0.5, %v872_v52  ;;  %v897_v57 = vmul.f32 %v885_v48, %v6862_v2  ;;  %5803 = vmatpush3.bf16.msra.mxu1 %v5985_v17 }
 0x23c   :  { %v901_v18 = vmul.f32 %v889_v43, %v6893_v24  ;;  %v887_v45 = vmul.f32 0.5, %v875_v59  ;;  %v6388_v28 = vpop.eup %6387  ;;  %v870_v53 = vadd.f32 1.0, %v6386_v47  ;;  %5804 = vmatprep.subr.bf16.mxu1 %v6449_v11 }
 0x23d   :  { %v6390_v56 = vpop.eup %6389  ;;  %v869_v10 = vadd.f32 1.0, %v6388_v28  ;;  %v883_v24 = vmul.f32 0.5, %v871_v49  ;;  %v896_v39 = vmul.f32 %v884_v51, %v6860_v0 }
 0x23e   :  { %v899_v50 = vmul.f32 %v887_v45, %v6907_v54  ;;  %v907_v15 = vpack.c.bf16 %v901_v18, %v900_v26  ;;  %v6392_v60 = vpop.eup %6391  ;;  %v868_v61 = vadd.f32 1.0, %v6390_v56  ;;  %v882_v54 = vmul.f32 0.5, %v870_v53 }
 0x23f   :  { %v6394_v62 = vpop.eup %6393  ;;  %v881_v63 = vmul.f32 0.5, %v869_v10  ;;  %v867_v1 = vadd.f32 1.0, %v6392_v60  ;;  %v895_v3 = vmul.f32 %v883_v24, %v6866_v6  ;;  %v905_v2 = vpack.c.bf16 %v897_v57, %v896_v39  ;;  %5805 = vmatpush3.bf16.msra.mxu1 %v5986_v5  ;;  %v5987_v6 = vld [vmem:[%s8240_s11 + $0x68] sm:$0xff]  }
 0x240   :  { %5787 = vmatpush3.bf16.msra.mxu0 %v907_v15  ;;  %v906_v58 = vpack.c.bf16 %v899_v50, %v898_v55  ;;  %v880_v0 = vmul.f32 0.5, %v868_v61  ;;  %v866_v8 = vadd.f32 1.0, %v6394_v62  ;;  %v894_v9 = vmul.f32 %v882_v54, %v6870_v44  ;;  %5806 = vmatprep.subr.bf16.mxu1 %v6449_v11  ;;  %v4860_v15 = vld [vmem:[%s8275_s5 + $0x2] ss:$0 sm:$0xff] }
 0x241   :  { %5788 = vmatprep.subr.bf16.mxu0 %v6449_v11  ;;  %v893_v13 = vmul.f32 %v881_v63, %v6868_v7  ;;  %v879_v31 = vmul.f32 0.5, %v867_v1  ;;  %v5988_v7 = vld [vmem:[%s8240_s11 + $0x60] sm:$0xff]  }
 0x242   :  { %v904_v14 = vpack.c.bf16 %v895_v3, %v894_v9  ;;  %v892_v32 = vmul.f32 %v880_v0, %v6876_v12  ;;  %v878_v16 = vmul.f32 0.5, %v866_v8  ;;  %v5976_v12 = vld [vmem:[%s8273_s7 + $0x40] sm:$0xff]  }
 0x243   :  { %v891_v44 = vmul.f32 %v879_v31, %v6899_v27  ;;  %5807 = vmatpush3.bf16.msra.mxu1 %v5987_v6  ;;  %v5989_v27 = vld [vmem:[%s8240_s11 + $0x58] sm:$0xff]  }
 0x244   :  { %5789 = vmatpush3.bf16.msra.mxu0 %v906_v58  ;;  %v903_v19 = vpack.c.bf16 %v893_v13, %v892_v32  ;;  %v890_v20 = vmul.f32 %v878_v16, %v6897_v38  ;;  %5808 = vmatprep.subr.bf16.mxu1 %v6449_v11  ;;  %v6973_v38 = vld [vmem:[%s8278_s1] sm:$0x7] }
 0x245   :  { %5790 = vmatprep.subr.bf16.mxu0 %v6449_v11 }
 0x246   :  { %v902_v21 = vpack.c.bf16 %v891_v44, %v890_v20 }
 0x247   :  { %5809 = vmatpush3.bf16.msra.mxu1 %v5988_v7 }
 0x248   :  { %5791 = vmatpush3.bf16.msra.mxu0 %v905_v2  ;;  %5810 = vmatprep.subr.bf16.mxu1 %v6449_v11 }
 0x249   :  { %5792 = vmatprep.subr.bf16.mxu0 %v6449_v11 }
 0x24b   :  { %5811 = vmatpush3.bf16.msra.mxu1 %v5989_v27 }
 0x24c   :  { %5793 = vmatpush3.bf16.msra.mxu0 %v904_v14  ;;  %5812 = vmatprep.subr.bf16.mxu1 %v6449_v11 }
 0x24d   :  { %5794 = vmatprep.subr.bf16.mxu0 %v6449_v11 }
 0x24f   :  { %5813 = vmatpush3.bf16.msra.mxu1 %v5990_v23 }
 0x250   :  { %5795 = vmatpush3.bf16.msra.mxu0 %v903_v19  ;;  %5814 = vmatprep.subr.bf16.mxu1 %v6449_v11 }
 0x251   :  { %5796 = vmatprep.subr.bf16.mxu0 %v6449_v11 }
 0x253   :  { %5815 = vmatpush3.bf16.msra.mxu1 %v5991_v29 }
 0x254   :  { %5797 = vmatpush3.bf16.msra.mxu0 %v902_v21  ;;  %5816 = vmatprep.subr.bf16.mxu1 %v6449_v11 }
 0x255   :  { %5822 = vmatprep.subr.bf16.mxu0 %v5976_v12 }
 0x257   :  { %5799 = vmatmul.mubr.msk.bf16.vlgmr.msra.gmra.mxu0 %vm908_vm2, %v6973_v38  ;;  %5817 = vmatpush3.bf16.msra.mxu1 %v5992_v35 }
 0x258   :  { %5823 = vmatpush3.bf16.msra.mxu0 %v5976_v12  ;;  %5828 = vmatprep.mubr.msk.bf16.mxu0 %vm191_vm0, %v5979_v22 }
 0x259   :  { %5824 = vmatprep.subr.bf16.mxu0 %v5977_v36  ;;  %5840 = vmatprep.subr.bf16.mxu1 %v6449_v11 }
 0x25c   :  { %5825 = vmatpush3.bf16.msra.mxu0 %v5977_v36 }
 0x25d   :  { %5826 = vmatprep.subr.bf16.mxu0 %v5978_v25 }
 0x260   :  { %5827 = vmatpush3.bf16.msra.mxu0 %v5978_v25 }
 0x261   :  { %5856 = vmatprep.subr.bf16.mxu0 %v6449_v11 }
 0x263   :  { %5829 = vmatmul.mubr.msk.bf16.vlgmr.msra.gmra.mxu0 %vm191_vm0, %v5980_v30 }
 0x264   :  { %5832 = vmatprep.mubr.msk.bf16.mxu0 %vm191_vm0, %v5981_v46 }
 0x26b   :  { %5833 = vmatmul.mubr.msk.bf16.gmra.mxu0 %vm191_vm0, %v5982_v33 }
 0x26c   :  { %5836 = vmatprep.mubr.msk.bf16.mxu0 %vm191_vm0, %v5983_v41 }
 0x273   :  { %5837 = vmatmul.mubr.msk.bf16.gmra.mxu0 %vm191_vm0, %v5984_v34 }
 0x274   :  { %5872 = vmatprep.mubr.msk.bf16.mxu0 %vm6450_vm1, %v6449_v11 }
 0x2c0   :  { %v7024_v40 = vpop.f32.mrf.mxu0 }
 0x2c2   :  { %v5766_v42 = vpop.f32.mrf.mxu0 }
 0x2c4   :  { %v597_v43 = vpop.f32.mrf.mxu0 }
 0x2c6   :  { %v5767_v59 = vpop.f32.mrf.mxu0 }
 0x317   :  { %v946_v4 = vpop.f32.mrf.mxu0 }
 0x318   :  { %v952_v52 = vpack.c.bf16 %v946_v4, %v946_v4 }
 0x319   :  { %v5800_v26 = vpop.f32.mrf.mxu0 }
 0x31a   :  { %5819 = vmatmul.mubr.bf16.vlgmr.msra.gmra.mxu1 %v952_v52 }
 0x31b   :  { %v949_v37 = vpop.f32.mrf.mxu0  ;;  %5852 = vmatprep.mubr.msk.bf16.mxu1 %vm6450_vm1, %v6449_v11 }
 0x31d   :  { %v5801_v18 = vpop.f32.mrf.mxu0 }
 0x323   :  { %v5830_v45 = vpop.f32.mrf.mxu0 }
 0x324   :  { %v7047_v54 = vadd.f32 %v5830_v45, %v4860_v15 }
 0x325   :  { %v1193_v47 = vpop.f32.mrf.mxu0 }
 0x326   :  { %v1242_v6 = vmul.f32 %v7047_v54, %v7047_v54  ;;  %v7068_v32 = vadd.f32 %v4860_v15, %v1193_v47 }
 0x327   :  { %v5831_v48 = vpop.f32.mrf.mxu0 }
 0x328   :  { %v7039_v24 = vadd.f32 %v5831_v48, %v4860_v15  ;;  %v1254_v46 = vmul.f32 %v1242_v6, %v7047_v54  ;;  %v1240_v35 = vmul.f32 %v7068_v32, %v7068_v32 }
 0x329   :  { %v1196_v49 = vpop.f32.mrf.mxu0 }
 0x32a   :  { %v1243_v5 = vmul.f32 %v7039_v24, %v7039_v24  ;;  %v7070_v16 = vadd.f32 %v4860_v15, %v1196_v49 }
 0x32b   :  { %v5834_v50 = vpop.f32.mrf.mxu0 }
 0x32c   :  { %v7031_v51 = vadd.f32 %v5834_v50, %v4860_v15  ;;  %v1255_v27 = vmul.f32 %v1243_v5, %v7039_v24  ;;  %v1241_v33 = vmul.f32 %v7070_v16, %v7070_v16 }
 0x32d   :  { %v1209_v28 = vpop.f32.mrf.mxu0 }
 0x32e   :  { %v1246_v10 = vmul.f32 %v7031_v51, %v7031_v51  ;;  %v7041_v58 = vadd.f32 %v4860_v15, %v1209_v28  ;;  %v1267_v37 = vmul.f32 0.044715, %v1255_v27  ;;  %v1253_v47 = vmul.f32 %v1241_v33, %v7070_v16 }
 0x32f   :  { %v5835_v53 = vpop.f32.mrf.mxu0  ;;  %v1252_v28 = vmul.f32 %v1240_v35, %v7068_v32 }
 0x330   :  { %v7033_v55 = vadd.f32 %v5835_v53, %v4860_v15  ;;  %v1258_v1 = vmul.f32 %v1246_v10, %v7031_v51  ;;  %v1244_v0 = vmul.f32 %v7041_v58, %v7041_v58 }
 0x331   :  { %v1212_v56 = vpop.f32.mrf.mxu0 }
 0x332   :  { %v7037_v57 = vadd.f32 %v4860_v15, %v1212_v56  ;;  %v1247_v60 = vmul.f32 %v7033_v55, %v7033_v55  ;;  %v1270_v7 = vmul.f32 0.044715, %v1258_v1  ;;  %v1256_v22 = vmul.f32 %v1244_v0, %v7041_v58 }
 0x333   :  { %v5838_v61 = vpop.f32.mrf.mxu0 }
 0x334   :  { %v7045_v39 = vadd.f32 %v5838_v61, %v4860_v15  ;;  %v1259_v62 = vmul.f32 %v1247_v60, %v7033_v55  ;;  %v1245_v17 = vmul.f32 %v7037_v57, %v7037_v57  ;;  %v1282_v42 = vadd.f32 %v1270_v7, %v7031_v51 }
 0x335   :  { %v1225_v63 = vpop.f32.mrf.mxu0  ;;  %v1268_v4 = vmul.f32 0.044715, %v1256_v22  ;;  %v1279_v61 = vadd.f32 %v1267_v37, %v7039_v24 }
 0x336   :  { %v1250_v3 = vmul.f32 %v7045_v39, %v7045_v39  ;;  %v7055_v2 = vadd.f32 %v4860_v15, %v1225_v63  ;;  %v1271_v9 = vmul.f32 0.044715, %v1259_v62  ;;  %v1257_v44 = vmul.f32 %v1245_v17, %v7037_v57 }
 0x337   :  { %v5839_v8 = vpop.f32.mrf.mxu0  ;;  %v1294_v53 = vmul.f32 0.7978846, %v1282_v42  ;;  %v1280_v56 = vadd.f32 %v1268_v4, %v7041_v58  ;;  %v1265_v62 = vmul.f32 0.044715, %v1253_v47  ;;  %v1291_v0 = vmul.f32 0.7978846, %v1279_v61 }
 0x338   :  { %v1262_v13 = vmul.f32 %v1250_v3, %v7045_v39  ;;  %v1248_v31 = vmul.f32 %v7055_v2, %v7055_v2  ;;  %v7064_v14 = vadd.f32 %v5839_v8, %v4860_v15  ;;  %v1283_v23 = vadd.f32 %v1271_v9, %v7033_v55 }
 0x339   :  { %v1228_v19 = vpop.f32.mrf.mxu0  ;;  %v1269_v41 = vmul.f32 0.044715, %v1257_v44  ;;  %v1264_v3 = vmul.f32 0.044715, %v1252_v28  ;;  %v1292_v5 = vmul.f32 0.7978846, %v1280_v56  ;;  %v1277_v8 = vadd.f32 %v1265_v62, %v7070_v16 }
 0x33a   :  { %v1274_v20 = vmul.f32 0.044715, %v1262_v13  ;;  %v1260_v12 = vmul.f32 %v1248_v31, %v7055_v2  ;;  %v1251_v21 = vmul.f32 %v7064_v14, %v7064_v14  ;;  %v7078_v36 = vadd.f32 %v4860_v15, %v1228_v19 }
 0x33b   :  { %v1295_v18 = vmul.f32 0.7978846, %v1283_v23  ;;  %v1281_v48 = vadd.f32 %v1269_v41, %v7037_v57  ;;  %v1266_v15 = vmul.f32 0.044715, %v1254_v46  ;;  %v1276_v13 = vadd.f32 %v1264_v3, %v7068_v32 }
 0x33c   :  { %v1286_v25 = vadd.f32 %v1274_v20, %v7045_v39  ;;  %v1272_v29 = vmul.f32 0.044715, %v1260_v12  ;;  %v1263_v30 = vmul.f32 %v1251_v21, %v7064_v14  ;;  %v1249_v34 = vmul.f32 %v7078_v36, %v7078_v36 }
 0x33d   :  { %v1293_v17 = vmul.f32 0.7978846, %v1281_v48  ;;  %v1278_v1 = vadd.f32 %v1266_v15, %v7047_v54  ;;  %v1289_v6 = vmul.f32 0.7978846, %v1277_v8  ;;  %v1288_v44 = vmul.f32 0.7978846, %v1276_v13 }
 0x33e   :  { %v1298_v43 = vmul.f32 0.7978846, %v1286_v25  ;;  %v1284_v59 = vadd.f32 %v1272_v29, %v7055_v2  ;;  %v1275_v52 = vmul.f32 0.044715, %v1263_v30  ;;  %v1261_v26 = vmul.f32 %v1249_v34, %v7078_v36 }
 0x33f   :  { %v1290_v9 = vmul.f32 0.7978846, %v1278_v1 }
 0x340   :  { %6395 = vtanh.f32 %v1298_v43  ;;  %v1296_v45 = vmul.f32 0.7978846, %v1284_v59  ;;  %v1287_v49 = vadd.f32 %v1275_v52, %v7064_v14  ;;  %v1273_v50 = vmul.f32 0.044715, %v1261_v26 }
 0x342   :  { %6397 = vtanh.f32 %v1296_v45  ;;  %v1299_v10 = vmul.f32 0.7978846, %v1287_v49  ;;  %v1285_v60 = vadd.f32 %v1273_v50, %v7078_v36 }
 0x343   :  { %6399 = vtanh.f32 %v1295_v18 }
 0x344   :  { %6401 = vtanh.f32 %v1299_v10  ;;  %v1297_v63 = vmul.f32 0.7978846, %v1285_v60 }
 0x345   :  { %6403 = vtanh.f32 %v1294_v53 }
 0x346   :  { %6405 = vtanh.f32 %v1297_v63 }
 0x347   :  { %6407 = vtanh.f32 %v1293_v17  ;;  %v5994_v17 = vld [vmem:[%s8240_s11 + $0xb0] sm:$0xff]  }
 0x348   :  { %6409 = vtanh.f32 %v1292_v5 }
 0x349   :  { %6411 = vtanh.f32 %v1291_v0 }
 0x34a   :  { %6413 = vtanh.f32 %v1290_v9 }
 0x34b   :  { %6415 = vtanh.f32 %v1289_v6  ;;  %v5997_v6 = vld [vmem:[%s8240_s11 + $0x98] sm:$0xff]  }
 0x34c   :  { %6417 = vtanh.f32 %v1288_v44  ;;  %v6000_v44 = vld [vmem:[%s8240_s11 + $0x80] sm:$0xff]  }
 0x34d   :  { %v6396_v31 = vpop.eup %6395 }
 0x34e   :  { %v1322_v19 = vadd.f32 1.0, %v6396_v31 }
 0x34f   :  { %v6398_v7 = vpop.eup %6397 }
 0x350   :  { %v6400_v20 = vpop.eup %6399  ;;  %v1334_v27 = vmul.f32 0.5, %v1322_v19  ;;  %v1320_v22 = vadd.f32 1.0, %v6398_v7  ;;  %v6004_v19 = vld [vmem:[%s8242_s13 + $0x78] sm:$0xff]  }
 0x351   :  { %v6402_v12 = vpop.eup %6401  ;;  %v1319_v29 = vadd.f32 1.0, %v6400_v20  ;;  %v6005_v7 = vld [vmem:[%s8242_s13 + $0x38] sm:$0xff]   ;;  %v6007_v20 = vld [vmem:[%s8242_s13 + $0x70] sm:$0xff]  }
 0x352   :  { %v6404_v21 = vpop.eup %6403  ;;  %v1323_v23 = vadd.f32 1.0, %v6402_v12  ;;  %v1346_v34 = vmul.f32 %v1334_v27, %v7045_v39  ;;  %v1332_v35 = vmul.f32 0.5, %v1320_v22  ;;  %v6008_v12 = vld [vmem:[%s8242_s13 + $0x30] sm:$0xff]   ;;  %v6011_v27 = vld [vmem:[%s8242_s13 + $0x28] sm:$0xff]   ;;  %v6013_v22 = vld [vmem:[%s8242_s13 + $0x60] sm:$0xff]  }
 0x353   :  { %v6406_v25 = vpop.eup %6405  ;;  %v1318_v41 = vadd.f32 1.0, %v6404_v21  ;;  %v1331_v4 = vmul.f32 0.5, %v1319_v29  ;;  %v6010_v21 = vld [vmem:[%s8242_s13 + $0x68] sm:$0xff]   ;;  %v6017_v29 = vld [vmem:[%s8242_s13 + $0x18] sm:$0xff]  }
 0x354   :  { %v1335_v30 = vmul.f32 0.5, %v1323_v23  ;;  %v1321_v46 = vadd.f32 1.0, %v6406_v25  ;;  %v6408_v33 = vpop.eup %6407  ;;  %v1344_v48 = vmul.f32 %v1332_v35, %v7055_v2  ;;  %v5993_v2 = vld [vmem:[%s8240_s11 + $0xb8] sm:$0xff]   ;;  %v6014_v23 = vld [vmem:[%s8242_s13 + $0x20] sm:$0xff]  }
 0x355   :  { %v6410_v59 = vpop.eup %6409  ;;  %v1317_v52 = vadd.f32 1.0, %v6408_v33  ;;  %v1330_v45 = vmul.f32 0.5, %v1318_v41  ;;  %v1343_v50 = vmul.f32 %v1331_v4, %v7033_v55  ;;  %5857 = vmatpush3.bf16.msra.mxu0 %v5993_v2  ;;  %v6016_v25 = vld [vmem:[%s8242_s13 + $0x58] sm:$0xff]   ;;  %v6022_v33 = vld [vmem:[%s8242_s13 + $0x48] sm:$0xff]   ;;  %v6025_v35 = vld [vmem:[%s8242_s13 + $0x40] sm:$0xff]  }
 0x356   :  { %v1347_v42 = vmul.f32 %v1335_v30, %v7064_v14  ;;  %v1333_v43 = vmul.f32 0.5, %v1321_v46  ;;  %v6412_v18 = vpop.eup %6411  ;;  %v1316_v47 = vadd.f32 1.0, %v6410_v59  ;;  %5858 = vmatprep.subr.bf16.mxu0 %v6449_v11  ;;  %v6019_v30 = vld [vmem:[%s8242_s13 + $0x50] sm:$0xff]   ;;  %v6023_v41 = vld [vmem:[%s8242_s13 + $0x8] sm:$0xff]   ;;  %v6018_v2 = vld [vmem:[%s8242_s13 + $0x80] sm:$0xff]  }
 0x357   :  { %v6414_v49 = vpop.eup %6413  ;;  %v1315_v39 = vadd.f32 1.0, %v6412_v18  ;;  %v1329_v14 = vmul.f32 0.5, %v1317_v52  ;;  %v1342_v56 = vmul.f32 %v1330_v45, %v7031_v51  ;;  %v6020_v46 = vld [vmem:[%s8242_s13 + $0x10] sm:$0xff]  }
 0x358   :  { %v1345_v26 = vmul.f32 %v1333_v43, %v7078_v36  ;;  %v1353_v37 = vpack.c.bf16 %v1347_v42, %v1346_v34  ;;  %v6416_v28 = vpop.eup %6415  ;;  %v1314_v53 = vadd.f32 1.0, %v6414_v49  ;;  %v1328_v36 = vmul.f32 0.5, %v1316_v47  ;;  %v6026_v42 = vld [vmem:[%s8242_s13] sm:$0xff]   ;;  %v6001_v47 = vld [vmem:[%s8242_s13 + $0xb8] sm:$0xff]  }
 0x359   :  { %v6418_v10 = vpop.eup %6417  ;;  %v1327_v60 = vmul.f32 0.5, %v1315_v39  ;;  %v1313_v61 = vadd.f32 1.0, %v6416_v28  ;;  %v1341_v62 = vmul.f32 %v1329_v14, %v7037_v57  ;;  %v1351_v55 = vpack.c.bf16 %v1343_v50, %v1342_v56  ;;  %5859 = vmatpush3.bf16.msra.mxu0 %v5994_v17  ;;  %v5995_v57 = vld [vmem:[%s8240_s11 + $0xa8] sm:$0xff]   ;;  %v6028_v4 = vld [vmem:[%s8280_s27] ss:$16 sps:$4 sm:$0xff]   ;;  %v6009_v56 = vld [vmem:[%s8242_s13 + $0x98] sm:$0xff]  }
 0x35a   :  { %5841 = vmatpush3.bf16.msra.mxu1 %v1353_v37  ;;  %v1352_v15 = vpack.c.bf16 %v1345_v26, %v1344_v48  ;;  %v1326_v51 = vmul.f32 0.5, %v1314_v53  ;;  %v1312_v63 = vadd.f32 1.0, %v6418_v10  ;;  %v1340_v1 = vmul.f32 %v1328_v36, %v7041_v58  ;;  %5860 = vmatprep.subr.bf16.mxu0 %v6449_v11  ;;  %v6030_v52 = vld [vmem:[%s8280_s27 + $0x4] ss:$16 sps:$4 sm:$0xff]   ;;  %v6035_v18 = vld [vmem:[%s8280_s27 + $0x20] ss:$16 sps:$4 sm:$0xff]  }
 0x35b   :  { %5842 = vmatprep.subr.bf16.mxu1 %v6449_v11  ;;  %v1339_v3 = vmul.f32 %v1327_v60, %v7039_v24  ;;  %v1325_v5 = vmul.f32 0.5, %v1313_v61  ;;  %v5996_v24 = vld [vmem:[%s8240_s11 + $0xa0] sm:$0xff]   ;;  %v6037_v48 = vld [vmem:[%s8280_s27 + $0xc] ss:$16 sps:$4 sm:$0xff]   ;;  %v6002_v14 = vld [vmem:[%s8242_s13 + $0xb0] sm:$0xff]  }
 0x35c   :  { %v1350_v0 = vpack.c.bf16 %v1341_v62, %v1340_v1  ;;  %v1338_v8 = vmul.f32 %v1326_v51, %v7047_v54  ;;  %v1324_v9 = vmul.f32 0.5, %v1312_v63  ;;  %v6033_v37 = vld [vmem:[%s8280_s27 + $0x24] ss:$16 sps:$4 sm:$0xff]   ;;  %v6003_v28 = vld [vmem:[%s8242_s13 + $0xa8] sm:$0xff]   ;;  %v6027_v62 = vld [vmem:[%s8242_s13 + $0xd8] sm:$0xff]  }
 0x35d   :  { %v1337_v58 = vmul.f32 %v1325_v5, %v7070_v16  ;;  %5861 = vmatpush3.bf16.msra.mxu0 %v5995_v57  ;;  %v5999_v16 = vld [vmem:[%s8240_s11 + $0x88] sm:$0xff]   ;;  %v6006_v53 = vld [vmem:[%s8242_s13 + $0xa0] sm:$0xff]   ;;  %v6012_v36 = vld [vmem:[%s8242_s13 + $0x90] sm:$0xff]  }
 0x35e   :  { %5843 = vmatpush3.bf16.msra.mxu1 %v1352_v15  ;;  %v1349_v13 = vpack.c.bf16 %v1339_v3, %v1338_v8  ;;  %v1336_v31 = vmul.f32 %v1324_v9, %v7068_v32  ;;  %5862 = vmatprep.subr.bf16.mxu0 %v6449_v11  ;;  %v5998_v32 = vld [vmem:[%s8240_s11 + $0x90] sm:$0xff]   ;;  %v6015_v10 = vld [vmem:[%s8242_s13 + $0x88] sm:$0xff]   ;;  %v6024_v61 = vld [vmem:[%s8242_s13 + $0xe0] sm:$0xff]  }
 0x35f   :  { %5844 = vmatprep.subr.bf16.mxu1 %v6449_v11  ;;  %v6021_v60 = vld [vmem:[%s8242_s13 + $0xe8] sm:$0xff]   ;;  %v6036_v51 = vld [vmem:[%s8242_s13 + $0xc0] sm:$0xff]   ;;  %v6040_v63 = vld [vmem:[%s8246_s17 + $0x78] sm:$0xff]  }
 0x360   :  { %v1348_v54 = vpack.c.bf16 %v1337_v58, %v1336_v31  ;;  %v6032_v17 = vld [vmem:[%s8242_s13 + $0xc8] sm:$0xff]   ;;  %v4777_v1 = vld [vmem:[%s8241_s12] ss:$0 sm:$0xff]  ;;  %v6041_v5 = vld [vmem:[%s8246_s17 + $0x38] sm:$0xff]  }
 0x361   :  { %5863 = vmatpush3.bf16.msra.mxu0 %v5996_v24  ;;  %v6039_v3 = vld [vmem:[%s8280_s27 + $0x8] ss:$16 sps:$4 sm:$0xff]   ;;  %v6042_v57 = vld [vmem:[%s8246_s17 + $0x70] sm:$0xff]   ;;  %v595_v8 = vadd.f32 %v4777_v1, %v7024_v40  ;;  %v6049_v31 = vld [vmem:[%s8246_s17 + $0x60] sm:$0xff]  }
 0x362   :  { %5845 = vmatpush3.bf16.msra.mxu1 %v1351_v55  ;;  %5864 = vmatprep.subr.bf16.mxu0 %v6449_v11  ;;  %v6031_v55 = vld [vmem:[%s8242_s13 + $0xd0] sm:$0xff]   ;;  %v6047_v58 = vld [vmem:[%s8246_s17 + $0x68] sm:$0xff]  }
 0x363   :  { %5846 = vmatprep.subr.bf16.mxu1 %v6449_v11  ;;  %v6043_v9 = vld [vmem:[%s8246_s17 + $0x30] sm:$0xff]   ;;  %v6046_v24 = vld [vmem:[%s8280_s27 + $0x28] ss:$16 sps:$4 sm:$0xff]  }
 0x364   :  { %v6048_v40 = vld [vmem:[%s8246_s17 + $0x28] sm:$0xff]  }
 0x365   :  { %5865 = vmatpush3.bf16.msra.mxu0 %v5997_v6  ;;  %v6050_v6 = vld [vmem:[%s8246_s17 + $0x20] sm:$0xff]  }
 0x366   :  { %5847 = vmatpush3.bf16.msra.mxu1 %v1350_v0  ;;  %5866 = vmatprep.subr.bf16.mxu0 %v6449_v11  ;;  %v6044_v0 = vld [vmem:[%s8280_s27 + $0x2c] ss:$16 sps:$4 sm:$0xff]   ;;  %s8281_s27 = sld [smem:[#allocation14_spill]] }
 0x367   :  { %5848 = vmatprep.subr.bf16.mxu1 %v6449_v11 }
 0x369   :  { %5867 = vmatpush3.bf16.msra.mxu0 %v5998_v32  ;;  %v6051_v32 = vld [vmem:[%s8246_s17 + $0x58] sm:$0xff]  }
 0x36a   :  { %5849 = vmatpush3.bf16.msra.mxu1 %v1349_v13  ;;  %5868 = vmatprep.subr.bf16.mxu0 %v6449_v11  ;;  %v2082_v13 = vrot.slane %v595_v8, 2 }
 0x36b   :  { %5850 = vmatprep.subr.bf16.mxu1 %v6449_v11 }
 0x36d   :  { %5869 = vmatpush3.bf16.msra.mxu0 %v5999_v16  ;;  %v6052_v16 = vld [vmem:[%s8246_s17 + $0x18] sm:$0xff]  }
 0x36e   :  { %5851 = vmatpush3.bf16.msra.mxu1 %v1348_v54  ;;  %5870 = vmatprep.subr.bf16.mxu0 %v6449_v11  ;;  %v7313_v54 = vpack.c.bf16 %v2082_v13, %v2082_v13 }
 0x36f   :  { %5406 = vmatprep.subr.bf16.mxu1 %v6004_v19  ;;  %v6055_v19 = vld [vmem:[%s8246_s17 + $0x48] sm:$0xff]  }
 0x371   :  { %5853 = vmatmul.mubr.msk.bf16.vlgmr.msra.gmra.mxu1 %vm908_vm2, %v6973_v38  ;;  %5871 = vmatpush3.bf16.msra.mxu0 %v6000_v44  ;;  %v6451_v38 = vmov 0   ;;  %v6053_v44 = vld [vmem:[%s8246_s17 + $0x50] sm:$0xff]  }
 0x372   :  { %1855 = vmatprep.subr.bf16.mxu0 %v6451_v38  ;;  %5407 = vmatpush3.bf16.msra.mxu1 %v6005_v7  ;;  %v4827_v7 = vld [vmem:[%s8241_s12 + $0x1] ss:$0 sm:$0xff] }
 0x373   :  { %5408 = vmatprep.subr.bf16.mxu1 %v6007_v20  ;;  %1838 = vmatprep.mubr.bf16.mxu1 %v6030_v52  ;;  %v6056_v20 = vld [vmem:[%s8246_s17 + $0x8] sm:$0xff]   ;;  %v6070_v52 = vld [vmem:[%s8248_s19 + $0x10] sm:$0xff]  }
 0x376   :  { %5409 = vmatpush3.bf16.msra.mxu1 %v6008_v12  ;;  %v6057_v12 = vld [vmem:[%s8246_s17 + $0x40] sm:$0xff]  }
 0x377   :  { %5410 = vmatprep.subr.bf16.mxu1 %v6010_v21 }
 0x37a   :  { %5411 = vmatpush3.bf16.msra.mxu1 %v6011_v27  ;;  %v6058_v27 = vld [vmem:[%s8246_s17] sm:$0xff]  }
 0x37b   :  { %5412 = vmatprep.subr.bf16.mxu1 %v6013_v22  ;;  %v6059_v22 = vld [vmem:[%s8248_s19 + $0x78] sm:$0xff]  }
 0x37e   :  { %5413 = vmatpush3.bf16.msra.mxu1 %v6014_v23 }
 0x37f   :  { %5414 = vmatprep.subr.bf16.mxu1 %v6016_v25  ;;  %v6060_v25 = vld [vmem:[%s8248_s19 + $0x38] sm:$0xff]  }
 0x382   :  { %5415 = vmatpush3.bf16.msra.mxu1 %v6017_v29  ;;  %v7356_v29 = vpack.c.bf16 %v595_v8, %v595_v8 }
 0x383   :  { %5416 = vmatprep.subr.bf16.mxu1 %v6019_v30  ;;  %v6061_v30 = vld [vmem:[%s8248_s19 + $0x70] sm:$0xff]  }
 0x386   :  { %5417 = vmatpush3.bf16.msra.mxu1 %v6020_v46 }
 0x387   :  { %5418 = vmatprep.subr.bf16.mxu1 %v6022_v33  ;;  %v6062_v33 = vld [vmem:[%s8248_s19 + $0x30] sm:$0xff]  }
 0x38a   :  { %5419 = vmatpush3.bf16.msra.mxu1 %v6023_v41  ;;  %v6063_v41 = vld [vmem:[%s8248_s19 + $0x68] sm:$0xff]  }
 0x38b   :  { %5420 = vmatprep.subr.bf16.mxu1 %v6025_v35  ;;  %v6065_v35 = vld [vmem:[%s8248_s19 + $0x60] sm:$0xff]  }
 0x38e   :  { %5421 = vmatpush3.bf16.msra.mxu1 %v6026_v42  ;;  %v6066_v42 = vld [vmem:[%s8248_s19 + $0x20] sm:$0xff]  }
 0x38f   :  { %5876 = vmatprep.subr.bf16.mxu1 %v6449_v11 }
 0x391   :  { %1839 = vmatmul.mubr.bf16.vlgmr.msra.gmra.mxu1 %v6028_v4  ;;  %v6069_v4 = vld [vmem:[%s8248_s19 + $0x50] sm:$0xff]  }
 0x392   :  { %1846 = vmatprep.mubr.bf16.mxu1 %v6033_v37  ;;  %v6072_v37 = vld [vmem:[%s8248_s19 + $0x8] sm:$0xff]  }
 0x399   :  { %1847 = vmatmul.mubr.bf16.gmra.mxu1 %v6035_v18  ;;  %v6073_v18 = vld [vmem:[%s8248_s19 + $0x40] sm:$0xff]  }
 0x39a   :  { %5880 = vmatprep.mubr.msk.bf16.mxu1 %vm6450_vm1, %v6449_v11 }
 0x3da   :  { %v7196_v34 = vpop.f32.mrf.mxu1 }
 0x3db   :  { %v7344_v21 = vadd.f32 %v4827_v7, %v7196_v34  ;;  %v6064_v34 = vld [vmem:[%s8248_s19 + $0x28] sm:$0xff]  }
 0x3dc   :  { %v5820_v43 = vpop.f32.mrf.mxu1 }
 0x3dd   :  { %v2446_v23 = vrot.slane %v7344_v21, 2  ;;  %v6067_v43 = vld [vmem:[%s8248_s19 + $0x58] sm:$0xff]  }
 0x3de   :  { %v1044_v59 = vpop.f32.mrf.mxu1 }
 0x3df   :  { %v2451_v46 = vpack.c.bf16 %v2446_v23, %v2446_v23  ;;  %v6068_v59 = vld [vmem:[%s8248_s19 + $0x18] sm:$0xff]  }
 0x3e0   :  { %v5821_v26 = vpop.f32.mrf.mxu1 }
 0x3e1   :  { %v6071_v26 = vld [vmem:[%s8248_s19 + $0x48] sm:$0xff]  }
 0x431   :  { %v1388_v45 = vpop.f32.mrf.mxu1 }
 0x432   :  { %v1394_v49 = vpack.c.bf16 %v1388_v45, %v1388_v45  ;;  %v6074_v45 = vld [vmem:[%s8248_s19] sm:$0xff]  }
 0x433   :  { %v5854_v39 = vpop.f32.mrf.mxu1 }
 0x434   :  { %5873 = vmatmul.mubr.bf16.vlgmr.msra.gmra.mxu0 %v1394_v49 }
 0x435   :  { %1856 = vmatpush1.bf16.msra.mxu0 %v6001_v47  ;;  %v1391_v50 = vpop.f32.mrf.mxu1  ;;  %4925 = vmatprep.mubr.msk.bf16.mxu0 %vm908_vm2, %v6037_v48  ;;  %v2450_v47 = vpack.c.bf16 %v7344_v21, %v7344_v21 }
 0x436   :  { %1857 = vmatprep.subr.bf16.mxu0 %v6451_v38 }
 0x437   :  { %v5855_v15 = vpop.f32.mrf.mxu1 }
 0x439   :  { %1858 = vmatpush1.bf16.msra.mxu0 %v6002_v14 }
 0x43a   :  { %1859 = vmatprep.subr.bf16.mxu0 %v6451_v38 }
 0x43d   :  { %1860 = vmatpush1.bf16.msra.mxu0 %v6003_v28 }
 0x43e   :  { %1861 = vmatprep.subr.bf16.mxu0 %v6451_v38 }
 0x441   :  { %1862 = vmatpush1.bf16.msra.mxu0 %v6006_v53 }
 0x442   :  { %1863 = vmatprep.subr.bf16.mxu0 %v6451_v38 }
 0x445   :  { %1864 = vmatpush1.bf16.msra.mxu0 %v6009_v56 }
 0x446   :  { %1865 = vmatprep.subr.bf16.mxu0 %v6451_v38 }
 0x449   :  { %1866 = vmatpush1.bf16.msra.mxu0 %v6012_v36 }
 0x44a   :  { %1867 = vmatprep.subr.bf16.mxu0 %v6451_v38 }
 0x44d   :  { %1868 = vmatpush1.bf16.msra.mxu0 %v6015_v10 }
 0x44e   :  { %1869 = vmatprep.subr.bf16.mxu0 %v6451_v38 }
 0x451   :  { %1870 = vmatpush1.bf16.msra.mxu0 %v6018_v2  ;;  %v5422_v14 = vpop.f32.mrf.mxu1  ;;  %v4886_v2 = vld [vmem:[%s8243_s14] ss:$0 sm:$0xff] }
 0x452   :  { %1875 = vmatprep.subr.bf16.mxu0 %v6451_v38 }
 0x453   :  { %v5423_v15 = vpop.f32.mrf.mxu1 }
 0x454   :  { %v5424_v36 = vadd.f32 %v5423_v15, %v5422_v14 }
 0x455   :  { %1876 = vmatpush2.bf16.msra.mxu0 %v6021_v60  ;;  %v5425_v28 = vpop.f32.mrf.mxu1 }
 0x456   :  { %1877 = vmatprep.subr.bf16.mxu0 %v6451_v38 }
 0x457   :  { %v5426_v53 = vpop.f32.mrf.mxu1 }
 0x458   :  { %v5427_v60 = vadd.f32 %v5426_v53, %v5425_v28 }
 0x459   :  { %1878 = vmatpush2.bf16.msra.mxu0 %v6024_v61  ;;  %v5428_v56 = vpop.f32.mrf.mxu1  ;;  %v1841_v61 = vadd.f32 %v5424_v36, %v4886_v2 }
 0x45a   :  { %1879 = vmatprep.subr.bf16.mxu0 %v6451_v38 }
 0x45b   :  { %v5429_v10 = vpop.f32.mrf.mxu1 }
 0x45d   :  { %1880 = vmatpush2.bf16.msra.mxu0 %v6027_v62  ;;  %v5431_v62 = vpop.f32.mrf.mxu1 }
 0x45e   :  { %1881 = vmatprep.subr.bf16.mxu0 %v6451_v38 }
 0x461   :  { %1882 = vmatpush2.bf16.msra.mxu0 %v6031_v55 }
 0x462   :  { %1883 = vmatprep.subr.bf16.mxu0 %v6451_v38 }
 0x465   :  { %1884 = vmatpush2.bf16.msra.mxu0 %v6032_v17 }
 0x466   :  { %1885 = vmatprep.subr.bf16.mxu0 %v6451_v38  ;;  %v6054_v38 = vld [vmem:[%s8246_s17 + $0x10] sm:$0xff]   ;;  %s8283_s17 = sld [smem:[#allocation7_spill]] }
 0x469   :  { %1886 = vmatpush2.bf16.msra.mxu0 %v6036_v51 }
 0x46a   :  { %5446 = vmatprep.subr.bf16.mxu0 %v6040_v63  ;;  %v5430_v63 = vadd.f32 %v5429_v10, %v5428_v56 }
 0x46c   :  { %1888 = vmatmul.mubr.bf16.vlgmr.msra.gmra.mxu0 %v6039_v3  ;;  %v1844_v3 = vadd.f32 %v5427_v60, %v4886_v2 }
 0x46d   :  { %5447 = vmatpush3.bf16.msra.mxu0 %v6041_v5  ;;  %4926 = vmatprep.mubr.msk.bf16.mxu0 %vm908_vm2, %v6044_v0  ;;  %v5432_v5 = vpop.f32.mrf.mxu1 }
 0x46e   :  { %5448 = vmatprep.subr.bf16.mxu0 %v6042_v57 }
 0x471   :  { %5449 = vmatpush3.bf16.msra.mxu0 %v6043_v9 }
 0x472   :  { %5450 = vmatprep.subr.bf16.mxu0 %v6047_v58  ;;  %v5433_v58 = vadd.f32 %v5432_v5, %v5431_v62  ;;  %v6078_v5 = vld [vmem:[%s8244_s15 + $0x20] sm:$0xff]  }
 0x474   :  { %1896 = vmatmul.mubr.bf16.gmra.mxu0 %v6046_v24  ;;  %v1849_v24 = vadd.f32 %v5430_v63, %v4886_v2  ;;  %v1497_v63 = vld [vmem:[%s8281_s27] sm:$0x1] }
 0x475   :  { %5451 = vmatpush3.bf16.msra.mxu0 %v6048_v40  ;;  %2253 = vmatprep.mubr.bf16.mxu0 %v7313_v54 }
 0x476   :  { %5452 = vmatprep.subr.bf16.mxu0 %v6049_v31 }
 0x479   :  { %5453 = vmatpush3.bf16.msra.mxu0 %v6050_v6 }
 0x47a   :  { %5454 = vmatprep.subr.bf16.mxu0 %v6051_v32 }
 0x47d   :  { %5455 = vmatpush3.bf16.msra.mxu0 %v6052_v16 }
 0x47e   :  { %5456 = vmatprep.subr.bf16.mxu0 %v6053_v44 }
 0x481   :  { %5457 = vmatpush3.bf16.msra.mxu0 %v6054_v38 }
 0x482   :  { %5458 = vmatprep.subr.bf16.mxu0 %v6055_v19  ;;  %v1852_v19 = vadd.f32 %v5433_v58, %v4886_v2 }
 0x485   :  { %5459 = vmatpush3.bf16.msra.mxu0 %v6056_v20 }
 0x486   :  { %5460 = vmatprep.subr.bf16.mxu0 %v6057_v12 }
 0x489   :  { %5461 = vmatpush3.bf16.msra.mxu0 %v6058_v27 }
 0x48a   :  { %5490 = vmatprep.subr.bf16.mxu0 %v6059_v22 }
 0x48c   :  { %2254 = vmatmul.mubr.bf16.vlgmr.msra.gmra.mxu0 %v7356_v29 }
 0x48d   :  { %5491 = vmatpush3.bf16.msra.mxu0 %v6060_v25  ;;  %2685 = vmatprep.mubr.bf16.mxu0 %v2451_v46 }
 0x48e   :  { %5492 = vmatprep.subr.bf16.mxu0 %v6061_v30 }
 0x491   :  { %5493 = vmatpush3.bf16.msra.mxu0 %v6062_v33 }
 0x492   :  { %5494 = vmatprep.subr.bf16.mxu0 %v6063_v41 }
 0x495   :  { %5495 = vmatpush3.bf16.msra.mxu0 %v6064_v34 }
 0x496   :  { %5496 = vmatprep.subr.bf16.mxu0 %v6065_v35 }
 0x499   :  { %5497 = vmatpush3.bf16.msra.mxu0 %v6066_v42 }
 0x49a   :  { %5498 = vmatprep.subr.bf16.mxu0 %v6067_v43 }
 0x49d   :  { %5499 = vmatpush3.bf16.msra.mxu0 %v6068_v59 }
 0x49e   :  { %5500 = vmatprep.subr.bf16.mxu0 %v6069_v4 }
 0x4a1   :  { %5501 = vmatpush3.bf16.msra.mxu0 %v6070_v52 }
 0x4a2   :  { %5502 = vmatprep.subr.bf16.mxu0 %v6071_v26 }
 0x4a5   :  { %5503 = vmatpush3.bf16.msra.mxu0 %v6072_v37 }
 0x4a6   :  { %5504 = vmatprep.subr.bf16.mxu0 %v6073_v18 }
 0x4a9   :  { %5505 = vmatpush3.bf16.msra.mxu0 %v6074_v45 }
 0x4ac   :  { %2686 = vmatmul.mubr.bf16.vlgmr.msra.gmra.mxu0 %v2450_v47 }
 0x4f4   :  { %v7403_v48 = vpop.f32.mrf.mxu0 }
 0x4f6   :  { %v5874_v49 = vpop.f32.mrf.mxu0 }
 0x4f8   :  { %v1486_v39 = vpop.f32.mrf.mxu0 }
 0x4fa   :  { %v5875_v50 = vpop.f32.mrf.mxu0 }
 0x52c   :  { %v1889_v55 = vpop.f32.mrf.mxu0 }
 0x52d   :  { %v1890_v17 = vadd.f32 %v1889_v55, %v1841_v61 }
 0x52e   :  { %v1891_v51 = vpop.f32.mrf.mxu0 }
 0x52f   :  { %v1904_v1 = vmul.f32 %v1890_v17, %v1890_v17 }
 0x530   :  { %v1892_v0 = vpop.f32.mrf.mxu0 }
 0x531   :  { %v1893_v57 = vadd.f32 %v1892_v0, %v1844_v3  ;;  %v1908_v9 = vmul.f32 %v1904_v1, %v1890_v17  ;;  %v6075_v1 = vld [vmem:[%s8244_s15 + $0x38] sm:$0xff]   ;;  %v6077_v3 = vld [vmem:[%s8244_s15 + $0x28] sm:$0xff]  }
 0x532   :  { %v1894_v8 = vpop.f32.mrf.mxu0 }
 0x533   :  { %v1905_v13 = vmul.f32 %v1893_v57, %v1893_v57  ;;  %v1912_v16 = vmul.f32 0.044715, %v1908_v9  ;;  %v6079_v9 = vld [vmem:[%s8244_s15 + $0x18] sm:$0xff]  }
 0x534   :  { %v1897_v40 = vpop.f32.mrf.mxu0 }
 0x535   :  { %v1909_v31 = vmul.f32 %v1905_v13, %v1893_v57  ;;  %v1898_v6 = vadd.f32 %v1897_v40, %v1849_v24  ;;  %v1916_v23 = vadd.f32 %v1912_v16, %v1890_v17  ;;  %v6080_v24 = vld [vmem:[%s8244_s15 + $0x10] sm:$0xff]   ;;  %v6081_v40 = vld [vmem:[%s8244_s15 + $0x8] sm:$0xff]  }
 0x536   :  { %v1899_v32 = vpop.f32.mrf.mxu0  ;;  %v6109_v16 = vld [vmem:[%s8251_s22 + $0x11c] ss:$20 sps:$4 sm:$0xff]  }
 0x537   :  { %v1913_v44 = vmul.f32 0.044715, %v1909_v31  ;;  %v1906_v38 = vmul.f32 %v1898_v6, %v1898_v6  ;;  %v1920_v34 = vmul.f32 0.7978846, %v1916_v23  ;;  %v6082_v31 = vld [vmem:[%s8244_s15] sm:$0xff]   ;;  %3261 = vmatprep.subr.bf16.mxu0 %v6109_v16  ;;  %v2737_v16 = vstv %s8282_s3 }
 0x538   :  { %v1900_v7 = vpop.f32.mrf.mxu0  ;;  %v6107_v32 = vld [vmem:[%s8251_s22 + $0x118] ss:$20 sps:$4 sm:$0xff]   ;;  %v6139_v23 = vld [vmem:[%s8251_s22 + $0x54] ss:$20 sps:$4 sm:$0xff]  }
 0x539   :  { %v1917_v20 = vadd.f32 %v1913_v44, %v1893_v57  ;;  %v1910_v12 = vmul.f32 %v1906_v38, %v1898_v6  ;;  %v1901_v27 = vadd.f32 %v1900_v7, %v1852_v19  ;;  %v6115_v44 = vld [vmem:[%s8251_s22 + $0xf4] ss:$20 sps:$4 sm:$0xff]   ;;  %3262 = vmatpush1.bf16.msra.mxu0 %v6107_v32  ;;  %v6113_v38 = vld [vmem:[%s8251_s22 + $0xf0] ss:$20 sps:$4 sm:$0xff]   ;;  %v6121_v19 = vld [vmem:[%s8251_s22 + $0xcc] ss:$20 sps:$4 sm:$0xff]  }
 0x53a   :  { %v1902_v22 = vpop.f32.mrf.mxu0  ;;  %3263 = vmatprep.subr.bf16.mxu0 %v6115_v44  ;;  %v6119_v7 = vld [vmem:[%s8251_s22 + $0xc8] ss:$20 sps:$4 sm:$0xff]  }
 0x53b   :  { %v1914_v25 = vmul.f32 0.044715, %v1910_v12  ;;  %v1907_v30 = vmul.f32 %v1901_v27, %v1901_v27  ;;  %v1921_v46 = vmul.f32 0.7978846, %v1917_v20  ;;  %v6127_v20 = vld [vmem:[%s8251_s22 + $0xa4] ss:$20 sps:$4 sm:$0xff]  }
 0x53c   :  { %v6125_v12 = vld [vmem:[%s8251_s22 + $0xa0] ss:$20 sps:$4 sm:$0xff]   ;;  %v6131_v22 = vld [vmem:[%s8251_s22 + $0x78] ss:$20 sps:$4 sm:$0xff]  }
 0x53d   :  { %v1918_v33 = vadd.f32 %v1914_v25, %v1898_v6  ;;  %v1911_v41 = vmul.f32 %v1907_v30, %v1901_v27  ;;  %6419 = vtanh.f32 %v1921_v46  ;;  %3264 = vmatpush1.bf16.msra.mxu0 %v6113_v38  ;;  %v6137_v25 = vld [vmem:[%s8251_s22 + $0x50] ss:$20 sps:$4 sm:$0xff]   ;;  %v6145_v30 = vld [vmem:[%s8251_s22 + $0x2c] ss:$20 sps:$4 sm:$0xff]   ;;  %v6143_v46 = vld [vmem:[%s8251_s22 + $0x28] ss:$20 sps:$4 sm:$0xff]  }
 0x53e   :  { %3265 = vmatprep.subr.bf16.mxu0 %v6121_v19  ;;  %v6105_v44 = vld [vmem:[%s8248_s19 + $0x88] sm:$0xff]   ;;  %v2739_v38 = vld [vmem:[%s8283_s17] sm:$0xff] }
 0x53f   :  { %v1922_v35 = vmul.f32 0.7978846, %v1918_v33  ;;  %v1915_v42 = vmul.f32 0.044715, %v1911_v41  ;;  %v6151_v33 = vld [vmem:[%s8251_s22 + $0x4] ss:$20 sps:$4 sm:$0xff]  }
 0x540   :  { %v6149_v41 = vld [vmem:[%s8251_s22] ss:$20 sps:$4 sm:$0xff]  }
 0x541   :  { %6421 = vtanh.f32 %v1922_v35  ;;  %v1919_v43 = vadd.f32 %v1915_v42, %v1901_v27  ;;  %3266 = vmatpush1.bf16.msra.mxu0 %v6119_v7  ;;  %v6155_v35 = vld [vmem:[%s8251_s22 + $0x258] ss:$20 sps:$4 sm:$0xff]   ;;  %v6163_v42 = vld [vmem:[%s8251_s22 + $0x234] ss:$20 sps:$4 sm:$0xff]  }
 0x542   :  { %6423 = vtanh.f32 %v1920_v34  ;;  %3267 = vmatprep.subr.bf16.mxu0 %v6127_v20  ;;  %v6157_v34 = vld [vmem:[%s8251_s22 + $0x25c] ss:$20 sps:$4 sm:$0xff]   ;;  %v6106_v20 = vld [vmem:[%s8248_s19 + $0x80] sm:$0xff]  }
 0x543   :  { %v1923_v59 = vmul.f32 0.7978846, %v1919_v43  ;;  %v6161_v43 = vld [vmem:[%s8251_s22 + $0x230] ss:$20 sps:$4 sm:$0xff]  }
 0x545   :  { %6425 = vtanh.f32 %v1923_v59  ;;  %3268 = vmatpush1.bf16.msra.mxu0 %v6125_v12  ;;  %v6169_v59 = vld [vmem:[%s8251_s22 + $0x20c] ss:$20 sps:$4 sm:$0xff]  }
 0x54a   :  { %v6420_v52 = vpop.eup %6419 }
 0x54b   :  { %v1929_v39 = vadd.f32 1.0, %v6420_v52  ;;  %v6175_v52 = vld [vmem:[%s8251_s22 + $0x1e4] ss:$20 sps:$4 sm:$0xff]  }
 0x54c   :  { %v5462_v4 = vpop.f32.mrf.mxu0 }
 0x54d   :  { %v1933_v56 = vmul.f32 0.5, %v1929_v39  ;;  %v6193_v39 = vld [vmem:[%s8251_s22 + $0x16c] ss:$20 sps:$4 sm:$0xff]  }
 0x54e   :  { %v6422_v26 = vpop.eup %6421  ;;  %v5463_v37 = vpop.f32.mrf.mxu0 }
 0x54f   :  { %v1930_v18 = vadd.f32 1.0, %v6422_v26  ;;  %v7408_v45 = vadd.f32 %v5463_v37, %v5462_v4  ;;  %v6424_v47 = vpop.eup %6423  ;;  %v1937_v61 = vmul.f32 %v1933_v56, %v1893_v57  ;;  %v6167_v4 = vld [vmem:[%s8251_s22 + $0x208] ss:$20 sps:$4 sm:$0xff]   ;;  %v6173_v26 = vld [vmem:[%s8251_s22 + $0x1e0] ss:$20 sps:$4 sm:$0xff]   ;;  %v2305_v56 = vrot.slane %v7313_v54, 2 }
 0x550   :  { %v5465_v49 = vpop.f32.mrf.mxu0  ;;  %v1928_v15 = vadd.f32 1.0, %v6424_v47  ;;  %v6181_v37 = vld [vmem:[%s8251_s22 + $0x1bc] ss:$20 sps:$4 sm:$0xff]   ;;  %v6187_v47 = vld [vmem:[%s8251_s22 + $0x194] ss:$20 sps:$4 sm:$0xff]  }
 0x551   :  { %v1934_v28 = vmul.f32 0.5, %v1930_v18  ;;  %v6179_v18 = vld [vmem:[%s8251_s22 + $0x1b8] ss:$20 sps:$4 sm:$0xff]   ;;  %v6185_v49 = vld [vmem:[%s8251_s22 + $0x190] ss:$20 sps:$4 sm:$0xff]  }
 0x552   :  { %v6426_v50 = vpop.eup %6425  ;;  %v5466_v14 = vpop.f32.mrf.mxu0  ;;  %v1932_v10 = vmul.f32 0.5, %v1928_v15  ;;  %v6084_v15 = vld [vmem:[%s8247_s18 + $0x38] sm:$0xff]   ;;  %v6088_v54 = vld [vmem:[%s8247_s18 + $0x28] sm:$0xff]  }
 0x553   :  { %v1931_v53 = vadd.f32 1.0, %v6426_v50  ;;  %v1938_v2 = vmul.f32 %v1934_v28, %v1898_v6  ;;  %v6083_v6 = vld [vmem:[%s8247_s18 + $0x78] sm:$0xff]  }
 0x554   :  { %v1936_v55 = vmul.f32 %v1932_v10, %v1890_v17  ;;  %v6076_v17 = vld [vmem:[%s8244_s15 + $0x30] sm:$0xff]   ;;  %v6191_v50 = vld [vmem:[%s8251_s22 + $0x168] ss:$20 sps:$4 sm:$0xff]  }
 0x555   :  { %v1935_v36 = vmul.f32 0.5, %v1931_v53  ;;  %v6085_v53 = vld [vmem:[%s8247_s18 + $0x70] sm:$0xff]  }
 0x556   :  { %v1940_v51 = vpack.c.bf16 %v1937_v61, %v1936_v55  ;;  %v6090_v55 = vld [vmem:[%s8247_s18 + $0x20] sm:$0xff]  }
 0x557   :  { %v1939_v60 = vmul.f32 %v1935_v36, %v1901_v27  ;;  %v6133_v27 = vld [vmem:[%s8251_s22 + $0x7c] ss:$20 sps:$4 sm:$0xff]  }
 0x558   :  { %3269 = vmatprep.subr.bf16.mxu0 %v6133_v27  ;;  %v2448_v27 = vrot.slane %v7344_v21, 4  ;;  %v6199_v21 = vld [vmem:[%s8251_s22 + $0x144] ss:$20 sps:$4 sm:$0xff]  }
 0x559   :  { %v1941_v62 = vpack.c.bf16 %v1939_v60, %v1938_v2  ;;  %3270 = vmatpush1.bf16.msra.mxu0 %v6131_v22  ;;  %v6086_v2 = vld [vmem:[%s8247_s18 + $0x30] sm:$0xff]   ;;  %v6087_v60 = vld [vmem:[%s8247_s18 + $0x68] sm:$0xff]   ;;  %v6112_v22 = vld [vmem:[%s8251_s22 + $0x124] ss:$20 sps:$4 sm:$0xff]  }
 0x55a   :  { %3271 = vmatprep.subr.bf16.mxu0 %v6139_v23 }
 0x55b   :  { %5877 = vmatpush3.bf16.msra.mxu1 %v1941_v62  ;;  %v6089_v62 = vld [vmem:[%s8247_s18 + $0x60] sm:$0xff]  }
 0x55c   :  { %5878 = vmatprep.subr.bf16.mxu1 %v6449_v11 }
 0x55d   :  { %3272 = vmatpush1.bf16.msra.mxu0 %v6137_v25  ;;  %v6110_v25 = vld [vmem:[%s8251_s22 + $0x120] ss:$20 sps:$4 sm:$0xff]  }
 0x55e   :  { %3273 = vmatprep.subr.bf16.mxu0 %v6145_v30 }
 0x55f   :  { %5879 = vmatpush3.bf16.msra.mxu1 %v1940_v51  ;;  %v6091_v51 = vld [vmem:[%s8247_s18 + $0x58] sm:$0xff]  }
 0x560   :  { %5884 = vmatprep.subr.bf16.mxu1 %v6449_v11 }
 0x561   :  { %3274 = vmatpush1.bf16.msra.mxu0 %v6143_v46  ;;  %v2452_v46 = vpack.c.bf16 %v2448_v27, %v2448_v27  ;;  %v6226_v27 = vld [vmem:[%s8250_s21 + $0x30] sm:$0xff]  }
 0x562   :  { %5881 = vmatmul.mubr.msk.bf16.vlgmr.msra.gmra.mxu1 %vm1942_vm3, %v1497_v63  ;;  %3275 = vmatprep.subr.bf16.mxu0 %v6151_v33  ;;  %v6092_v63 = vld [vmem:[%s8247_s18 + $0x18] sm:$0xff]  }
 0x563   :  { %5885 = vmatpush3.bf16.msra.mxu1 %v6075_v1  ;;  %5900 = vmatprep.mubr.msk.bf16.mxu1 %vm6450_vm1, %v6449_v11  ;;  %v6093_v1 = vld [vmem:[%s8247_s18 + $0x50] sm:$0xff]  }
 0x564   :  { %5886 = vmatprep.subr.bf16.mxu1 %v6449_v11  ;;  %v6118_v33 = vld [vmem:[%s8251_s22 + $0xfc] ss:$20 sps:$4 sm:$0xff]  }
 0x565   :  { %3276 = vmatpush1.bf16.msra.mxu0 %v6149_v41 }
 0x566   :  { %3277 = vmatprep.subr.bf16.mxu0 %v6157_v34  ;;  %v6197_v34 = vld [vmem:[%s8251_s22 + $0x140] ss:$20 sps:$4 sm:$0xff]  }
 0x567   :  { %5887 = vmatpush3.bf16.msra.mxu1 %v6076_v17  ;;  %v6094_v17 = vld [vmem:[%s8247_s18 + $0x10] sm:$0xff]  }
 0x568   :  { %5888 = vmatprep.subr.bf16.mxu1 %v6449_v11 }
 0x569   :  { %3278 = vmatpush2.bf16.msra.mxu0 %v6155_v35  ;;  %v6116_v35 = vld [vmem:[%s8251_s22 + $0xf8] ss:$20 sps:$4 sm:$0xff]  }
 0x56a   :  { %3279 = vmatprep.subr.bf16.mxu0 %v6163_v42 }
 0x56b   :  { %5889 = vmatpush3.bf16.msra.mxu1 %v6077_v3  ;;  %v6095_v3 = vld [vmem:[%s8247_s18 + $0x48] sm:$0xff]  }
 0x56c   :  { %v5506_v0 = vpop.f32.mrf.mxu0  ;;  %5890 = vmatprep.subr.bf16.mxu1 %v6449_v11 }
 0x56d   :  { %3280 = vmatpush2.bf16.msra.mxu0 %v6161_v43  ;;  %v6124_v43 = vld [vmem:[%s8251_s22 + $0xd4] ss:$20 sps:$4 sm:$0xff]  }
 0x56e   :  { %v5507_v57 = vpop.f32.mrf.mxu0  ;;  %3281 = vmatprep.subr.bf16.mxu0 %v6169_v59 }
 0x56f   :  { %v7432_v8 = vadd.f32 %v5507_v57, %v5506_v0  ;;  %5891 = vmatpush3.bf16.msra.mxu1 %v6078_v5  ;;  %v6096_v5 = vld [vmem:[%s8247_s18 + $0x8] sm:$0xff]   ;;  %v6097_v0 = vld [vmem:[%s8247_s18 + $0x40] sm:$0xff]  }
 0x570   :  { %v5509_v58 = vpop.f32.mrf.mxu0  ;;  %5892 = vmatprep.subr.bf16.mxu1 %v6449_v11  ;;  %v6098_v57 = vld [vmem:[%s8247_s18] sm:$0xff]  }
 0x571   :  { %3282 = vmatpush2.bf16.msra.mxu0 %v6167_v4  ;;  %v2304_v58 = vrot.slane %v7356_v29, 2  ;;  %v6102_v29 = vld [vmem:[%s8248_s19 + $0xa0] sm:$0xff]   ;;  %v6203_v4 = vld [vmem:[%s8251_s22 + $0x268] ss:$20 sps:$4 sm:$0xff]  }
 0x572   :  { %v5510_v13 = vpop.f32.mrf.mxu0  ;;  %3283 = vmatprep.subr.bf16.mxu0 %v6175_v52  ;;  %v6122_v52 = vld [vmem:[%s8251_s22 + $0xd0] ss:$20 sps:$4 sm:$0xff]  }
 0x573   :  { %5893 = vmatpush3.bf16.msra.mxu1 %v6079_v9  ;;  %v6099_v9 = vld [vmem:[%s8248_s19 + $0xb8] sm:$0xff]   ;;  %v6100_v13 = vld [vmem:[%s8248_s19 + $0xb0] sm:$0xff]  }
 0x574   :  { %5894 = vmatprep.subr.bf16.mxu1 %v6449_v11 }
 0x575   :  { %3284 = vmatpush2.bf16.msra.mxu0 %v6173_v26  ;;  %v6130_v26 = vld [vmem:[%s8251_s22 + $0xac] ss:$20 sps:$4 sm:$0xff]  }
 0x576   :  { %3285 = vmatprep.subr.bf16.mxu0 %v6181_v37  ;;  %v6128_v37 = vld [vmem:[%s8251_s22 + $0xa8] ss:$20 sps:$4 sm:$0xff]  }
 0x577   :  { %5895 = vmatpush3.bf16.msra.mxu1 %v6080_v24  ;;  %v6101_v24 = vld [vmem:[%s8248_s19 + $0xa8] sm:$0xff]  }
 0x578   :  { %5896 = vmatprep.subr.bf16.mxu1 %v6449_v11 }
 0x579   :  { %3286 = vmatpush2.bf16.msra.mxu0 %v6179_v18  ;;  %v6136_v18 = vld [vmem:[%s8251_s22 + $0x84] ss:$20 sps:$4 sm:$0xff]  }
 0x57a   :  { %3287 = vmatprep.subr.bf16.mxu0 %v6187_v47  ;;  %v6134_v47 = vld [vmem:[%s8251_s22 + $0x80] ss:$20 sps:$4 sm:$0xff]  }
 0x57b   :  { %5897 = vmatpush3.bf16.msra.mxu1 %v6081_v40  ;;  %v6103_v40 = vld [vmem:[%s8248_s19 + $0x98] sm:$0xff]  }
 0x57c   :  { %5898 = vmatprep.subr.bf16.mxu1 %v6449_v11 }
 0x57d   :  { %3288 = vmatpush2.bf16.msra.mxu0 %v6185_v49  ;;  %v6142_v49 = vld [vmem:[%s8251_s22 + $0x5c] ss:$20 sps:$4 sm:$0xff]  }
 0x57e   :  { %3289 = vmatprep.subr.bf16.mxu0 %v6193_v39  ;;  %v6140_v39 = vld [vmem:[%s8251_s22 + $0x58] ss:$20 sps:$4 sm:$0xff]  }
 0x57f   :  { %5899 = vmatpush3.bf16.msra.mxu1 %v6082_v31  ;;  %v6104_v31 = vld [vmem:[%s8248_s19 + $0x90] sm:$0xff]   ;;  %s6452_s19 = smov [#allocation3]  }
 0x580   :  { %5468 = vmatprep.subr.bf16.mxu1 %v6083_v6  ;;  %v2735_v6 = vlaneseq }
 0x581   :  { %3290 = vmatpush2.bf16.msra.mxu0 %v6191_v50  ;;  %v6148_v50 = vld [vmem:[%s8251_s22 + $0x34] ss:$20 sps:$4 sm:$0xff]  }
 0x582   :  { %v7616_v32 = vshrl.u32 %v2735_v6, 7  ;;  %3291 = vmatprep.subr.bf16.mxu0 %v6199_v21  ;;  %v6211_v21 = vld [vmem:[%s8251_s22 + $0x1c8] ss:$20 sps:$4 sm:$0xff]  }
 0x584   :  { %vm2738_vm4 = vcmp.eq.s32.totalorder %v7616_v32, %v2737_v16 }
 0x585   :  { %v2740_v19 = vsel %vm2738_vm4, %v2739_v38, 0.0  ;;  %3292 = vmatpush2.bf16.msra.mxu0 %v6197_v34  ;;  %v6222_v38 = vld [vmem:[%s8250_s21 + $0x38] sm:$0xff]  }
 0x586   :  { %v2741_v7 = vrot.slane %v2740_v19, 4  ;;  %5521 = vmatprep.subr.bf16.mxu0 %v6203_v4  ;;  %v6236_v34 = vld [vmem:[%s8250_s21 + $0x58] sm:$0xff]   ;;  %v6214_v4 = vld [vmem:[%s8251_s22 + $0x60] ss:$20 sps:$4 sm:$0xff]  }
 0x588   :  { %v2742_v12 = vadd.f32 %v2741_v7, %v2740_v19  ;;  %v6224_v19 = vld [vmem:[%s8250_s21 + $0x70] sm:$0xff]  }
 0x58a   :  { %v2743_v23 = vrot.slane %v2742_v12, 2 }
 0x58c   :  { %v2744_v30 = vadd.f32 %v2743_v23, %v2742_v12  ;;  %v6207_v12 = vld [vmem:[%s8251_s22 + $0x218] ss:$20 sps:$4 sm:$0xff]  }
 0x58d   :  { %v6208_v23 = vld [vmem:[%s8251_s22 + $0xd8] ss:$20 sps:$4 sm:$0xff]  }
 0x58e   :  { %v2745_v41 = vrot.slane %v2744_v30, 1 }
 0x590   :  { %v2746_v42 = vadd.f32 %v2745_v41, %v2744_v30  ;;  %v6230_v30 = vld [vmem:[%s8250_s21 + $0x28] sm:$0xff]   ;;  %v6234_v41 = vld [vmem:[%s8250_s21 + $0x20] sm:$0xff]  }
 0x592   :  { %v7655_v59 = vpack.c.bf16 %v2746_v42, %v2746_v42  ;;  %v6213_v42 = vld [vmem:[%s8251_s22 + $0x1a0] ss:$20 sps:$4 sm:$0xff]  }
 0x594   :  { %3293 = vmatprep.mubr.bf16.mxu0 %v7655_v59 }
 0x622   :  { %v1980_v14 = vpop.f32.mrf.mxu1 }
 0x623   :  { %v1986_v28 = vpack.c.bf16 %v1980_v14, %v1980_v14  ;;  %v6146_v14 = vld [vmem:[%s8251_s22 + $0x30] ss:$20 sps:$4 sm:$0xff]  }
 0x624   :  { %v5882_v36 = vpop.f32.mrf.mxu1 }
 0x625   :  { %5901 = vmatmul.mubr.bf16.vlgmr.msra.gmra.mxu1 %v1986_v28  ;;  %v6152_v28 = vld [vmem:[%s8251_s22 + $0x8] ss:$20 sps:$4 sm:$0xff]  }
 0x626   :  { %5469 = vmatpush3.bf16.msra.mxu1 %v6084_v15  ;;  %2436 = vmatprep.mubr.bf16.mxu1 %v2305_v56  ;;  %v1983_v10 = vpop.f32.mrf.mxu1  ;;  %v6154_v15 = vld [vmem:[%s8251_s22 + $0xc] ss:$20 sps:$4 sm:$0xff]   ;;  %v6166_v36 = vld [vmem:[%s8251_s22 + $0x23c] ss:$20 sps:$4 sm:$0xff]  }
 0x627   :  { %5470 = vmatprep.subr.bf16.mxu1 %v6085_v53  ;;  %v6160_v53 = vld [vmem:[%s8251_s22 + $0x264] ss:$20 sps:$4 sm:$0xff]   ;;  %v6158_v56 = vld [vmem:[%s8251_s22 + $0x260] ss:$20 sps:$4 sm:$0xff]  }
 0x628   :  { %v5883_v61 = vpop.f32.mrf.mxu1  ;;  %v6164_v10 = vld [vmem:[%s8251_s22 + $0x238] ss:$20 sps:$4 sm:$0xff]  }
 0x629   :  { %v6178_v61 = vld [vmem:[%s8251_s22 + $0x1ec] ss:$20 sps:$4 sm:$0xff]  }
 0x62a   :  { %5471 = vmatpush3.bf16.msra.mxu1 %v6086_v2  ;;  %v6172_v2 = vld [vmem:[%s8251_s22 + $0x214] ss:$20 sps:$4 sm:$0xff]  }
 0x62b   :  { %5472 = vmatprep.subr.bf16.mxu1 %v6087_v60  ;;  %v6170_v60 = vld [vmem:[%s8251_s22 + $0x210] ss:$20 sps:$4 sm:$0xff]  }
 0x62e   :  { %5473 = vmatpush3.bf16.msra.mxu1 %v6088_v54  ;;  %v6176_v54 = vld [vmem:[%s8251_s22 + $0x1e8] ss:$20 sps:$4 sm:$0xff]  }
 0x62f   :  { %5474 = vmatprep.subr.bf16.mxu1 %v6089_v62  ;;  %v6184_v62 = vld [vmem:[%s8251_s22 + $0x1c4] ss:$20 sps:$4 sm:$0xff]  }
 0x632   :  { %5475 = vmatpush3.bf16.msra.mxu1 %v6090_v55  ;;  %v6182_v55 = vld [vmem:[%s8251_s22 + $0x1c0] ss:$20 sps:$4 sm:$0xff]  }
 0x633   :  { %5476 = vmatprep.subr.bf16.mxu1 %v6091_v51  ;;  %v6190_v51 = vld [vmem:[%s8251_s22 + $0x19c] ss:$20 sps:$4 sm:$0xff]  }
 0x636   :  { %5477 = vmatpush3.bf16.msra.mxu1 %v6092_v63  ;;  %v6188_v63 = vld [vmem:[%s8251_s22 + $0x198] ss:$20 sps:$4 sm:$0xff]  }
 0x637   :  { %5478 = vmatprep.subr.bf16.mxu1 %v6093_v1  ;;  %v6196_v1 = vld [vmem:[%s8251_s22 + $0x174] ss:$20 sps:$4 sm:$0xff]  }
 0x63a   :  { %5479 = vmatpush3.bf16.msra.mxu1 %v6094_v17  ;;  %v6194_v17 = vld [vmem:[%s8251_s22 + $0x170] ss:$20 sps:$4 sm:$0xff]  }
 0x63b   :  { %5480 = vmatprep.subr.bf16.mxu1 %v6095_v3  ;;  %v6202_v3 = vld [vmem:[%s8251_s22 + $0x14c] ss:$20 sps:$4 sm:$0xff]  }
 0x63e   :  { %5481 = vmatpush3.bf16.msra.mxu1 %v6096_v5  ;;  %v6200_v5 = vld [vmem:[%s8251_s22 + $0x148] ss:$20 sps:$4 sm:$0xff]  }
 0x63f   :  { %5482 = vmatprep.subr.bf16.mxu1 %v6097_v0  ;;  %v6220_v0 = vld [vmem:[%s8250_s21 + $0x78] sm:$0xff]  }
 0x642   :  { %5483 = vmatpush3.bf16.msra.mxu1 %v6098_v57  ;;  %v4877_v57 = vld [vmem:[%s8241_s12 + $0x2] ss:$0 sm:$0xff] }
 0x643   :  { %5904 = vmatprep.subr.bf16.mxu1 %v6449_v11 }
 0x645   :  { %2437 = vmatmul.mubr.bf16.vlgmr.msra.gmra.mxu1 %v2304_v58  ;;  %v4928_v58 = vld [vmem:[%s8245_s16] ss:$0 sm:$0xff] }
 0x646   :  { %5905 = vmatpush3.bf16.msra.mxu1 %v6099_v9  ;;  %5920 = vmatprep.mubr.msk.bf16.mxu1 %vm6450_vm1, %v6449_v11  ;;  %v7750_v9 = vadd.f32 %v4877_v57, %v7403_v48  ;;  %v6205_v48 = vld [vmem:[%s8251_s22 + $0x240] ss:$20 sps:$4 sm:$0xff]  }
 0x647   :  { %5906 = vmatprep.subr.bf16.mxu1 %v6449_v11  ;;  %v4937_v57 = vld [vmem:[%s8249_s20] ss:$0 sm:$0xff] }
 0x64a   :  { %5907 = vmatpush3.bf16.msra.mxu1 %v6100_v13 }
 0x64b   :  { %5908 = vmatprep.subr.bf16.mxu1 %v6449_v11 }
 0x64e   :  { %5909 = vmatpush3.bf16.msra.mxu1 %v6101_v24  ;;  %v3384_v24 = vrot.slane %v7750_v9, 2 }
 0x64f   :  { %5910 = vmatprep.subr.bf16.mxu1 %v6449_v11 }
 0x650   :  { %v3387_v16 = vpack.c.bf16 %v3384_v24, %v3384_v24  ;;  %v6247_v24 = vld [vmem:[%s8250_s21 + $0xc0] sm:$0xff]  }
 0x652   :  { %5911 = vmatpush3.bf16.msra.mxu1 %v6102_v29 }
 0x653   :  { %5912 = vmatprep.subr.bf16.mxu1 %v6449_v11 }
 0x656   :  { %5913 = vmatpush3.bf16.msra.mxu1 %v6103_v40 }
 0x657   :  { %5914 = vmatprep.subr.bf16.mxu1 %v6449_v11 }
 0x65a   :  { %5915 = vmatpush3.bf16.msra.mxu1 %v6104_v31  ;;  %v6204_v31 = vld [vmem:[%s8251_s22 + $0x128] ss:$20 sps:$4 sm:$0xff]  }
 0x65b   :  { %5916 = vmatprep.subr.bf16.mxu1 %v6449_v11 }
 0x65e   :  { %5917 = vmatpush3.bf16.msra.mxu1 %v6105_v44 }
 0x65f   :  { %5918 = vmatprep.subr.bf16.mxu1 %v6449_v11 }
 0x662   :  { %5919 = vmatpush3.bf16.msra.mxu1 %v6106_v20  ;;  %v6206_v20 = vld [vmem:[%s8251_s22 + $0x100] ss:$20 sps:$4 sm:$0xff]  }
 0x663   :  { %3302 = vmatprep.subr.bf16.mxu1 %v6112_v22  ;;  %v6228_v22 = vld [vmem:[%s8250_s21 + $0x68] sm:$0xff]  }
 0x665   :  { %5921 = vmatmul.mubr.bf16.vlgmr.msra.gmra.mxu1 %v2452_v46  ;;  %v6232_v46 = vld [vmem:[%s8250_s21 + $0x60] sm:$0xff]  }
 0x666   :  { %3303 = vmatpush1.bf16.msra.mxu1 %v6110_v25  ;;  %3334 = vmatprep.mubr.bf16.mxu1 %v7655_v59  ;;  %v6209_v25 = vld [vmem:[%s8251_s22 + $0x1f0] ss:$20 sps:$4 sm:$0xff]  }
 0x667   :  { %3304 = vmatprep.subr.bf16.mxu1 %v6118_v33  ;;  %v6210_v33 = vld [vmem:[%s8251_s22 + $0xb0] ss:$20 sps:$4 sm:$0xff]  }
 0x66a   :  { %3305 = vmatpush1.bf16.msra.mxu1 %v6116_v35  ;;  %v6212_v35 = vld [vmem:[%s8251_s22 + $0x88] ss:$20 sps:$4 sm:$0xff]  }
 0x66b   :  { %3306 = vmatprep.subr.bf16.mxu1 %v6124_v43  ;;  %v6238_v43 = vld [vmem:[%s8250_s21 + $0x18] sm:$0xff]  }
 0x66e   :  { %3307 = vmatpush1.bf16.msra.mxu1 %v6122_v52  ;;  %v6215_v52 = vld [vmem:[%s8251_s22 + $0x178] ss:$20 sps:$4 sm:$0xff]  }
 0x66f   :  { %3308 = vmatprep.subr.bf16.mxu1 %v6130_v26  ;;  %v6242_v26 = vld [vmem:[%s8250_s21 + $0x10] sm:$0xff]  }
 0x672   :  { %3309 = vmatpush1.bf16.msra.mxu1 %v6128_v37  ;;  %v6244_v37 = vld [vmem:[%s8250_s21 + $0x48] sm:$0xff]  }
 0x673   :  { %3310 = vmatprep.subr.bf16.mxu1 %v6136_v18  ;;  %v6216_v18 = vld [vmem:[%s8251_s22 + $0x38] ss:$20 sps:$4 sm:$0xff]  }
 0x676   :  { %3311 = vmatpush1.bf16.msra.mxu1 %v6134_v47  ;;  %v6217_v47 = vld [vmem:[%s8251_s22 + $0x150] ss:$20 sps:$4 sm:$0xff]  }
 0x677   :  { %3312 = vmatprep.subr.bf16.mxu1 %v6142_v49  ;;  %v6246_v49 = vld [vmem:[%s8250_s21 + $0x8] sm:$0xff]  }
 0x67a   :  { %3313 = vmatpush1.bf16.msra.mxu1 %v6140_v39  ;;  %v6248_v39 = vld [vmem:[%s8250_s21 + $0x40] sm:$0xff]  }
 0x67b   :  { %3314 = vmatprep.subr.bf16.mxu1 %v6148_v50  ;;  %v6218_v50 = vld [vmem:[%s8251_s22 + $0x10] ss:$20 sps:$4 sm:$0xff]  }
 0x67e   :  { %3315 = vmatpush1.bf16.msra.mxu1 %v6146_v14  ;;  %v6219_v14 = vld [vmem:[%s8250_s21 + $0xf8] sm:$0xff]  }
 0x67f   :  { %3316 = vmatprep.subr.bf16.mxu1 %v6154_v15 }
 0x682   :  { %3317 = vmatpush1.bf16.msra.mxu1 %v6152_v28  ;;  %v6250_v28 = vld [vmem:[%s8250_s21] sm:$0xff]  }
 0x683   :  { %3318 = vmatprep.subr.bf16.mxu1 %v6160_v53  ;;  %v6252_v53 = vld [vmem:[%s8250_s21 + $0x178] sm:$0xff]  }
 0x686   :  { %3319 = vmatpush2.bf16.msra.mxu1 %v6158_v56 }
 0x687   :  { %3320 = vmatprep.subr.bf16.mxu1 %v6166_v36  ;;  %v6221_v36 = vld [vmem:[%s8250_s21 + $0xb8] sm:$0xff]  }
 0x68a   :  { %3321 = vmatpush2.bf16.msra.mxu1 %v6164_v10  ;;  %v6223_v10 = vld [vmem:[%s8250_s21 + $0xf0] sm:$0xff]  }
 0x68b   :  { %3322 = vmatprep.subr.bf16.mxu1 %v6172_v2 }
 0x68e   :  { %3323 = vmatpush2.bf16.msra.mxu1 %v6170_v60  ;;  %v7869_v60 = vpack.c.bf16 %v7750_v9, %v7750_v9 }
 0x68f   :  { %3324 = vmatprep.subr.bf16.mxu1 %v6178_v61 }
 0x692   :  { %3325 = vmatpush2.bf16.msra.mxu1 %v6176_v54  ;;  %v6225_v54 = vld [vmem:[%s8250_s21 + $0xb0] sm:$0xff]  }
 0x693   :  { %3326 = vmatprep.subr.bf16.mxu1 %v6184_v62  ;;  %v6227_v62 = vld [vmem:[%s8250_s21 + $0xe8] sm:$0xff]  }
 0x696   :  { %3327 = vmatpush2.bf16.msra.mxu1 %v6182_v55  ;;  %v6229_v55 = vld [vmem:[%s8250_s21 + $0xa8] sm:$0xff]  }
 0x697   :  { %3328 = vmatprep.subr.bf16.mxu1 %v6190_v51  ;;  %v6231_v51 = vld [vmem:[%s8250_s21 + $0xe0] sm:$0xff]  }
 0x69a   :  { %3329 = vmatpush2.bf16.msra.mxu1 %v6188_v63  ;;  %v6233_v63 = vld [vmem:[%s8250_s21 + $0xa0] sm:$0xff]  }
 0x69b   :  { %3330 = vmatprep.subr.bf16.mxu1 %v6196_v1  ;;  %v6235_v1 = vld [vmem:[%s8250_s21 + $0xd8] sm:$0xff]  }
 0x69e   :  { %3331 = vmatpush2.bf16.msra.mxu1 %v6194_v17  ;;  %v6237_v17 = vld [vmem:[%s8250_s21 + $0x98] sm:$0xff]  }
 0x69f   :  { %3332 = vmatprep.subr.bf16.mxu1 %v6202_v3  ;;  %v6239_v3 = vld [vmem:[%s8250_s21 + $0xd0] sm:$0xff]  }
 0x6a2   :  { %3333 = vmatpush2.bf16.msra.mxu1 %v6200_v5  ;;  %v6241_v5 = vld [vmem:[%s8250_s21 + $0x90] sm:$0xff]  }
 0x6a3   :  { %5543 = vmatprep.subr.bf16.mxu1 %v6220_v0  ;;  %v6243_v0 = vld [vmem:[%s8250_s21 + $0xc8] sm:$0xff]  }
 0x6e5   :  { %v2075_v13 = vpop.f32.mrf.mxu1 }
 0x6e6   :  { %v2076_v29 = vadd.f32 %v4928_v58, %v2075_v13  ;;  %v6245_v58 = vld [vmem:[%s8250_s21 + $0x88] sm:$0xff]   ;;  %v2256_v13 = vadd.f32 %v7408_v45, %v4937_v57  ;;  %v6251_v45 = vld [vmem:[%s8250_s21 + $0x1f8] sm:$0xff]  }
 0x6e7   :  { %v5902_v40 = vpop.f32.mrf.mxu1  ;;  %v6287_v57 = vld [vmem:[%s8250_s21 + $0x268] sm:$0xff]  }
 0x6e8   :  { %v7759_v6 = vpack.c.bf16 %v2076_v29, %v2076_v29  ;;  %v4973_v29 = vld [vmem:[%s8249_s20 + $0x2] ss:$0 sm:$0xff] }
 0x6e9   :  { %v2078_v44 = vpop.f32.mrf.mxu1  ;;  %v6249_v40 = vld [vmem:[%s8250_s21 + $0x80] sm:$0xff]  }
 0x6ea   :  { %3294 = vmatmul.mubr.bf16.vlgmr.msra.gmra.mxu0 %v7759_v6  ;;  %3335 = vmatmul.mubr.bf16.vlgmr.msra.gmra.mxu1 %v7759_v6 }
 0x6eb   :  { %5522 = vmatpush3.bf16.msra.mxu0 %v6204_v31  ;;  %3548 = vmatprep.mubr.bf16.mxu1 %v3387_v16  ;;  %v5903_v7 = vpop.f32.mrf.mxu1  ;;  %v2261_v31 = vmax.f32 %v2256_v13, 0.0  ;;  %v6300_v13 = vld [vmem:[%s8253_s24 + $0x38] sm:$0xff]  }
 0x6ec   :  { %5523 = vmatprep.subr.bf16.mxu0 %v6205_v48  ;;  %3375 = vmatprep.mubr.bf16.mxu0 %v7655_v59  ;;  %v6240_v59 = vld [vmem:[%s8250_s21 + $0x50] sm:$0xff]  }
 0x6ed   :  { %5544 = vmatpush3.bf16.msra.mxu1 %v6222_v38  ;;  %v6253_v38 = vld [vmem:[%s8250_s21 + $0x1b8] sm:$0xff]   ;;  %v3556_v7 = vpack.c.bf16 %v2261_v31, %v2261_v31  ;;  %v6302_v31 = vld [vmem:[%s8253_s24 + $0x30] sm:$0xff]  }
 0x6ee   :  { %5545 = vmatprep.subr.bf16.mxu1 %v6224_v19  ;;  %v3727_v19 = vrot.slane %v7750_v9, 4 }
 0x6ef   :  { %5524 = vmatpush3.bf16.msra.mxu0 %v6206_v20 }
 0x6f0   :  { %5525 = vmatprep.subr.bf16.mxu0 %v6207_v12  ;;  %v3730_v9 = vpack.c.bf16 %v3727_v19, %v3727_v19  ;;  %v6293_v19 = vld [vmem:[%s8250_s21 + $0x250] sm:$0xff]  }
 0x6f1   :  { %5546 = vmatpush3.bf16.msra.mxu1 %v6226_v27  ;;  %v6254_v27 = vld [vmem:[%s8250_s21 + $0x138] sm:$0xff]  }
 0x6f2   :  { %5547 = vmatprep.subr.bf16.mxu1 %v6228_v22 }
 0x6f3   :  { %5526 = vmatpush3.bf16.msra.mxu0 %v6208_v23  ;;  %v6256_v23 = vld [vmem:[%s8250_s21 + $0x170] sm:$0xff]  }
 0x6f4   :  { %5527 = vmatprep.subr.bf16.mxu0 %v6209_v25 }
 0x6f5   :  { %5548 = vmatpush3.bf16.msra.mxu1 %v6230_v30  ;;  %v6257_v30 = vld [vmem:[%s8250_s21 + $0x1b0] sm:$0xff]  }
 0x6f6   :  { %5549 = vmatprep.subr.bf16.mxu1 %v6232_v46  ;;  %v6259_v46 = vld [vmem:[%s8250_s21 + $0x1e8] sm:$0xff]  }
 0x6f7   :  { %5528 = vmatpush3.bf16.msra.mxu0 %v6210_v33  ;;  %v6258_v33 = vld [vmem:[%s8250_s21 + $0x130] sm:$0xff]  }
 0x6f8   :  { %5529 = vmatprep.subr.bf16.mxu0 %v6211_v21  ;;  %v6260_v21 = vld [vmem:[%s8250_s21 + $0x168] sm:$0xff]  }
 0x6f9   :  { %5550 = vmatpush3.bf16.msra.mxu1 %v6234_v41  ;;  %v6261_v41 = vld [vmem:[%s8250_s21 + $0x1a8] sm:$0xff]  }
 0x6fa   :  { %5551 = vmatprep.subr.bf16.mxu1 %v6236_v34  ;;  %v6263_v34 = vld [vmem:[%s8250_s21 + $0x1e0] sm:$0xff]  }
 0x6fb   :  { %5530 = vmatpush3.bf16.msra.mxu0 %v6212_v35  ;;  %v6262_v35 = vld [vmem:[%s8250_s21 + $0x128] sm:$0xff]  }
 0x6fc   :  { %5531 = vmatprep.subr.bf16.mxu0 %v6213_v42  ;;  %v6264_v42 = vld [vmem:[%s8250_s21 + $0x160] sm:$0xff]  }
 0x6fd   :  { %5552 = vmatpush3.bf16.msra.mxu1 %v6238_v43  ;;  %v6265_v43 = vld [vmem:[%s8250_s21 + $0x1a0] sm:$0xff]  }
 0x6fe   :  { %5553 = vmatprep.subr.bf16.mxu1 %v6240_v59  ;;  %v6267_v59 = vld [vmem:[%s8250_s21 + $0x1d8] sm:$0xff]  }
 0x6ff   :  { %5532 = vmatpush3.bf16.msra.mxu0 %v6214_v4  ;;  %v6266_v4 = vld [vmem:[%s8250_s21 + $0x120] sm:$0xff]  }
 0x700   :  { %5533 = vmatprep.subr.bf16.mxu0 %v6215_v52  ;;  %v6268_v52 = vld [vmem:[%s8250_s21 + $0x158] sm:$0xff]  }
 0x701   :  { %5554 = vmatpush3.bf16.msra.mxu1 %v6242_v26 }
 0x702   :  { %5555 = vmatprep.subr.bf16.mxu1 %v6244_v37  ;;  %v6269_v37 = vld [vmem:[%s8250_s21 + $0x198] sm:$0xff]  }
 0x703   :  { %5534 = vmatpush3.bf16.msra.mxu0 %v6216_v18  ;;  %v4955_v18 = vld [vmem:[%s8249_s20 + $0x1] ss:$0 sm:$0xff]  ;;  %s4749_s20 = sshll.u32 %s6452_s19, 4  ;;  %s4750_s20 = int_to_ptr.vmem [resolvable:$true] %s4749_s20 }
 0x704   :  { %5535 = vmatprep.subr.bf16.mxu0 %v6217_v47  ;;  %v6271_v47 = vld [vmem:[%s8250_s21 + $0x1d0] sm:$0xff]   ;;  %s6427_s28 = scalar_lea.vmem %s4750_s20, 32  ;;  %p6432_p1 = scmp.lt.s32.totalorder %s4750_s20, %s4750_s20 }
 0x705   :  { %v7851_v15 = vpop.f32.mrf.mxu1  ;;  %5556 = vmatpush3.bf16.msra.mxu1 %v6246_v49  ;;  %v6270_v49 = vld [vmem:[%s8250_s21 + $0x118] sm:$0xff]   ;;  %p6428_p0 = scmp.ne.s32.totalorder %s4750_s20, %s6427_s28  ;;  %p6433_p2 = scmp.lt.s32.totalorder %s6427_s28, %s6427_s28 }
 0x706   :  { %5557 = vmatprep.subr.bf16.mxu1 %v6248_v39  ;;  %v6272_v39 = vld [vmem:[%s8250_s21 + $0x150] sm:$0xff]  }
 0x707   :  { %v7859_v56 = vpop.f32.mrf.mxu1  ;;  %5536 = vmatpush3.bf16.msra.mxu0 %v6218_v50  ;;  %p6434_p3 = por %p6433_p2, %p6432_p1 }
 0x708   :  { %5565 = vmatprep.subr.bf16.mxu0 %v6219_v14  ;;  %v5486_v26 = vadd.f32 %v7859_v56, %v7851_v15  ;;  %v6273_v14 = vld [vmem:[%s8250_s21 + $0x190] sm:$0xff]   ;;  %v6275_v15 = vld [vmem:[%s8250_s21 + $0x1c8] sm:$0xff]  }
 0x709   :  { %v5487_v2 = vpop.f32.mrf.mxu1  ;;  %5558 = vmatpush3.bf16.msra.mxu1 %v6250_v28  ;;  %v6274_v28 = vld [vmem:[%s8250_s21 + $0x110] sm:$0xff]   ;;  %p6435_p4 = pnand %p6434_p3, %p6428_p0 }
 0x70a   :  { %3376 = vmatmul.mubr.bf16.vlgmr.msra.gmra.mxu0 %v7759_v6  ;;  %5587 = vmatprep.subr.bf16.mxu1 %v6252_v53  ;;  %v2688_v6 = vadd.f32 %v7432_v8, %v4973_v29  ;;  %v6255_v8 = vld [vmem:[%s8250_s21 + $0x1f0] sm:$0xff]   ;;  %v2439_v50 = vadd.f32 %v5486_v26, %v4955_v18  ;;  %v6276_v53 = vld [vmem:[%s8250_s21 + $0x148] sm:$0xff]   ;;  %v6322_v26 = vld [vmem:[%s8253_s24 + $0xa0] sm:$0xff]  }
 0x70b   :  { %v5488_v61 = vpop.f32.mrf.mxu1  ;;  %5566 = vmatpush3.bf16.msra.mxu0 %v6221_v36  ;;  %3719 = vmatprep.mubr.bf16.mxu0 %v7869_v60  ;;  %v6277_v36 = vld [vmem:[%s8250_s21 + $0x188] sm:$0xff]   ;;  %v6324_v18 = vld [vmem:[%s8253_s24 + $0x98] sm:$0xff]  }
 0x70c   :  { %5567 = vmatprep.subr.bf16.mxu0 %v6223_v10  ;;  %v2444_v56 = vmax.f32 %v2439_v50, 0.0  ;;  %v6279_v10 = vld [vmem:[%s8250_s21 + $0x1c0] sm:$0xff]   ;;  %v6278_v2 = vld [vmem:[%s8250_s21 + $0x108] sm:$0xff]  }
 0x70d   :  { %v6280_v61 = vld [vmem:[%s8250_s21 + $0x140] sm:$0xff]   ;;  %v6288_v29 = vld [vmem:[%s8250_s21 + $0x228] sm:$0xff]  }
 0x70e   :  { %v6328_v50 = vld [vmem:[%s8253_s24 + $0x88] sm:$0xff]  }
 0x70f   :  { %5568 = vmatpush3.bf16.msra.mxu0 %v6225_v54  ;;  %v6281_v54 = vld [vmem:[%s8250_s21 + $0x180] sm:$0xff]  }
 0x710   :  { %5569 = vmatprep.subr.bf16.mxu0 %v6227_v62  ;;  %v4070_v62 = vrot.slane %v2444_v56, 4 }
 0x713   :  { %5570 = vmatpush3.bf16.msra.mxu0 %v6229_v55  ;;  %v6282_v55 = vld [vmem:[%s8250_s21 + $0x100] sm:$0xff]  }
 0x714   :  { %5571 = vmatprep.subr.bf16.mxu0 %v6231_v51  ;;  %v6283_v51 = vld [vmem:[%s8250_s21 + $0x278] sm:$0xff]  }
 0x717   :  { %5572 = vmatpush3.bf16.msra.mxu0 %v6233_v63  ;;  %v4072_v63 = vpack.c.bf16 %v4070_v62, %v4070_v62 }
 0x718   :  { %5573 = vmatprep.subr.bf16.mxu0 %v6235_v1  ;;  %v6284_v1 = vld [vmem:[%s8250_s21 + $0x238] sm:$0xff]  }
 0x71b   :  { %5574 = vmatpush3.bf16.msra.mxu0 %v6237_v17  ;;  %v3729_v17 = vpack.c.bf16 %v2444_v56, %v2444_v56 }
 0x71c   :  { %5575 = vmatprep.subr.bf16.mxu0 %v6239_v3  ;;  %v6285_v3 = vld [vmem:[%s8250_s21 + $0x270] sm:$0xff]  }
 0x71f   :  { %5576 = vmatpush3.bf16.msra.mxu0 %v6241_v5  ;;  %v4109_v5 = vrot.slane %v4072_v63, 2 }
 0x720   :  { %5577 = vmatprep.subr.bf16.mxu0 %v6243_v0  ;;  %v6286_v0 = vld [vmem:[%s8250_s21 + $0x230] sm:$0xff]  }
 0x723   :  { %5578 = vmatpush3.bf16.msra.mxu0 %v6245_v58  ;;  %v6299_v58 = vld [vmem:[%s8253_s24 + $0x78] sm:$0xff]  }
 0x724   :  { %5579 = vmatprep.subr.bf16.mxu0 %v6247_v24  ;;  %v6301_v24 = vld [vmem:[%s8253_s24 + $0x70] sm:$0xff]  }
 0x725   :  { %v2727_v48 = vpop.f32.mrf.mxu1 }
 0x726   :  { %v2728_v16 = vadd.f32 %v2727_v48, %v2688_v6  ;;  %v6303_v6 = vld [vmem:[%s8253_s24 + $0x68] sm:$0xff]   ;;  %v6291_v48 = vld [vmem:[%s8250_s21 + $0x258] sm:$0xff]  }
 0x727   :  { %v5922_v44 = vpop.f32.mrf.mxu1  ;;  %5580 = vmatpush3.bf16.msra.mxu0 %v6249_v40  ;;  %v6289_v40 = vld [vmem:[%s8250_s21 + $0x260] sm:$0xff]  }
 0x728   :  { %v2733_v20 = vmax.f32 %v2728_v16, 0.0  ;;  %5609 = vmatprep.subr.bf16.mxu0 %v6251_v45  ;;  %v6290_v45 = vld [vmem:[%s8250_s21 + $0x220] sm:$0xff]   ;;  %v6304_v16 = vld [vmem:[%s8253_s24 + $0x28] sm:$0xff]  }
 0x729   :  { %v2730_v12 = vpop.f32.mrf.mxu1  ;;  %v6305_v44 = vld [vmem:[%s8253_s24 + $0x60] sm:$0xff]  }
 0x72a   :  { %v3386_v22 = vpack.c.bf16 %v2733_v20, %v2733_v20  ;;  %3720 = vmatmul.mubr.bf16.vlgmr.msra.gmra.mxu0 %v3556_v7  ;;  %v6307_v20 = vld [vmem:[%s8253_s24 + $0x58] sm:$0xff]   ;;  %v6295_v12 = vld [vmem:[%s8250_s21 + $0x248] sm:$0xff]  }
 0x72b   :  { %v5923_v25 = vpop.f32.mrf.mxu1  ;;  %5610 = vmatpush3.bf16.msra.mxu0 %v6253_v38  ;;  %4061 = vmatprep.mubr.bf16.mxu0 %v3556_v7  ;;  %v6292_v38 = vld [vmem:[%s8250_s21 + $0x218] sm:$0xff]   ;;  %v6306_v7 = vld [vmem:[%s8253_s24 + $0x20] sm:$0xff]  }
 0x72c   :  { %3549 = vmatmul.mubr.bf16.vlgmr.msra.gmra.mxu1 %v3386_v22  ;;  %5611 = vmatprep.subr.bf16.mxu0 %v6255_v8  ;;  %v6294_v8 = vld [vmem:[%s8250_s21 + $0x210] sm:$0xff]   ;;  %v6297_v22 = vld [vmem:[%s8250_s21 + $0x240] sm:$0xff]   ;;  %v6308_v25 = vld [vmem:[%s8253_s24 + $0x18] sm:$0xff]  }
 0x72d   :  { %5588 = vmatpush3.bf16.msra.mxu1 %v6254_v27  ;;  %3892 = vmatprep.mubr.bf16.mxu1 %v3730_v9  ;;  %v6296_v27 = vld [vmem:[%s8250_s21 + $0x208] sm:$0xff]   ;;  %v4108_v9 = vrot.slane %v7869_v60, 2 }
 0x72e   :  { %5589 = vmatprep.subr.bf16.mxu1 %v6256_v23  ;;  %v6298_v23 = vld [vmem:[%s8250_s21 + $0x200] sm:$0xff]  }
 0x72f   :  { %5612 = vmatpush3.bf16.msra.mxu0 %v6257_v30  ;;  %v6309_v30 = vld [vmem:[%s8253_s24 + $0x50] sm:$0xff]  }
 0x730   :  { %5613 = vmatprep.subr.bf16.mxu0 %v6259_v46  ;;  %v6310_v46 = vld [vmem:[%s8253_s24 + $0x10] sm:$0xff]  }
 0x731   :  { %5590 = vmatpush3.bf16.msra.mxu1 %v6258_v33  ;;  %v6311_v33 = vld [vmem:[%s8253_s24 + $0x48] sm:$0xff]  }
 0x732   :  { %5591 = vmatprep.subr.bf16.mxu1 %v6260_v21  ;;  %v6313_v21 = vld [vmem:[%s8253_s24 + $0x40] sm:$0xff]  }
 0x733   :  { %5614 = vmatpush3.bf16.msra.mxu0 %v6261_v41  ;;  %v6314_v41 = vld [vmem:[%s8253_s24] sm:$0xff]  }
 0x734   :  { %5615 = vmatprep.subr.bf16.mxu0 %v6263_v34  ;;  %v6315_v34 = vld [vmem:[%s8253_s24 + $0xf8] sm:$0xff]  }
 0x735   :  { %5592 = vmatpush3.bf16.msra.mxu1 %v6262_v35  ;;  %v6316_v35 = vld [vmem:[%s8253_s24 + $0xb8] sm:$0xff]  }
 0x736   :  { %5593 = vmatprep.subr.bf16.mxu1 %v6264_v42  ;;  %v6317_v42 = vld [vmem:[%s8253_s24 + $0xf0] sm:$0xff]  }
 0x737   :  { %5616 = vmatpush3.bf16.msra.mxu0 %v6265_v43  ;;  %v6318_v43 = vld [vmem:[%s8253_s24 + $0xb0] sm:$0xff]  }
 0x738   :  { %5617 = vmatprep.subr.bf16.mxu0 %v6267_v59  ;;  %v6319_v59 = vld [vmem:[%s8253_s24 + $0xe8] sm:$0xff]  }
 0x739   :  { %5594 = vmatpush3.bf16.msra.mxu1 %v6266_v4  ;;  %v6320_v4 = vld [vmem:[%s8253_s24 + $0xa8] sm:$0xff]  }
 0x73a   :  { %5595 = vmatprep.subr.bf16.mxu1 %v6268_v52  ;;  %v6321_v52 = vld [vmem:[%s8253_s24 + $0xe0] sm:$0xff]  }
 0x73b   :  { %5618 = vmatpush3.bf16.msra.mxu0 %v6269_v37  ;;  %v6323_v37 = vld [vmem:[%s8253_s24 + $0xd8] sm:$0xff]  }
 0x73c   :  { %5619 = vmatprep.subr.bf16.mxu0 %v6271_v47  ;;  %v6325_v47 = vld [vmem:[%s8253_s24 + $0xd0] sm:$0xff]  }
 0x73d   :  { %5596 = vmatpush3.bf16.msra.mxu1 %v6270_v49  ;;  %v6326_v49 = vld [vmem:[%s8253_s24 + $0x90] sm:$0xff]  }
 0x73e   :  { %5597 = vmatprep.subr.bf16.mxu1 %v6272_v39  ;;  %v6327_v39 = vld [vmem:[%s8253_s24 + $0xc8] sm:$0xff]  }
 0x73f   :  { %5620 = vmatpush3.bf16.msra.mxu0 %v6273_v14  ;;  %v6329_v14 = vld [vmem:[%s8253_s24 + $0xc0] sm:$0xff]  }
 0x740   :  { %5621 = vmatprep.subr.bf16.mxu0 %v6275_v15  ;;  %v6330_v15 = vld [vmem:[%s8253_s24 + $0x80] sm:$0xff]  }
 0x741   :  { %5598 = vmatpush3.bf16.msra.mxu1 %v6274_v28 }
 0x742   :  { %5599 = vmatprep.subr.bf16.mxu1 %v6276_v53 }
 0x743   :  { %5622 = vmatpush3.bf16.msra.mxu0 %v6277_v36 }
 0x744   :  { %5623 = vmatprep.subr.bf16.mxu0 %v6279_v10 }
 0x745   :  { %5600 = vmatpush3.bf16.msra.mxu1 %v6278_v2 }
 0x746   :  { %5601 = vmatprep.subr.bf16.mxu1 %v6280_v61 }
 0x747   :  { %5624 = vmatpush3.bf16.msra.mxu0 %v6281_v54 }
 0x748   :  { %5653 = vmatprep.subr.bf16.mxu0 %v6299_v58 }
 0x749   :  { %5602 = vmatpush3.bf16.msra.mxu1 %v6282_v55 }
 0x74a   :  { %4062 = vmatmul.mubr.bf16.vlgmr.msra.gmra.mxu0 %v7869_v60  ;;  %5631 = vmatprep.subr.bf16.mxu1 %v6283_v51  ;;  %v6312_v60 = vld [vmem:[%s8253_s24 + $0x8] sm:$0xff]  }
 0x74b   :  { %5654 = vmatpush3.bf16.msra.mxu0 %v6300_v13 }
 0x74c   :  { %3893 = vmatmul.mubr.bf16.vlgmr.msra.gmra.mxu1 %v3729_v17  ;;  %5655 = vmatprep.subr.bf16.mxu0 %v6301_v24  ;;  %v4261_v17 = vsub.s32 1, %v7616_v32 }
 0x74d   :  { %5632 = vmatpush3.bf16.msra.mxu1 %v6284_v1  ;;  %4240 = vmatprep.mubr.bf16.mxu1 %v4109_v5  ;;  %v8176_v5 = vld [vmem:[%s8252_s23] sm:$0x1f] }
 0x74e   :  { %5633 = vmatprep.subr.bf16.mxu1 %v6285_v3  ;;  %v4262_v24 = vrot.slane %v8176_v5, %v4261_v17 }
 0x74f   :  { %5656 = vmatpush3.bf16.msra.mxu0 %v6302_v31 }
 0x750   :  { %5657 = vmatprep.subr.bf16.mxu0 %v6303_v6 }
 0x751   :  { %5634 = vmatpush3.bf16.msra.mxu1 %v6286_v0  ;;  %v4257_v0 = vsub.s32 0, %v7616_v32 }
 0x752   :  { %5635 = vmatprep.subr.bf16.mxu1 %v6287_v57 }
 0x753   :  { %5658 = vmatpush3.bf16.msra.mxu0 %v6304_v16 }
 0x754   :  { %5659 = vmatprep.subr.bf16.mxu0 %v6305_v44 }
 0x755   :  { %5636 = vmatpush3.bf16.msra.mxu1 %v6288_v29 }
 0x756   :  { %5637 = vmatprep.subr.bf16.mxu1 %v6289_v40 }
 0x757   :  { %5660 = vmatpush3.bf16.msra.mxu0 %v6306_v7 }
 0x758   :  { %5661 = vmatprep.subr.bf16.mxu0 %v6307_v20 }
 0x759   :  { %5638 = vmatpush3.bf16.msra.mxu1 %v6290_v45  ;;  %v4258_v45 = vrot.slane %v8176_v5, %v4257_v0 }
 0x75a   :  { %5639 = vmatprep.subr.bf16.mxu1 %v6291_v48 }
 0x75b   :  { %5662 = vmatpush3.bf16.msra.mxu0 %v6308_v25  ;;  %v6333_v25 = vld [vmem:[%s8253_s24 + $0x128] sm:$0xff]  }
 0x75c   :  { %5663 = vmatprep.subr.bf16.mxu0 %v6309_v30  ;;  %v6335_v30 = vld [vmem:[%s8253_s24 + $0x118] sm:$0xff]  }
 0x75d   :  { %5640 = vmatpush3.bf16.msra.mxu1 %v6292_v38 }
 0x75e   :  { %5641 = vmatprep.subr.bf16.mxu1 %v6293_v19 }
 0x75f   :  { %5664 = vmatpush3.bf16.msra.mxu0 %v6310_v46  ;;  %v4269_v46 = vsub.s32 3, %v7616_v32 }
 0x760   :  { %5665 = vmatprep.subr.bf16.mxu0 %v6311_v33 }
 0x761   :  { %5642 = vmatpush3.bf16.msra.mxu1 %v6294_v8 }
 0x762   :  { %5643 = vmatprep.subr.bf16.mxu1 %v6295_v12 }
 0x763   :  { %5666 = vmatpush3.bf16.msra.mxu0 %v6312_v60  ;;  %v6336_v60 = vld [vmem:[%s8253_s24 + $0x110] sm:$0xff]  }
 0x764   :  { %5667 = vmatprep.subr.bf16.mxu0 %v6313_v21  ;;  %v4265_v21 = vsub.s32 2, %v7616_v32 }
 0x765   :  { %5644 = vmatpush3.bf16.msra.mxu1 %v6296_v27  ;;  %v6331_v27 = vld [vmem:[%s8253_s24 + $0x138] sm:$0xff]  }
 0x766   :  { %5645 = vmatprep.subr.bf16.mxu1 %v6297_v22 }
 0x767   :  { %5668 = vmatpush3.bf16.msra.mxu0 %v6314_v41 }
 0x768   :  { %5924 = vmatprep.subr.bf16.mxu0 %v6449_v11 }
 0x769   :  { %5646 = vmatpush3.bf16.msra.mxu1 %v6298_v23  ;;  %v6332_v23 = vld [vmem:[%s8253_s24 + $0x130] sm:$0xff]  }
 0x76a   :  { %5675 = vmatprep.subr.bf16.mxu1 %v6315_v34 }
 0x76c   :  { %4241 = vmatmul.mubr.bf16.vlgmr.msra.gmra.mxu1 %v4108_v9  ;;  %v6334_v9 = vld [vmem:[%s8253_s24 + $0x120] sm:$0xff]  }
 0x76d   :  { %5676 = vmatpush3.bf16.msra.mxu1 %v6316_v35 }
 0x76e   :  { %5677 = vmatprep.subr.bf16.mxu1 %v6317_v42  ;;  %v4270_v42 = vrot.slane %v8176_v5, %v4269_v46 }
 0x771   :  { %5678 = vmatpush3.bf16.msra.mxu1 %v6318_v43 }
 0x772   :  { %5679 = vmatprep.subr.bf16.mxu1 %v6319_v59 }
 0x775   :  { %5680 = vmatpush3.bf16.msra.mxu1 %v6320_v4  ;;  %v6337_v4 = vld [vmem:[%s8253_s24 + $0x108] sm:$0xff]  }
 0x776   :  { %5681 = vmatprep.subr.bf16.mxu1 %v6321_v52 }
 0x779   :  { %5682 = vmatpush3.bf16.msra.mxu1 %v6322_v26 }
 0x77a   :  { %5683 = vmatprep.subr.bf16.mxu1 %v6323_v37  ;;  %v4266_v37 = vrot.slane %v8176_v5, %v4265_v21 }
 0x77d   :  { %5684 = vmatpush3.bf16.msra.mxu1 %v6324_v18 }
 0x77e   :  { %5685 = vmatprep.subr.bf16.mxu1 %v6325_v47 }
 0x781   :  { %5686 = vmatpush3.bf16.msra.mxu1 %v6326_v49 }
 0x782   :  { %5687 = vmatprep.subr.bf16.mxu1 %v6327_v39 }
 0x785   :  { %5688 = vmatpush3.bf16.msra.mxu1 %v6328_v50 }
 0x786   :  { %5689 = vmatprep.subr.bf16.mxu1 %v6329_v14  ;;  %v6338_v14 = vld [vmem:[%s8253_s24 + $0x100] sm:$0xff]  }
 0x789   :  { %5690 = vmatpush3.bf16.msra.mxu1 %v6330_v15 }
 0x7aa   :  { %v3295_v28 = vpop.f32.mrf.mxu0  ;;  %v8166_v53 = vpop.f32.mrf.mxu1 }
 0x7ac   :  { %v3297_v56 = vpop.f32.mrf.mxu0  ;;  %v8168_v36 = vpop.f32.mrf.mxu1 }
 0x7ae   :  { %v3299_v10 = vpop.f32.mrf.mxu0  ;;  %v3340_v2 = vpop.f32.mrf.mxu1 }
 0x7af   :  { %v4273_v2 = vsub.s32 4, %v7616_v32 }
 0x7b0   :  { %v3300_v61 = vpop.f32.mrf.mxu0  ;;  %v3341_v54 = vpop.f32.mrf.mxu1 }
 0x7ca   :  { %v5537_v62 = vpop.f32.mrf.mxu0 }
 0x7cc   :  { %v5538_v55 = vpop.f32.mrf.mxu0 }
 0x7cd   :  { %v8170_v51 = vadd.f32 %v5538_v55, %v5537_v62  ;;  %v4274_v62 = vrot.slane %v8176_v5, %v4273_v2  ;;  %v5286_v5 = vld [vmem:[%s8254_s25] ss:$0 sm:$0xff] }
 0x7ce   :  { %v5540_v63 = vpop.f32.mrf.mxu0 }
 0x7d0   :  { %v5541_v1 = vpop.f32.mrf.mxu0 }
 0x7ea   :  { %v5581_v3 = vpop.f32.mrf.mxu0 }
 0x7ec   :  { %v5559_v57 = vpop.f32.mrf.mxu1  ;;  %v5582_v58 = vpop.f32.mrf.mxu0 }
 0x7ed   :  { %v5583_v13 = vadd.f32 %v5582_v58, %v5581_v3 }
 0x7ee   :  { %v5560_v29 = vpop.f32.mrf.mxu1  ;;  %v5584_v40 = vpop.f32.mrf.mxu0 }
 0x7ef   :  { %v4249_v31 = vadd.f32 %v5583_v13, %v3297_v56  ;;  %v5561_v6 = vadd.f32 %v5560_v29, %v5559_v57 }
 0x7f0   :  { %v5562_v48 = vpop.f32.mrf.mxu1  ;;  %v5585_v16 = vpop.f32.mrf.mxu0 }
 0x7f1   :  { %v4281_v44 = vadd.f32 %v4262_v24, %v4249_v31  ;;  %v4248_v38 = vadd.f32 %v5561_v6, %v3295_v28 }
 0x7f2   :  { %v5563_v19 = vpop.f32.mrf.mxu1 }
 0x7f3   :  { %v4280_v7 = vadd.f32 %v4258_v45, %v4248_v38  ;;  %v4286_v20 = vmax.f32 %v4281_v44, 0.0 }
 0x7f5   :  { %v4285_v8 = vmax.f32 %v4280_v7, 0.0  ;;  %v4291_v12 = vpack.c.bf16 %v4286_v20, %v4286_v20 }
 0x7f7   :  { %v4290_v22 = vpack.c.bf16 %v4285_v8, %v4285_v8  ;;  %4654 = vmatprep.mubr.bf16.mxu0 %v4291_v12 }
 0x7f9   :  { %4655 = vmatmul.mubr.bf16.vlgmr.msra.gmra.mxu0 %v4290_v22 }
 0x7fa   :  { %5925 = vmatpush3.bf16.msra.mxu0 %v6331_v27  ;;  %5940 = vmatprep.mubr.msk.bf16.mxu0 %vm6450_vm1, %v6449_v11 }
 0x7fb   :  { %5926 = vmatprep.subr.bf16.mxu0 %v6449_v11 }
 0x7fe   :  { %5927 = vmatpush3.bf16.msra.mxu0 %v6332_v23 }
 0x7ff   :  { %5928 = vmatprep.subr.bf16.mxu0 %v6449_v11 }
 0x802   :  { %5929 = vmatpush3.bf16.msra.mxu0 %v6333_v25 }
 0x803   :  { %5930 = vmatprep.subr.bf16.mxu0 %v6449_v11 }
 0x806   :  { %5931 = vmatpush3.bf16.msra.mxu0 %v6334_v9 }
 0x807   :  { %5932 = vmatprep.subr.bf16.mxu0 %v6449_v11 }
 0x80a   :  { %v5625_v33 = vpop.f32.mrf.mxu0  ;;  %5933 = vmatpush3.bf16.msra.mxu0 %v6335_v30 }
 0x80b   :  { %5934 = vmatprep.subr.bf16.mxu0 %v6449_v11 }
 0x80c   :  { %v5603_v41 = vpop.f32.mrf.mxu1  ;;  %v5626_v34 = vpop.f32.mrf.mxu0 }
 0x80d   :  { %v5627_v35 = vadd.f32 %v5626_v34, %v5625_v33 }
 0x80e   :  { %v5604_v43 = vpop.f32.mrf.mxu1  ;;  %v5628_v59 = vpop.f32.mrf.mxu0  ;;  %5935 = vmatpush3.bf16.msra.mxu0 %v6336_v60 }
 0x80f   :  { %v4251_v52 = vadd.f32 %v5627_v35, %v8168_v36  ;;  %v5605_v26 = vadd.f32 %v5604_v43, %v5603_v41  ;;  %5936 = vmatprep.subr.bf16.mxu0 %v6449_v11 }
 0x810   :  { %v5606_v18 = vpop.f32.mrf.mxu1  ;;  %v5629_v47 = vpop.f32.mrf.mxu0 }
 0x811   :  { %v4283_v49 = vadd.f32 %v4270_v42, %v4251_v52  ;;  %v4250_v39 = vadd.f32 %v5605_v26, %v8166_v53 }
 0x812   :  { %v5607_v50 = vpop.f32.mrf.mxu1  ;;  %5937 = vmatpush3.bf16.msra.mxu0 %v6337_v4 }
 0x813   :  { %v4282_v15 = vadd.f32 %v4266_v37, %v4250_v39  ;;  %v4288_v28 = vmax.f32 %v4283_v49, 0.0  ;;  %5938 = vmatprep.subr.bf16.mxu0 %v6449_v11 }
 0x815   :  { %v4287_v56 = vmax.f32 %v4282_v15, 0.0  ;;  %v4293_v36 = vpack.c.bf16 %v4288_v28, %v4288_v28 }
 0x816   :  { %5939 = vmatpush3.bf16.msra.mxu0 %v6338_v14 }
 0x817   :  { %v4292_v10 = vpack.c.bf16 %v4287_v56, %v4287_v56  ;;  %4694 = vmatprep.mubr.bf16.mxu1 %v4293_v36 }
 0x819   :  { %4695 = vmatmul.mubr.bf16.vlgmr.msra.gmra.mxu1 %v4292_v10 }
 0x82c   :  { %v5647_v61 = vpop.f32.mrf.mxu1 }
 0x82e   :  { %v5648_v53 = vpop.f32.mrf.mxu1 }
 0x82f   :  { %v5649_v54 = vadd.f32 %v5648_v53, %v5647_v61 }
 0x830   :  { %v5650_v55 = vpop.f32.mrf.mxu1 }
 0x831   :  { %v4252_v63 = vadd.f32 %v5649_v54, %v8170_v51 }
 0x832   :  { %v5651_v1 = vpop.f32.mrf.mxu1 }
 0x833   :  { %v4284_v17 = vadd.f32 %v4274_v62, %v4252_v63 }
 0x835   :  { %v4289_v3 = vmax.f32 %v4284_v17, 0.0 }
 0x837   :  { %v4294_v11 = vpack.c.bf16 %v4289_v3, %v4289_v3 }
 0x839   :  { %5941 = vmatmul.mubr.bf16.vlgmr.msra.gmra.mxu0 %v4294_v11 }
 0x8b9   :  { %v5669_v0 = vpop.f32.mrf.mxu0 }
 0x8bb   :  { %v5670_v57 = vpop.f32.mrf.mxu0 }
 0x8bc   :  { %v5671_v31 = vadd.f32 %v5670_v57, %v5669_v0 }
 0x8bd   :  { %v5672_v58 = vpop.f32.mrf.mxu0 }
 0x8be   :  { %v4657_v51 = vadd.f32 %v5671_v31, %v5286_v5 }
 0x8bf   :  { %v5673_v13 = vpop.f32.mrf.mxu0 }
 0x8d9   :  { %v5691_v24 = vpop.f32.mrf.mxu1 }
 0x8db   :  { %v5692_v29 = vpop.f32.mrf.mxu1 }
 0x8dc   :  { %v5693_v6 = vadd.f32 %v5692_v29, %v5691_v24 }
 0x8dd   :  { %v5694_v32 = vpop.f32.mrf.mxu1 }
 0x8de   :  { %v4697_v45 = vadd.f32 %v5693_v6, %v4657_v51 }
 0x8df   :  { %v5695_v40 = vpop.f32.mrf.mxu1 }
 0x8f9   :  { %v4736_v48 = vpop.f32.mrf.mxu0 }
 0x8fa   :  { %v4737_v16 = vadd.f32 %v4736_v48, %v4697_v45 }
 0x8fb   :  { %v5942_v44 = vpop.f32.mrf.mxu0 }
 0x8fc   :  { %4742 = vst [vmem:[#allocation3] sm:$0x3] %v4737_v16 }
 0x8fd   :  { %v4739_v38 = vpop.f32.mrf.mxu0 }
 0x8fe   :  { %6438 = shalt.err (!%p6435_p4)
}
 0x8ff   :  { %4752 = dma.vmem_to_hbm [thread:$0]  %s4750_s20, 32, %s8255_s26, [#allocation4]   ;;  %v5943_v19 = vpop.f32.mrf.mxu0 }
 0x900   :  { %6447 = dma.done.wait [#allocation4], 32  }
 0x901   :  { %6448 = vsyncadd [#allocation4], 4294967264 }
 0x902   :  { %4756 = vsyncpa [#allocation4], 1 }

</bundles_post_ra>
